<compile_context>
chip_gen: v7x
topology: tpu7x:2x2x1
jax: 0.10.0
libtpu: 0.0.40
codegen_flags: <defaults>
</compile_context>

<pallas_src>
import functools
import math

import jax
import jax.numpy as jnp
import numpy as np
from jax.experimental import pallas as pl
from jax.experimental.pallas import tpu as pltpu

MIN_DIM = 8            # spatial buffers never shrink below this (keeps matmul dims >= 8)
TAIL_SIZE = 8          # once buffers are <= this, run all remaining levels in one kernel
                       # (production: 64-128; kept small here so BOTH paths run at 16x16)
MASK_KERNEL_NUMEL = 9.0
VMEM_LIMIT = 64 * 1024 * 1024


# ----------------------------------------------------------------------------
# Static band matrices: pad(replicate-H / ring-W, 1) + 3x3 conv, stride 2,
# expressed as  out = A_h @ x @ A_w   (A_w is pre-transposed: (in, out)).
def _out_size(n):
    return (n - 1) // 2 + 1          # conv(kernel=3, stride=2, pad=1)


def _level_matrices(ht, wt, hb_in, wb_in, hb_out=None, wb_out=None):
    """Rows/cols beyond the true sizes are zero, so zero-padded buffers stay zero."""
    hn, wn = _out_size(ht), _out_size(wt)
    if hb_out is None:
        hb_out = max(hn, MIN_DIM)
    if wb_out is None:
        wb_out = max(wn, MIN_DIM)
    taps = (0.25, 0.5, 0.25)                       # [1, 2, 1] / 4  (separable blur / 16)
    ah = np.zeros((hb_out, hb_in), np.float32)     # blur along H
    mh = np.zeros((hb_out, hb_in), np.float32)     # ones along H
    awt = np.zeros((wb_in, wb_out), np.float32)    # blur along W (transposed)
    mwt = np.zeros((wb_in, wb_out), np.float32)    # ones along W (transposed)
    for i in range(hn):
        for d in range(3):
            src = min(max(2 * i + d - 1, 0), ht - 1)   # replicate padding along H
            ah[i, src] += taps[d]
            mh[i, src] += 1.0
    for j in range(wn):
        for d in range(3):
            src = (2 * j + d - 1) % wt                 # "ring" (circular) padding along W
            awt[src, j] += taps[d]
            mwt[src, j] += 1.0
    return (hn, wn, hb_out, wb_out), (ah, awt, mh, mwt)


# ----------------------------------------------------------------------------
# Fused per-level kernel: loss + mask update + both masked blurpools.
# Grid = (N, C); C is the "arbitrary" accumulation axis.
def _level_kernel(gen_ref, ref_ref, mask_ref, ah_ref, awt_ref, mh_ref, mwt_ref,
                  loss_ref, gen_o_ref, ref_o_ref, mask_o_ref,
                  acc_ref, den_ref, norm_ref, *, relative):
    c = pl.program_id(1)
    g = gen_ref[0, 0]          # (Hb, Wb) - this channel
    r = ref_ref[0, 0]
    m = mask_ref[0, 0]         # (Hb, Wb) - shared across channels (DMA'd once per batch)

    # ---- channel-independent work, once per batch element (c == 0) ----
    @pl.when(c == 0)
    def _():
        mconv = jnp.dot(mh_ref[...],
                        jnp.dot(m, mwt_ref[...], preferred_element_type=jnp.float32),
                        preferred_element_type=jnp.float32)          # 3x3 ones conv, stride 2
        dead = mconv == 0.0
        norm_ref[...] = MASK_KERNEL_NUMEL / jnp.where(dead, 1.0, mconv)
        mask_o_ref[0, 0] = jnp.where(dead, 0.0, 1.0).astype(jnp.float32)
        den_ref[...] = jnp.sum(m, axis=0, keepdims=True).sum(axis=1, keepdims=True)
        acc_ref[...] = jnp.zeros_like(acc_ref)

    # ---- masked (relative) L1 contribution of this channel ----
    d = jnp.abs(r - g)
    if relative:
        d = d * m / (r + 1e-11)
    d = d * m        # second mask multiply kept so soft (non-binary) masks match PyTorch exactly
    # sublane (H) reduce first, single cross-lane (W) reduce last
    acc_ref[...] += jnp.sum(d, axis=0, keepdims=True).sum(axis=1, keepdims=True)

    @pl.when(c == pl.num_programs(1) - 1)
    def _():
        loss_ref[...] = (acc_ref[...] / (den_ref[...] + 1e-8)).reshape(1, 1, 1)

    # ---- masked blurpool + norm for this channel (conv as two small matmuls) ----
    norm = norm_ref[...]
    gen_o_ref[0, 0] = jnp.dot(
        ah_ref[...], jnp.dot(g * m, awt_ref[...], preferred_element_type=jnp.float32),
        preferred_element_type=jnp.float32) * norm
    ref_o_ref[0, 0] = jnp.dot(
        ah_ref[...], jnp.dot(r * m, awt_ref[...], preferred_element_type=jnp.float32),
        preferred_element_type=jnp.float32) * norm


def _fused_level_call(gen, ref, mask, mats, out_hw, relative):
    n, c, hb, wb = gen.shape
    ah, awt, mh, mwt = (jnp.asarray(x) for x in mats)
    hbn, wbn = out_hw

    img_in = pl.BlockSpec((1, 1, hb, wb), lambda b, ch: (b, ch, 0, 0))
    msk_in = pl.BlockSpec((1, 1, hb, wb), lambda b, ch: (b, 0, 0, 0))
    mat_h = pl.BlockSpec((hbn, hb), lambda b, ch: (0, 0))
    mat_w = pl.BlockSpec((wb, wbn), lambda b, ch: (0, 0))
    loss_o = pl.BlockSpec((1, 1, 1), lambda b, ch: (b, 0, 0))
    img_o = pl.BlockSpec((1, 1, hbn, wbn), lambda b, ch: (b, ch, 0, 0))
    msk_o = pl.BlockSpec((1, 1, hbn, wbn), lambda b, ch: (b, 0, 0, 0))

    loss, gen2, ref2, mask2 = pl.pallas_call(
        functools.partial(_level_kernel, relative=relative),
        out_shape=(jax.ShapeDtypeStruct((n, 1, 1), jnp.float32),
                   jax.ShapeDtypeStruct((n, c, hbn, wbn), jnp.float32),
                   jax.ShapeDtypeStruct((n, c, hbn, wbn), jnp.float32),
                   jax.ShapeDtypeStruct((n, 1, hbn, wbn), jnp.float32)),
        grid=(n, c),
        in_specs=[img_in, img_in, msk_in, mat_h, mat_w, mat_h, mat_w],
        out_specs=(loss_o, img_o, img_o, msk_o),
        scratch_shapes=[pltpu.VMEM((1, 1), jnp.float32),        # loss numerator accumulator
                        pltpu.VMEM((1, 1), jnp.float32),        # mask denominator
                        pltpu.VMEM((hbn, wbn), jnp.float32)],   # norm = 9 / mconv
        compiler_params=pltpu.CompilerParams(
            dimension_semantics=("parallel", "arbitrary"),
            vmem_limit_bytes=VMEM_LIMIT),
    )(gen, ref, mask, ah, awt, mh, mwt)
    return loss[:, 0, 0], gen2, ref2, mask2


# ----------------------------------------------------------------------------
# Tail kernel: all remaining (small) levels inside one kernel, VMEM-resident.
def _tail_kernel(gen_ref, ref_ref, mask_ref, ah_ref, awt_ref, mh_ref, mwt_ref,
                 loss_ref, *, num_levels, num_ch, relative):
    g = [gen_ref[0, ch] for ch in range(num_ch)]      # list of (Sh, Sw) per channel
    r = [ref_ref[0, ch] for ch in range(num_ch)]
    m = mask_ref[0, 0]
    total = jnp.zeros((1, 1), jnp.float32)

    for lvl in range(num_levels):
        # ---- masked (relative) L1 loss at this level ----
        d_sum = jnp.zeros_like(m)
        for ch in range(num_ch):
            d = jnp.abs(r[ch] - g[ch])
            if relative:
                d = d * m / (r[ch] + 1e-11)
            d_sum = d_sum + d * m
        num = jnp.sum(d_sum, axis=0, keepdims=True).sum(axis=1, keepdims=True)
        den = jnp.sum(m, axis=0, keepdims=True).sum(axis=1, keepdims=True)
        total = total + num / (den + 1e-8)

        # ---- downsample to the next level (skipped after the final level: unused) ----
        if lvl < num_levels - 1:
            ah = ah_ref[lvl]
            awt = awt_ref[lvl]
            mconv = jnp.dot(mh_ref[lvl],
                            jnp.dot(m, mwt_ref[lvl], preferred_element_type=jnp.float32),
                            preferred_element_type=jnp.float32)
            dead = mconv == 0.0
            norm = MASK_KERNEL_NUMEL / jnp.where(dead, 1.0, mconv)
            g = [jnp.dot(ah, jnp.dot(g[ch] * m, awt, preferred_element_type=jnp.float32),
                         preferred_element_type=jnp.float32) * norm for ch in range(num_ch)]
            r = [jnp.dot(ah, jnp.dot(r[ch] * m, awt, preferred_element_type=jnp.float32),
                         preferred_element_type=jnp.float32) * norm for ch in range(num_ch)]
            m = jnp.where(dead, 0.0, 1.0).astype(jnp.float32)

    loss_ref[...] = total.reshape(1, 1, 1)


def _tail_call(gen, ref, mask, stacked, num_levels, relative):
    n, c, sh, sw = gen.shape
    ahs, awts, mhs, mwts = stacked
    img = pl.BlockSpec((1, c, sh, sw), lambda b: (b, 0, 0, 0))
    msk = pl.BlockSpec((1, 1, sh, sw), lambda b: (b, 0, 0, 0))
    mat_h = pl.BlockSpec(ahs.shape, lambda b: (0, 0, 0))
    mat_w = pl.BlockSpec(awts.shape, lambda b: (0, 0, 0))
    loss_o = pl.BlockSpec((1, 1, 1), lambda b: (b, 0, 0))
    loss = pl.pallas_call(
        functools.partial(_tail_kernel, num_levels=num_levels, num_ch=c, relative=relative),
        out_shape=jax.ShapeDtypeStruct((n, 1, 1), jnp.float32),
        grid=(n,),
        in_specs=[img, img, msk, mat_h, mat_w, mat_h, mat_w],
        out_specs=loss_o,
        compiler_params=pltpu.CompilerParams(
            dimension_semantics=("parallel",),
            vmem_limit_bytes=VMEM_LIMIT),
    )(gen, ref, mask, ahs, awts, mhs, mwts)
    return loss[:, 0, 0]


# ----------------------------------------------------------------------------
# Forward: MultiScaleMaskedLoss.forward(gen, ref, mask) -> loss of shape (N,)
def multiscale_masked_loss(gen, ref, mask, level=None, relative=True):
    n, c, h, w = gen.shape
    lvl = max(1, int(math.log2(h)) if level is None else int(level))

    ht, wt = h, w
    hb, wb = max(h, MIN_DIM), max(w, MIN_DIM)
    if (hb, wb) != (h, w):
        pad = ((0, 0), (0, 0), (0, hb - h), (0, wb - w))
        gen = jnp.pad(gen, pad)
        ref = jnp.pad(ref, pad)
        mask = jnp.pad(mask, pad)   # zero padding: masked out, does not affect the loss

    total = jnp.zeros((n,), jnp.float32)
    lev = 0
    # -------- big levels: one fused kernel per level --------
    while lev < lvl and (hb > TAIL_SIZE or wb > TAIL_SIZE):
        (hn, wn, hbn, wbn), mats = _level_matrices(ht, wt, hb, wb)
        loss_l, gen, ref, mask = _fused_level_call(gen, ref, mask, mats, (hbn, wbn), relative)
        total = total + loss_l
        ht, wt, hb, wb = hn, wn, hbn, wbn
        lev += 1

    # -------- tail: remaining levels fully resident in a single kernel --------
    rem = lvl - lev
    if rem > 0:
        per_level = []
        tht, twt = ht, wt
        for _ in range(max(rem - 1, 1)):          # matrices for all but the last level
            (thn, twn, _, _), m4 = _level_matrices(tht, twt, hb, wb, hb, wb)
            per_level.append(m4)
            tht, twt = thn, twn
        stacked = tuple(jnp.asarray(np.stack([m4[i] for m4 in per_level])) for i in range(4))
        total = total + _tail_call(gen, ref, mask, stacked, rem, relative)
    return total


# ----------------------------------------------------------------------------
# Pure-JAX reference (same ring-padding assumption) for validation.
def _ref_pad(x):
    x = jnp.pad(x, ((0, 0), (0, 0), (1, 1), (0, 0)), mode="edge")   # replicate along H
    x = jnp.pad(x, ((0, 0), (0, 0), (0, 0), (1, 1)), mode="wrap")   # ring along W
    return x


def _ref_dwconv(x, k2d):
    n, c, h, w = x.shape
    k = jnp.broadcast_to(k2d.astype(jnp.float32), (c, 1, 3, 3))
    return jax.lax.conv_general_dilated(
        x, k, window_strides=(2, 2), padding="VALID",
        dimension_numbers=("NCHW", "OIHW", "NCHW"), feature_group_count=c,
        precision=jax.lax.Precision.HIGHEST)


def _ref_masked_loss(img_ref, img_gen, mask, relative=True):
    loss = jnp.abs(img_ref - img_gen)
    if relative:
        loss = loss * mask / (img_ref + 1e-11)
    loss = (loss * mask).sum(axis=(1, 2, 3))
    return loss / (mask.sum(axis=(1, 2, 3)) + 1e-8)


def _ref_forward(gen, ref, mask, level=None, relative=True):
    n, c, h, w = gen.shape
    lvl = max(1, int(math.log2(h)) if level is None else int(level))
    blur = jnp.outer(jnp.array([1.0, 2.0, 1.0]), jnp.array([1.0, 2.0, 1.0]))
    blur = blur / blur.sum()
    ones_k = jnp.ones((3, 3), jnp.float32)
    loss = jnp.zeros((n,), jnp.float32)
    for _ in range(lvl):
        loss = loss + _ref_masked_loss(ref, gen, mask, relative)
        mconv = _ref_dwconv(_ref_pad(mask), ones_k)
        norm = MASK_KERNEL_NUMEL / jnp.where(mconv == 0.0, 1.0, mconv)
        new_mask = jnp.where(mconv == 0.0, 0.0, 1.0)
        gen = _ref_dwconv(_ref_pad(gen * mask), blur) * norm
        ref = _ref_dwconv(_ref_pad(ref * mask), blur) * norm
        mask = new_mask
    return loss


# ----------------------------------------------------------------------------
if __name__ == "__main__":
    key = jax.random.PRNGKey(0)
    k1, k2, k3 = jax.random.split(key, 3)
    N, C, H, W = 2, 4, 16, 16
    gen = jax.random.uniform(k1, (N, C, H, W), jnp.float32, minval=0.1, maxval=1.0)
    ref = jax.random.uniform(k2, (N, C, H, W), jnp.float32, minval=0.1, maxval=1.0)
    mask = (jax.random.uniform(k3, (N, 1, H, W)) > 0.3).astype(jnp.float32)

    loss = jax.jit(multiscale_masked_loss)(gen, ref, mask)
    jax.block_until_ready(loss)
    assert loss.shape == (N,)

    expected = _ref_forward(gen, ref, mask)
    np.testing.assert_allclose(np.asarray(loss), np.asarray(expected), rtol=2e-2, atol=1e-4)
    print("KERNEL_OK")
</pallas_src>

<mosaic_0001>
module attributes {stable_mosaic.version = 11 : i64} {
  func.func @_level_kernel(%arg0: i32, %arg1: i32, %arg2: memref<1x1x16x16xf32, #tpu.memory_space<vmem>>, %arg3: memref<1x1x16x16xf32, #tpu.memory_space<vmem>>, %arg4: memref<1x1x16x16xf32, #tpu.memory_space<vmem>>, %arg5: memref<8x16xf32, #tpu.memory_space<vmem>>, %arg6: memref<16x8xf32, #tpu.memory_space<vmem>>, %arg7: memref<8x16xf32, #tpu.memory_space<vmem>>, %arg8: memref<16x8xf32, #tpu.memory_space<vmem>>, %arg9: memref<1x1x1xf32, #tpu.memory_space<vmem>>, %arg10: memref<1x1x8x8xf32, #tpu.memory_space<vmem>>, %arg11: memref<1x1x8x8xf32, #tpu.memory_space<vmem>>, %arg12: memref<1x1x8x8xf32, #tpu.memory_space<vmem>>, %arg13: memref<1x1xf32, #tpu.memory_space<vmem>>, %arg14: memref<1x1xf32, #tpu.memory_space<vmem>>, %arg15: memref<8x8xf32, #tpu.memory_space<vmem>>) attributes {dimension_semantics = [#tpu.dimension_semantics<parallel>, #tpu.dimension_semantics<arbitrary>], iteration_bounds = array<i64: 2, 4>, scalar_prefetch = 0 : i64, scratch_operands = 3 : i64, tpu.core_type = #tpu.core_type<tc>, window_params = [{transform_indices = @transform_0, window_bounds = array<i64: 1, 1, 16, 16>}, {transform_indices = @transform_1, window_bounds = array<i64: 1, 1, 16, 16>}, {transform_indices = @transform_2, window_bounds = array<i64: 1, 1, 16, 16>}, {pipeline_mode = #tpu.pipeline_mode<synchronous>, transform_indices = @transform_3, window_bounds = array<i64: 8, 16>}, {pipeline_mode = #tpu.pipeline_mode<synchronous>, transform_indices = @transform_4, window_bounds = array<i64: 16, 8>}, {pipeline_mode = #tpu.pipeline_mode<synchronous>, transform_indices = @transform_5, window_bounds = array<i64: 8, 16>}, {pipeline_mode = #tpu.pipeline_mode<synchronous>, transform_indices = @transform_6, window_bounds = array<i64: 16, 8>}, {transform_indices = @transform_7, window_bounds = array<i64: 1, 1, 1>}, {transform_indices = @transform_8, window_bounds = array<i64: 1, 1, 8, 8>}, {transform_indices = @transform_9, window_bounds = array<i64: 1, 1, 8, 8>}, {transform_indices = @transform_10, window_bounds = array<i64: 1, 1, 8, 8>}]} {
    %c0 = arith.constant 0 : index
    %c0_0 = arith.constant 0 : index
    %c0_1 = arith.constant 0 : index
    %c0_2 = arith.constant 0 : index
    %0 = vector.load %arg2[%c0, %c0_0, %c0_1, %c0_2] : memref<1x1x16x16xf32, #tpu.memory_space<vmem>>, vector<1x1x16x16xf32>
    %1 = vector.shape_cast %0 : vector<1x1x16x16xf32> to vector<16x16xf32>
    %c0_3 = arith.constant 0 : index
    %c0_4 = arith.constant 0 : index
    %c0_5 = arith.constant 0 : index
    %c0_6 = arith.constant 0 : index
    %2 = vector.load %arg3[%c0_3, %c0_4, %c0_5, %c0_6] : memref<1x1x16x16xf32, #tpu.memory_space<vmem>>, vector<1x1x16x16xf32>
    %3 = vector.shape_cast %2 : vector<1x1x16x16xf32> to vector<16x16xf32>
    %c0_7 = arith.constant 0 : index
    %c0_8 = arith.constant 0 : index
    %c0_9 = arith.constant 0 : index
    %c0_10 = arith.constant 0 : index
    %4 = vector.load %arg4[%c0_7, %c0_8, %c0_9, %c0_10] : memref<1x1x16x16xf32, #tpu.memory_space<vmem>>, vector<1x1x16x16xf32>
    %5 = vector.shape_cast %4 : vector<1x1x16x16xf32> to vector<16x16xf32>
    %c0_i32 = arith.constant 0 : i32
    %6 = arith.cmpi eq, %arg1, %c0_i32 : i32
    %7 = arith.extui %6 : i1 to i32
    %c0_i32_11 = arith.constant 0 : i32
    %8 = arith.cmpi ne, %7, %c0_i32_11 : i32
    scf.if %8 {
      %c0_41 = arith.constant 0 : index
      %c0_42 = arith.constant 0 : index
      %45 = vector.load %arg7[%c0_41, %c0_42] : memref<8x16xf32, #tpu.memory_space<vmem>>, vector<8x16xf32>
      %c0_43 = arith.constant 0 : index
      %c0_44 = arith.constant 0 : index
      %46 = vector.load %arg8[%c0_43, %c0_44] : memref<16x8xf32, #tpu.memory_space<vmem>>, vector<16x8xf32>
      %cst_45 = arith.constant dense<0.000000e+00> : vector<16x8xf32>
      %47 = tpu.matmul %5, %46, %cst_45 {dimension_numbers = #tpu.dot_dimension_numbers<[1], [0], [0], [1], [0, 0, 1, 1], [], []>} : vector<16x16xf32>, vector<16x8xf32>, vector<16x8xf32> -> vector<16x8xf32>
      %cst_46 = arith.constant dense<0.000000e+00> : vector<8x8xf32>
      %48 = tpu.matmul %45, %47, %cst_46 {dimension_numbers = #tpu.dot_dimension_numbers<[1], [0], [0], [1], [0, 0, 1, 1], [], []>} : vector<8x16xf32>, vector<16x8xf32>, vector<8x8xf32> -> vector<8x8xf32>
      %cst_47 = arith.constant 0.000000e+00 : f32
      %49 = vector.broadcast %cst_47 : f32 to vector<8x8xf32>
      %50 = arith.cmpf oeq, %48, %49 : vector<8x8xf32>
      %cst_48 = arith.constant 1.000000e+00 : f32
      %51 = vector.broadcast %cst_48 : f32 to vector<8x8xf32>
      %52 = arith.select %50, %51, %48 : vector<8x8xi1>, vector<8x8xf32>
      %cst_49 = arith.constant 9.000000e+00 : f32
      %53 = vector.broadcast %cst_49 : f32 to vector<8x8xf32>
      %54 = arith.divf %53, %52 : vector<8x8xf32>
      %c0_50 = arith.constant 0 : index
      %c0_51 = arith.constant 0 : index
      %55 = vector.load %arg15[%c0_50, %c0_51] : memref<8x8xf32, #tpu.memory_space<vmem>>, vector<8x8xf32>
      tpu.vector_store %arg15[%c0_50, %c0_51], %54 {strides = array<i32>} : memref<8x8xf32, #tpu.memory_space<vmem>>, vector<8x8xf32>,
      %cst_52 = arith.constant 0.000000e+00 : f32
      %cst_53 = arith.constant 1.000000e+00 : f32
      %56 = vector.broadcast %cst_52 : f32 to vector<8x8xf32>
      %57 = vector.broadcast %cst_53 : f32 to vector<8x8xf32>
      %58 = arith.select %50, %56, %57 : vector<8x8xi1>, vector<8x8xf32>
      %c0_54 = arith.constant 0 : index
      %c0_55 = arith.constant 0 : index
      %c0_56 = arith.constant 0 : index
      %c0_57 = arith.constant 0 : index
      %59 = vector.load %arg12[%c0_54, %c0_55, %c0_56, %c0_57] : memref<1x1x8x8xf32, #tpu.memory_space<vmem>>, vector<1x1x8x8xf32>
      %60 = vector.shape_cast %59 : vector<1x1x8x8xf32> to vector<8x8xf32>
      %61 = vector.shape_cast %58 : vector<8x8xf32> to vector<1x1x8x8xf32>
      tpu.vector_store %arg12[%c0_54, %c0_55, %c0_56, %c0_57], %61 {strides = array<i32>} : memref<1x1x8x8xf32, #tpu.memory_space<vmem>>, vector<1x1x8x8xf32>,
      %cst_58 = arith.constant dense<0.000000e+00> : vector<16xf32>
      %62 = vector.multi_reduction <add>, %5, %cst_58 [0] : vector<16x16xf32> to vector<16xf32>
      %63 = vector.shape_cast %62 : vector<16xf32> to vector<1x16xf32>
      %cst_59 = arith.constant dense<0.000000e+00> : vector<1xf32>
      %64 = vector.multi_reduction <add>, %63, %cst_59 [1] : vector<1x16xf32> to vector<1xf32>
      %65 = vector.shape_cast %64 : vector<1xf32> to vector<1x1xf32>
      %c0_60 = arith.constant 0 : index
      %c0_61 = arith.constant 0 : index
      %66 = vector.load %arg14[%c0_60, %c0_61] : memref<1x1xf32, #tpu.memory_space<vmem>>, vector<1x1xf32>
      tpu.vector_store %arg14[%c0_60, %c0_61], %65 {strides = array<i32>} : memref<1x1xf32, #tpu.memory_space<vmem>>, vector<1x1xf32>,
      %cst_62 = arith.constant 0.000000e+00 : f32
      %67 = vector.broadcast %cst_62 : f32 to vector<1x1xf32>
      %c0_63 = arith.constant 0 : index
      %c0_64 = arith.constant 0 : index
      %68 = vector.load %arg13[%c0_63, %c0_64] : memref<1x1xf32, #tpu.memory_space<vmem>>, vector<1x1xf32>
      tpu.vector_store %arg13[%c0_63, %c0_64], %67 {strides = array<i32>} : memref<1x1xf32, #tpu.memory_space<vmem>>, vector<1x1xf32>,
    } else {
    }
    %9 = arith.subf %3, %1 : vector<16x16xf32>
    %10 = math.absf %9 : vector<16x16xf32>
    %11 = arith.mulf %10, %5 : vector<16x16xf32>
    %cst = arith.constant 9.99999996E-12 : f32
    %12 = vector.broadcast %cst : f32 to vector<16x16xf32>
    %13 = arith.addf %3, %12 : vector<16x16xf32>
    %14 = arith.divf %11, %13 : vector<16x16xf32>
    %15 = arith.mulf %14, %5 : vector<16x16xf32>
    %c0_12 = arith.constant 0 : index
    %c0_13 = arith.constant 0 : index
    %16 = vector.load %arg13[%c0_12, %c0_13] : memref<1x1xf32, #tpu.memory_space<vmem>>, vector<1x1xf32>
    %cst_14 = arith.constant dense<0.000000e+00> : vector<16xf32>
    %17 = vector.multi_reduction <add>, %15, %cst_14 [0] : vector<16x16xf32> to vector<16xf32>
    %18 = vector.shape_cast %17 : vector<16xf32> to vector<1x16xf32>
    %cst_15 = arith.constant dense<0.000000e+00> : vector<1xf32>
    %19 = vector.multi_reduction <add>, %18, %cst_15 [1] : vector<1x16xf32> to vector<1xf32>
    %20 = vector.shape_cast %19 : vector<1xf32> to vector<1x1xf32>
    %21 = arith.addf %16, %20 : vector<1x1xf32>
    %c0_16 = arith.constant 0 : index
    %c0_17 = arith.constant 0 : index
    %22 = vector.load %arg13[%c0_16, %c0_17] : memref<1x1xf32, #tpu.memory_space<vmem>>, vector<1x1xf32>
    tpu.vector_store %arg13[%c0_16, %c0_17], %21 {strides = array<i32>} : memref<1x1xf32, #tpu.memory_space<vmem>>, vector<1x1xf32>,
    %c3_i32 = arith.constant 3 : i32
    %23 = arith.cmpi eq, %arg1, %c3_i32 : i32
    %24 = arith.extui %23 : i1 to i32
    %c0_i32_18 = arith.constant 0 : i32
    %25 = arith.cmpi ne, %24, %c0_i32_18 : i32
    scf.if %25 {
      %c0_41 = arith.constant 0 : index
      %c0_42 = arith.constant 0 : index
      %45 = vector.load %arg13[%c0_41, %c0_42] : memref<1x1xf32, #tpu.memory_space<vmem>>, vector<1x1xf32>
      %c0_43 = arith.constant 0 : index
      %c0_44 = arith.constant 0 : index
      %46 = vector.load %arg14[%c0_43, %c0_44] : memref<1x1xf32, #tpu.memory_space<vmem>>, vector<1x1xf32>
      %cst_45 = arith.constant 9.99999993E-9 : f32
      %47 = vector.broadcast %cst_45 : f32 to vector<1x1xf32>
      %48 = arith.addf %46, %47 : vector<1x1xf32>
      %49 = arith.divf %45, %48 : vector<1x1xf32>
      %50 = vector.shape_cast %49 : vector<1x1xf32> to vector<1x1x1xf32>
      %c0_46 = arith.constant 0 : index
      %c0_47 = arith.constant 0 : index
      %c0_48 = arith.constant 0 : index
      %51 = vector.load %arg9[%c0_46, %c0_47, %c0_48] : memref<1x1x1xf32, #tpu.memory_space<vmem>>, vector<1x1x1xf32>
      tpu.vector_store %arg9[%c0_46, %c0_47, %c0_48], %50 {strides = array<i32>} : memref<1x1x1xf32, #tpu.memory_space<vmem>>, vector<1x1x1xf32>,
    } else {
    }
    %c0_19 = arith.constant 0 : index
    %c0_20 = arith.constant 0 : index
    %26 = vector.load %arg15[%c0_19, %c0_20] : memref<8x8xf32, #tpu.memory_space<vmem>>, vector<8x8xf32>
    %c0_21 = arith.constant 0 : index
    %c0_22 = arith.constant 0 : index
    %27 = vector.load %arg5[%c0_21, %c0_22] : memref<8x16xf32, #tpu.memory_space<vmem>>, vector<8x16xf32>
    %28 = arith.mulf %1, %5 : vector<16x16xf32>
    %c0_23 = arith.constant 0 : index
    %c0_24 = arith.constant 0 : index
    %29 = vector.load %arg6[%c0_23, %c0_24] : memref<16x8xf32, #tpu.memory_space<vmem>>, vector<16x8xf32>
    %cst_25 = arith.constant dense<0.000000e+00> : vector<16x8xf32>
    %30 = tpu.matmul %28, %29, %cst_25 {dimension_numbers = #tpu.dot_dimension_numbers<[1], [0], [0], [1], [0, 0, 1, 1], [], []>} : vector<16x16xf32>, vector<16x8xf32>, vector<16x8xf32> -> vector<16x8xf32>
    %cst_26 = arith.constant dense<0.000000e+00> : vector<8x8xf32>
    %31 = tpu.matmul %27, %30, %cst_26 {dimension_numbers = #tpu.dot_dimension_numbers<[1], [0], [0], [1], [0, 0, 1, 1], [], []>} : vector<8x16xf32>, vector<16x8xf32>, vector<8x8xf32> -> vector<8x8xf32>
    %32 = arith.mulf %31, %26 : vector<8x8xf32>
    %c0_27 = arith.constant 0 : index
    %c0_28 = arith.constant 0 : index
    %c0_29 = arith.constant 0 : index
    %c0_30 = arith.constant 0 : index
    %33 = vector.load %arg10[%c0_27, %c0_28, %c0_29, %c0_30] : memref<1x1x8x8xf32, #tpu.memory_space<vmem>>, vector<1x1x8x8xf32>
    %34 = vector.shape_cast %33 : vector<1x1x8x8xf32> to vector<8x8xf32>
    %35 = vector.shape_cast %32 : vector<8x8xf32> to vector<1x1x8x8xf32>
    tpu.vector_store %arg10[%c0_27, %c0_28, %c0_29, %c0_30], %35 {strides = array<i32>} : memref<1x1x8x8xf32, #tpu.memory_space<vmem>>, vector<1x1x8x8xf32>,
    %c0_31 = arith.constant 0 : index
    %c0_32 = arith.constant 0 : index
    %36 = vector.load %arg5[%c0_31, %c0_32] : memref<8x16xf32, #tpu.memory_space<vmem>>, vector<8x16xf32>
    %37 = arith.mulf %3, %5 : vector<16x16xf32>
    %c0_33 = arith.constant 0 : index
    %c0_34 = arith.constant 0 : index
    %38 = vector.load %arg6[%c0_33, %c0_34] : memref<16x8xf32, #tpu.memory_space<vmem>>, vector<16x8xf32>
    %cst_35 = arith.constant dense<0.000000e+00> : vector<16x8xf32>
    %39 = tpu.matmul %37, %38, %cst_35 {dimension_numbers = #tpu.dot_dimension_numbers<[1], [0], [0], [1], [0, 0, 1, 1], [], []>} : vector<16x16xf32>, vector<16x8xf32>, vector<16x8xf32> -> vector<16x8xf32>
    %cst_36 = arith.constant dense<0.000000e+00> : vector<8x8xf32>
    %40 = tpu.matmul %36, %39, %cst_36 {dimension_numbers = #tpu.dot_dimension_numbers<[1], [0], [0], [1], [0, 0, 1, 1], [], []>} : vector<8x16xf32>, vector<16x8xf32>, vector<8x8xf32> -> vector<8x8xf32>
    %41 = arith.mulf %40, %26 : vector<8x8xf32>
    %c0_37 = arith.constant 0 : index
    %c0_38 = arith.constant 0 : index
    %c0_39 = arith.constant 0 : index
    %c0_40 = arith.constant 0 : index
    %42 = vector.load %arg11[%c0_37, %c0_38, %c0_39, %c0_40] : memref<1x1x8x8xf32, #tpu.memory_space<vmem>>, vector<1x1x8x8xf32>
    %43 = vector.shape_cast %42 : vector<1x1x8x8xf32> to vector<8x8xf32>
    %44 = vector.shape_cast %41 : vector<8x8xf32> to vector<1x1x8x8xf32>
    tpu.vector_store %arg11[%c0_37, %c0_38, %c0_39, %c0_40], %44 {strides = array<i32>} : memref<1x1x8x8xf32, #tpu.memory_space<vmem>>, vector<1x1x8x8xf32>,
    return
  }
  func.func @transform_0(%arg0: i32, %arg1: i32) -> (i32, i32, i32, i32) {
    %c0_i32 = arith.constant 0 : i32
    %c0_i32_0 = arith.constant 0 : i32
    %c0_i32_1 = arith.constant 0 : i32
    return %arg0, %arg1, %c0_i32, %c0_i32_0 : i32, i32, i32, i32
  }
  func.func @transform_1(%arg0: i32, %arg1: i32) -> (i32, i32, i32, i32) {
    %c0_i32 = arith.constant 0 : i32
    %c0_i32_0 = arith.constant 0 : i32
    %c0_i32_1 = arith.constant 0 : i32
    return %arg0, %arg1, %c0_i32, %c0_i32_0 : i32, i32, i32, i32
  }
  func.func @transform_2(%arg0: i32, %arg1: i32) -> (i32, i32, i32, i32) {
    %c0_i32 = arith.constant 0 : i32
    %c0_i32_0 = arith.constant 0 : i32
    %c0_i32_1 = arith.constant 0 : i32
    %c0_i32_2 = arith.constant 0 : i32
    return %arg0, %c0_i32, %c0_i32_0, %c0_i32_1 : i32, i32, i32, i32
  }
  func.func @transform_3(%arg0: i32, %arg1: i32) -> (i32, i32) {
    %c0_i32 = arith.constant 0 : i32
    %c0_i32_0 = arith.constant 0 : i32
    %c0_i32_1 = arith.constant 0 : i32
    return %c0_i32, %c0_i32_0 : i32, i32
  }
  func.func @transform_4(%arg0: i32, %arg1: i32) -> (i32, i32) {
    %c0_i32 = arith.constant 0 : i32
    %c0_i32_0 = arith.constant 0 : i32
    %c0_i32_1 = arith.constant 0 : i32
    return %c0_i32, %c0_i32_0 : i32, i32
  }
  func.func @transform_5(%arg0: i32, %arg1: i32) -> (i32, i32) {
    %c0_i32 = arith.constant 0 : i32
    %c0_i32_0 = arith.constant 0 : i32
    %c0_i32_1 = arith.constant 0 : i32
    return %c0_i32, %c0_i32_0 : i32, i32
  }
  func.func @transform_6(%arg0: i32, %arg1: i32) -> (i32, i32) {
    %c0_i32 = arith.constant 0 : i32
    %c0_i32_0 = arith.constant 0 : i32
    %c0_i32_1 = arith.constant 0 : i32
    return %c0_i32, %c0_i32_0 : i32, i32
  }
  func.func @transform_7(%arg0: i32, %arg1: i32) -> (i32, i32, i32) {
    %c0_i32 = arith.constant 0 : i32
    %c0_i32_0 = arith.constant 0 : i32
    %c0_i32_1 = arith.constant 0 : i32
    return %arg0, %c0_i32, %c0_i32_0 : i32, i32, i32
  }
  func.func @transform_8(%arg0: i32, %arg1: i32) -> (i32, i32, i32, i32) {
    %c0_i32 = arith.constant 0 : i32
    %c0_i32_0 = arith.constant 0 : i32
    %c0_i32_1 = arith.constant 0 : i32
    return %arg0, %arg1, %c0_i32, %c0_i32_0 : i32, i32, i32, i32
  }
  func.func @transform_9(%arg0: i32, %arg1: i32) -> (i32, i32, i32, i32) {
    %c0_i32 = arith.constant 0 : i32
    %c0_i32_0 = arith.constant 0 : i32
    %c0_i32_1 = arith.constant 0 : i32
    return %arg0, %arg1, %c0_i32, %c0_i32_0 : i32, i32, i32, i32
  }
  func.func @transform_10(%arg0: i32, %arg1: i32) -> (i32, i32, i32, i32) {
    %c0_i32 = arith.constant 0 : i32
    %c0_i32_0 = arith.constant 0 : i32
    %c0_i32_1 = arith.constant 0 : i32
    %c0_i32_2 = arith.constant 0 : i32
    return %arg0, %c0_i32, %c0_i32_0, %c0_i32_1 : i32, i32, i32, i32
  }
}

module attributes {stable_mosaic.version = 11 : i64} {
  func.func @_tail_kernel(%arg0: i32, %arg1: memref<1x4x8x8xf32, #tpu.memory_space<vmem>>, %arg2: memref<1x4x8x8xf32, #tpu.memory_space<vmem>>, %arg3: memref<1x1x8x8xf32, #tpu.memory_space<vmem>>, %arg4: memref<2x8x8xf32, #tpu.memory_space<vmem>>, %arg5: memref<2x8x8xf32, #tpu.memory_space<vmem>>, %arg6: memref<2x8x8xf32, #tpu.memory_space<vmem>>, %arg7: memref<2x8x8xf32, #tpu.memory_space<vmem>>, %arg8: memref<1x1x1xf32, #tpu.memory_space<vmem>>) attributes {dimension_semantics = [#tpu.dimension_semantics<parallel>], iteration_bounds = array<i64: 2>, scalar_prefetch = 0 : i64, scratch_operands = 0 : i64, tpu.core_type = #tpu.core_type<tc>, window_params = [{transform_indices = @transform_0, window_bounds = array<i64: 1, 4, 8, 8>}, {transform_indices = @transform_1, window_bounds = array<i64: 1, 4, 8, 8>}, {transform_indices = @transform_2, window_bounds = array<i64: 1, 1, 8, 8>}, {pipeline_mode = #tpu.pipeline_mode<synchronous>, transform_indices = @transform_3, window_bounds = array<i64: 2, 8, 8>}, {pipeline_mode = #tpu.pipeline_mode<synchronous>, transform_indices = @transform_4, window_bounds = array<i64: 2, 8, 8>}, {pipeline_mode = #tpu.pipeline_mode<synchronous>, transform_indices = @transform_5, window_bounds = array<i64: 2, 8, 8>}, {pipeline_mode = #tpu.pipeline_mode<synchronous>, transform_indices = @transform_6, window_bounds = array<i64: 2, 8, 8>}, {transform_indices = @transform_7, window_bounds = array<i64: 1, 1, 1>}]} {
    %c0 = arith.constant 0 : index
    %c0_0 = arith.constant 0 : index
    %c0_1 = arith.constant 0 : index
    %c0_2 = arith.constant 0 : index
    %0 = vector.load %arg1[%c0, %c0_0, %c0_1, %c0_2] : memref<1x4x8x8xf32, #tpu.memory_space<vmem>>, vector<1x1x8x8xf32>
    %1 = vector.shape_cast %0 : vector<1x1x8x8xf32> to vector<8x8xf32>
    %c0_3 = arith.constant 0 : index
    %c1 = arith.constant 1 : index
    %c0_4 = arith.constant 0 : index
    %c0_5 = arith.constant 0 : index
    %2 = vector.load %arg1[%c0_3, %c1, %c0_4, %c0_5] : memref<1x4x8x8xf32, #tpu.memory_space<vmem>>, vector<1x1x8x8xf32>
    %3 = vector.shape_cast %2 : vector<1x1x8x8xf32> to vector<8x8xf32>
    %c0_6 = arith.constant 0 : index
    %c2 = arith.constant 2 : index
    %c0_7 = arith.constant 0 : index
    %c0_8 = arith.constant 0 : index
    %4 = vector.load %arg1[%c0_6, %c2, %c0_7, %c0_8] : memref<1x4x8x8xf32, #tpu.memory_space<vmem>>, vector<1x1x8x8xf32>
    %5 = vector.shape_cast %4 : vector<1x1x8x8xf32> to vector<8x8xf32>
    %c0_9 = arith.constant 0 : index
    %c3 = arith.constant 3 : index
    %c0_10 = arith.constant 0 : index
    %c0_11 = arith.constant 0 : index
    %6 = vector.load %arg1[%c0_9, %c3, %c0_10, %c0_11] : memref<1x4x8x8xf32, #tpu.memory_space<vmem>>, vector<1x1x8x8xf32>
    %7 = vector.shape_cast %6 : vector<1x1x8x8xf32> to vector<8x8xf32>
    %c0_12 = arith.constant 0 : index
    %c0_13 = arith.constant 0 : index
    %c0_14 = arith.constant 0 : index
    %c0_15 = arith.constant 0 : index
    %8 = vector.load %arg2[%c0_12, %c0_13, %c0_14, %c0_15] : memref<1x4x8x8xf32, #tpu.memory_space<vmem>>, vector<1x1x8x8xf32>
    %9 = vector.shape_cast %8 : vector<1x1x8x8xf32> to vector<8x8xf32>
    %c0_16 = arith.constant 0 : index
    %c1_17 = arith.constant 1 : index
    %c0_18 = arith.constant 0 : index
    %c0_19 = arith.constant 0 : index
    %10 = vector.load %arg2[%c0_16, %c1_17, %c0_18, %c0_19] : memref<1x4x8x8xf32, #tpu.memory_space<vmem>>, vector<1x1x8x8xf32>
    %11 = vector.shape_cast %10 : vector<1x1x8x8xf32> to vector<8x8xf32>
    %c0_20 = arith.constant 0 : index
    %c2_21 = arith.constant 2 : index
    %c0_22 = arith.constant 0 : index
    %c0_23 = arith.constant 0 : index
    %12 = vector.load %arg2[%c0_20, %c2_21, %c0_22, %c0_23] : memref<1x4x8x8xf32, #tpu.memory_space<vmem>>, vector<1x1x8x8xf32>
    %13 = vector.shape_cast %12 : vector<1x1x8x8xf32> to vector<8x8xf32>
    %c0_24 = arith.constant 0 : index
    %c3_25 = arith.constant 3 : index
    %c0_26 = arith.constant 0 : index
    %c0_27 = arith.constant 0 : index
    %14 = vector.load %arg2[%c0_24, %c3_25, %c0_26, %c0_27] : memref<1x4x8x8xf32, #tpu.memory_space<vmem>>, vector<1x1x8x8xf32>
    %15 = vector.shape_cast %14 : vector<1x1x8x8xf32> to vector<8x8xf32>
    %c0_28 = arith.constant 0 : index
    %c0_29 = arith.constant 0 : index
    %c0_30 = arith.constant 0 : index
    %c0_31 = arith.constant 0 : index
    %16 = vector.load %arg3[%c0_28, %c0_29, %c0_30, %c0_31] : memref<1x1x8x8xf32, #tpu.memory_space<vmem>>, vector<1x1x8x8xf32>
    %17 = vector.shape_cast %16 : vector<1x1x8x8xf32> to vector<8x8xf32>
    %cst = arith.constant 0.000000e+00 : f32
    %18 = vector.broadcast %cst : f32 to vector<1x1xf32>
    %cst_32 = arith.constant 0.000000e+00 : f32
    %19 = vector.broadcast %cst_32 : f32 to vector<8x8xf32>
    %20 = arith.subf %9, %1 : vector<8x8xf32>
    %21 = math.absf %20 : vector<8x8xf32>
    %22 = arith.mulf %21, %17 : vector<8x8xf32>
    %cst_33 = arith.constant 9.99999996E-12 : f32
    %23 = vector.broadcast %cst_33 : f32 to vector<8x8xf32>
    %24 = arith.addf %9, %23 : vector<8x8xf32>
    %25 = arith.divf %22, %24 : vector<8x8xf32>
    %26 = arith.mulf %25, %17 : vector<8x8xf32>
    %27 = arith.addf %19, %26 : vector<8x8xf32>
    %28 = arith.subf %11, %3 : vector<8x8xf32>
    %29 = math.absf %28 : vector<8x8xf32>
    %30 = arith.mulf %29, %17 : vector<8x8xf32>
    %cst_34 = arith.constant 9.99999996E-12 : f32
    %31 = vector.broadcast %cst_34 : f32 to vector<8x8xf32>
    %32 = arith.addf %11, %31 : vector<8x8xf32>
    %33 = arith.divf %30, %32 : vector<8x8xf32>
    %34 = arith.mulf %33, %17 : vector<8x8xf32>
    %35 = arith.addf %27, %34 : vector<8x8xf32>
    %36 = arith.subf %13, %5 : vector<8x8xf32>
    %37 = math.absf %36 : vector<8x8xf32>
    %38 = arith.mulf %37, %17 : vector<8x8xf32>
    %cst_35 = arith.constant 9.99999996E-12 : f32
    %39 = vector.broadcast %cst_35 : f32 to vector<8x8xf32>
    %40 = arith.addf %13, %39 : vector<8x8xf32>
    %41 = arith.divf %38, %40 : vector<8x8xf32>
    %42 = arith.mulf %41, %17 : vector<8x8xf32>
    %43 = arith.addf %35, %42 : vector<8x8xf32>
    %44 = arith.subf %15, %7 : vector<8x8xf32>
    %45 = math.absf %44 : vector<8x8xf32>
    %46 = arith.mulf %45, %17 : vector<8x8xf32>
    %cst_36 = arith.constant 9.99999996E-12 : f32
    %47 = vector.broadcast %cst_36 : f32 to vector<8x8xf32>
    %48 = arith.addf %15, %47 : vector<8x8xf32>
    %49 = arith.divf %46, %48 : vector<8x8xf32>
    %50 = arith.mulf %49, %17 : vector<8x8xf32>
    %51 = arith.addf %43, %50 : vector<8x8xf32>
    %cst_37 = arith.constant dense<0.000000e+00> : vector<8xf32>
    %52 = vector.multi_reduction <add>, %51, %cst_37 [0] : vector<8x8xf32> to vector<8xf32>
    %53 = vector.shape_cast %52 : vector<8xf32> to vector<1x8xf32>
    %cst_38 = arith.constant dense<0.000000e+00> : vector<1xf32>
    %54 = vector.multi_reduction <add>, %53, %cst_38 [1] : vector<1x8xf32> to vector<1xf32>
    %55 = vector.shape_cast %54 : vector<1xf32> to vector<1x1xf32>
    %cst_39 = arith.constant dense<0.000000e+00> : vector<8xf32>
    %56 = vector.multi_reduction <add>, %17, %cst_39 [0] : vector<8x8xf32> to vector<8xf32>
    %57 = vector.shape_cast %56 : vector<8xf32> to vector<1x8xf32>
    %cst_40 = arith.constant dense<0.000000e+00> : vector<1xf32>
    %58 = vector.multi_reduction <add>, %57, %cst_40 [1] : vector<1x8xf32> to vector<1xf32>
    %59 = vector.shape_cast %58 : vector<1xf32> to vector<1x1xf32>
    %cst_41 = arith.constant 9.99999993E-9 : f32
    %60 = vector.broadcast %cst_41 : f32 to vector<1x1xf32>
    %61 = arith.addf %59, %60 : vector<1x1xf32>
    %62 = arith.divf %55, %61 : vector<1x1xf32>
    %63 = arith.addf %18, %62 : vector<1x1xf32>
    %c0_42 = arith.constant 0 : index
    %c0_43 = arith.constant 0 : index
    %c0_44 = arith.constant 0 : index
    %64 = vector.load %arg4[%c0_42, %c0_43, %c0_44] : memref<2x8x8xf32, #tpu.memory_space<vmem>>, vector<1x8x8xf32>
    %65 = vector.shape_cast %64 : vector<1x8x8xf32> to vector<8x8xf32>
    %c0_45 = arith.constant 0 : index
    %c0_46 = arith.constant 0 : index
    %c0_47 = arith.constant 0 : index
    %66 = vector.load %arg5[%c0_45, %c0_46, %c0_47] : memref<2x8x8xf32, #tpu.memory_space<vmem>>, vector<1x8x8xf32>
    %67 = vector.shape_cast %66 : vector<1x8x8xf32> to vector<8x8xf32>
    %c0_48 = arith.constant 0 : index
    %c0_49 = arith.constant 0 : index
    %c0_50 = arith.constant 0 : index
    %68 = vector.load %arg6[%c0_48, %c0_49, %c0_50] : memref<2x8x8xf32, #tpu.memory_space<vmem>>, vector<1x8x8xf32>
    %69 = vector.shape_cast %68 : vector<1x8x8xf32> to vector<8x8xf32>
    %c0_51 = arith.constant 0 : index
    %c0_52 = arith.constant 0 : index
    %c0_53 = arith.constant 0 : index
    %70 = vector.load %arg7[%c0_51, %c0_52, %c0_53] : memref<2x8x8xf32, #tpu.memory_space<vmem>>, vector<1x8x8xf32>
    %71 = vector.shape_cast %70 : vector<1x8x8xf32> to vector<8x8xf32>
    %cst_54 = arith.constant dense<0.000000e+00> : vector<8x8xf32>
    %72 = tpu.matmul %17, %71, %cst_54 {dimension_numbers = #tpu.dot_dimension_numbers<[1], [0], [0], [1], [0, 0, 1, 1], [], []>} : vector<8x8xf32>, vector<8x8xf32>, vector<8x8xf32> -> vector<8x8xf32>
    %cst_55 = arith.constant dense<0.000000e+00> : vector<8x8xf32>
    %73 = tpu.matmul %69, %72, %cst_55 {dimension_numbers = #tpu.dot_dimension_numbers<[1], [0], [0], [1], [0, 0, 1, 1], [], []>} : vector<8x8xf32>, vector<8x8xf32>, vector<8x8xf32> -> vector<8x8xf32>
    %cst_56 = arith.constant 0.000000e+00 : f32
    %74 = vector.broadcast %cst_56 : f32 to vector<8x8xf32>
    %75 = arith.cmpf oeq, %73, %74 : vector<8x8xf32>
    %cst_57 = arith.constant 1.000000e+00 : f32
    %76 = vector.broadcast %cst_57 : f32 to vector<8x8xf32>
    %77 = arith.select %75, %76, %73 : vector<8x8xi1>, vector<8x8xf32>
    %cst_58 = arith.constant 9.000000e+00 : f32
    %78 = vector.broadcast %cst_58 : f32 to vector<8x8xf32>
    %79 = arith.divf %78, %77 : vector<8x8xf32>
    %80 = arith.mulf %1, %17 : vector<8x8xf32>
    %cst_59 = arith.constant dense<0.000000e+00> : vector<8x8xf32>
    %81 = tpu.matmul %80, %67, %cst_59 {dimension_numbers = #tpu.dot_dimension_numbers<[1], [0], [0], [1], [0, 0, 1, 1], [], []>} : vector<8x8xf32>, vector<8x8xf32>, vector<8x8xf32> -> vector<8x8xf32>
    %cst_60 = arith.constant dense<0.000000e+00> : vector<8x8xf32>
    %82 = tpu.matmul %65, %81, %cst_60 {dimension_numbers = #tpu.dot_dimension_numbers<[1], [0], [0], [1], [0, 0, 1, 1], [], []>} : vector<8x8xf32>, vector<8x8xf32>, vector<8x8xf32> -> vector<8x8xf32>
    %83 = arith.mulf %82, %79 : vector<8x8xf32>
    %84 = arith.mulf %3, %17 : vector<8x8xf32>
    %cst_61 = arith.constant dense<0.000000e+00> : vector<8x8xf32>
    %85 = tpu.matmul %84, %67, %cst_61 {dimension_numbers = #tpu.dot_dimension_numbers<[1], [0], [0], [1], [0, 0, 1, 1], [], []>} : vector<8x8xf32>, vector<8x8xf32>, vector<8x8xf32> -> vector<8x8xf32>
    %cst_62 = arith.constant dense<0.000000e+00> : vector<8x8xf32>
    %86 = tpu.matmul %65, %85, %cst_62 {dimension_numbers = #tpu.dot_dimension_numbers<[1], [0], [0], [1], [0, 0, 1, 1], [], []>} : vector<8x8xf32>, vector<8x8xf32>, vector<8x8xf32> -> vector<8x8xf32>
    %87 = arith.mulf %86, %79 : vector<8x8xf32>
    %88 = arith.mulf %5, %17 : vector<8x8xf32>
    %cst_63 = arith.constant dense<0.000000e+00> : vector<8x8xf32>
    %89 = tpu.matmul %88, %67, %cst_63 {dimension_numbers = #tpu.dot_dimension_numbers<[1], [0], [0], [1], [0, 0, 1, 1], [], []>} : vector<8x8xf32>, vector<8x8xf32>, vector<8x8xf32> -> vector<8x8xf32>
    %cst_64 = arith.constant dense<0.000000e+00> : vector<8x8xf32>
    %90 = tpu.matmul %65, %89, %cst_64 {dimension_numbers = #tpu.dot_dimension_numbers<[1], [0], [0], [1], [0, 0, 1, 1], [], []>} : vector<8x8xf32>, vector<8x8xf32>, vector<8x8xf32> -> vector<8x8xf32>
    %91 = arith.mulf %90, %79 : vector<8x8xf32>
    %92 = arith.mulf %7, %17 : vector<8x8xf32>
    %cst_65 = arith.constant dense<0.000000e+00> : vector<8x8xf32>
    %93 = tpu.matmul %92, %67, %cst_65 {dimension_numbers = #tpu.dot_dimension_numbers<[1], [0], [0], [1], [0, 0, 1, 1], [], []>} : vector<8x8xf32>, vector<8x8xf32>, vector<8x8xf32> -> vector<8x8xf32>
    %cst_66 = arith.constant dense<0.000000e+00> : vector<8x8xf32>
    %94 = tpu.matmul %65, %93, %cst_66 {dimension_numbers = #tpu.dot_dimension_numbers<[1], [0], [0], [1], [0, 0, 1, 1], [], []>} : vector<8x8xf32>, vector<8x8xf32>, vector<8x8xf32> -> vector<8x8xf32>
    %95 = arith.mulf %94, %79 : vector<8x8xf32>
    %96 = arith.mulf %9, %17 : vector<8x8xf32>
    %cst_67 = arith.constant dense<0.000000e+00> : vector<8x8xf32>
    %97 = tpu.matmul %96, %67, %cst_67 {dimension_numbers = #tpu.dot_dimension_numbers<[1], [0], [0], [1], [0, 0, 1, 1], [], []>} : vector<8x8xf32>, vector<8x8xf32>, vector<8x8xf32> -> vector<8x8xf32>
    %cst_68 = arith.constant dense<0.000000e+00> : vector<8x8xf32>
    %98 = tpu.matmul %65, %97, %cst_68 {dimension_numbers = #tpu.dot_dimension_numbers<[1], [0], [0], [1], [0, 0, 1, 1], [], []>} : vector<8x8xf32>, vector<8x8xf32>, vector<8x8xf32> -> vector<8x8xf32>
    %99 = arith.mulf %98, %79 : vector<8x8xf32>
    %100 = arith.mulf %11, %17 : vector<8x8xf32>
    %cst_69 = arith.constant dense<0.000000e+00> : vector<8x8xf32>
    %101 = tpu.matmul %100, %67, %cst_69 {dimension_numbers = #tpu.dot_dimension_numbers<[1], [0], [0], [1], [0, 0, 1, 1], [], []>} : vector<8x8xf32>, vector<8x8xf32>, vector<8x8xf32> -> vector<8x8xf32>
    %cst_70 = arith.constant dense<0.000000e+00> : vector<8x8xf32>
    %102 = tpu.matmul %65, %101, %cst_70 {dimension_numbers = #tpu.dot_dimension_numbers<[1], [0], [0], [1], [0, 0, 1, 1], [], []>} : vector<8x8xf32>, vector<8x8xf32>, vector<8x8xf32> -> vector<8x8xf32>
    %103 = arith.mulf %102, %79 : vector<8x8xf32>
    %104 = arith.mulf %13, %17 : vector<8x8xf32>
    %cst_71 = arith.constant dense<0.000000e+00> : vector<8x8xf32>
    %105 = tpu.matmul %104, %67, %cst_71 {dimension_numbers = #tpu.dot_dimension_numbers<[1], [0], [0], [1], [0, 0, 1, 1], [], []>} : vector<8x8xf32>, vector<8x8xf32>, vector<8x8xf32> -> vector<8x8xf32>
    %cst_72 = arith.constant dense<0.000000e+00> : vector<8x8xf32>
    %106 = tpu.matmul %65, %105, %cst_72 {dimension_numbers = #tpu.dot_dimension_numbers<[1], [0], [0], [1], [0, 0, 1, 1], [], []>} : vector<8x8xf32>, vector<8x8xf32>, vector<8x8xf32> -> vector<8x8xf32>
    %107 = arith.mulf %106, %79 : vector<8x8xf32>
    %108 = arith.mulf %15, %17 : vector<8x8xf32>
    %cst_73 = arith.constant dense<0.000000e+00> : vector<8x8xf32>
    %109 = tpu.matmul %108, %67, %cst_73 {dimension_numbers = #tpu.dot_dimension_numbers<[1], [0], [0], [1], [0, 0, 1, 1], [], []>} : vector<8x8xf32>, vector<8x8xf32>, vector<8x8xf32> -> vector<8x8xf32>
    %cst_74 = arith.constant dense<0.000000e+00> : vector<8x8xf32>
    %110 = tpu.matmul %65, %109, %cst_74 {dimension_numbers = #tpu.dot_dimension_numbers<[1], [0], [0], [1], [0, 0, 1, 1], [], []>} : vector<8x8xf32>, vector<8x8xf32>, vector<8x8xf32> -> vector<8x8xf32>
    %111 = arith.mulf %110, %79 : vector<8x8xf32>
    %cst_75 = arith.constant 0.000000e+00 : f32
    %cst_76 = arith.constant 1.000000e+00 : f32
    %112 = vector.broadcast %cst_75 : f32 to vector<8x8xf32>
    %113 = vector.broadcast %cst_76 : f32 to vector<8x8xf32>
    %114 = arith.select %75, %112, %113 : vector<8x8xi1>, vector<8x8xf32>
    %cst_77 = arith.constant 0.000000e+00 : f32
    %115 = vector.broadcast %cst_77 : f32 to vector<8x8xf32>
    %116 = arith.subf %99, %83 : vector<8x8xf32>
    %117 = math.absf %116 : vector<8x8xf32>
    %118 = arith.mulf %117, %114 : vector<8x8xf32>
    %cst_78 = arith.constant 9.99999996E-12 : f32
    %119 = vector.broadcast %cst_78 : f32 to vector<8x8xf32>
    %120 = arith.addf %99, %119 : vector<8x8xf32>
    %121 = arith.divf %118, %120 : vector<8x8xf32>
    %122 = arith.mulf %121, %114 : vector<8x8xf32>
    %123 = arith.addf %115, %122 : vector<8x8xf32>
    %124 = arith.subf %103, %87 : vector<8x8xf32>
    %125 = math.absf %124 : vector<8x8xf32>
    %126 = arith.mulf %125, %114 : vector<8x8xf32>
    %cst_79 = arith.constant 9.99999996E-12 : f32
    %127 = vector.broadcast %cst_79 : f32 to vector<8x8xf32>
    %128 = arith.addf %103, %127 : vector<8x8xf32>
    %129 = arith.divf %126, %128 : vector<8x8xf32>
    %130 = arith.mulf %129, %114 : vector<8x8xf32>
    %131 = arith.addf %123, %130 : vector<8x8xf32>
    %132 = arith.subf %107, %91 : vector<8x8xf32>
    %133 = math.absf %132 : vector<8x8xf32>
    %134 = arith.mulf %133, %114 : vector<8x8xf32>
    %cst_80 = arith.constant 9.99999996E-12 : f32
    %135 = vector.broadcast %cst_80 : f32 to vector<8x8xf32>
    %136 = arith.addf %107, %135 : vector<8x8xf32>
    %137 = arith.divf %134, %136 : vector<8x8xf32>
    %138 = arith.mulf %137, %114 : vector<8x8xf32>
    %139 = arith.addf %131, %138 : vector<8x8xf32>
    %140 = arith.subf %111, %95 : vector<8x8xf32>
    %141 = math.absf %140 : vector<8x8xf32>
    %142 = arith.mulf %141, %114 : vector<8x8xf32>
    %cst_81 = arith.constant 9.99999996E-12 : f32
    %143 = vector.broadcast %cst_81 : f32 to vector<8x8xf32>
    %144 = arith.addf %111, %143 : vector<8x8xf32>
    %145 = arith.divf %142, %144 : vector<8x8xf32>
    %146 = arith.mulf %145, %114 : vector<8x8xf32>
    %147 = arith.addf %139, %146 : vector<8x8xf32>
    %cst_82 = arith.constant dense<0.000000e+00> : vector<8xf32>
    %148 = vector.multi_reduction <add>, %147, %cst_82 [0] : vector<8x8xf32> to vector<8xf32>
    %149 = vector.shape_cast %148 : vector<8xf32> to vector<1x8xf32>
    %cst_83 = arith.constant dense<0.000000e+00> : vector<1xf32>
    %150 = vector.multi_reduction <add>, %149, %cst_83 [1] : vector<1x8xf32> to vector<1xf32>
    %151 = vector.shape_cast %150 : vector<1xf32> to vector<1x1xf32>
    %cst_84 = arith.constant dense<0.000000e+00> : vector<8xf32>
    %152 = vector.multi_reduction <add>, %114, %cst_84 [0] : vector<8x8xf32> to vector<8xf32>
    %153 = vector.shape_cast %152 : vector<8xf32> to vector<1x8xf32>
    %cst_85 = arith.constant dense<0.000000e+00> : vector<1xf32>
    %154 = vector.multi_reduction <add>, %153, %cst_85 [1] : vector<1x8xf32> to vector<1xf32>
    %155 = vector.shape_cast %154 : vector<1xf32> to vector<1x1xf32>
    %cst_86 = arith.constant 9.99999993E-9 : f32
    %156 = vector.broadcast %cst_86 : f32 to vector<1x1xf32>
    %157 = arith.addf %155, %156 : vector<1x1xf32>
    %158 = arith.divf %151, %157 : vector<1x1xf32>
    %159 = arith.addf %63, %158 : vector<1x1xf32>
    %c1_87 = arith.constant 1 : index
    %c0_88 = arith.constant 0 : index
    %c0_89 = arith.constant 0 : index
    %160 = vector.load %arg4[%c1_87, %c0_88, %c0_89] : memref<2x8x8xf32, #tpu.memory_space<vmem>>, vector<1x8x8xf32>
    %161 = vector.shape_cast %160 : vector<1x8x8xf32> to vector<8x8xf32>
    %c1_90 = arith.constant 1 : index
    %c0_91 = arith.constant 0 : index
    %c0_92 = arith.constant 0 : index
    %162 = vector.load %arg5[%c1_90, %c0_91, %c0_92] : memref<2x8x8xf32, #tpu.memory_space<vmem>>, vector<1x8x8xf32>
    %163 = vector.shape_cast %162 : vector<1x8x8xf32> to vector<8x8xf32>
    %c1_93 = arith.constant 1 : index
    %c0_94 = arith.constant 0 : index
    %c0_95 = arith.constant 0 : index
    %164 = vector.load %arg6[%c1_93, %c0_94, %c0_95] : memref<2x8x8xf32, #tpu.memory_space<vmem>>, vector<1x8x8xf32>
    %165 = vector.shape_cast %164 : vector<1x8x8xf32> to vector<8x8xf32>
    %c1_96 = arith.constant 1 : index
    %c0_97 = arith.constant 0 : index
    %c0_98 = arith.constant 0 : index
    %166 = vector.load %arg7[%c1_96, %c0_97, %c0_98] : memref<2x8x8xf32, #tpu.memory_space<vmem>>, vector<1x8x8xf32>
    %167 = vector.shape_cast %166 : vector<1x8x8xf32> to vector<8x8xf32>
    %cst_99 = arith.constant dense<0.000000e+00> : vector<8x8xf32>
    %168 = tpu.matmul %114, %167, %cst_99 {dimension_numbers = #tpu.dot_dimension_numbers<[1], [0], [0], [1], [0, 0, 1, 1], [], []>} : vector<8x8xf32>, vector<8x8xf32>, vector<8x8xf32> -> vector<8x8xf32>
    %cst_100 = arith.constant dense<0.000000e+00> : vector<8x8xf32>
    %169 = tpu.matmul %165, %168, %cst_100 {dimension_numbers = #tpu.dot_dimension_numbers<[1], [0], [0], [1], [0, 0, 1, 1], [], []>} : vector<8x8xf32>, vector<8x8xf32>, vector<8x8xf32> -> vector<8x8xf32>
    %cst_101 = arith.constant 0.000000e+00 : f32
    %170 = vector.broadcast %cst_101 : f32 to vector<8x8xf32>
    %171 = arith.cmpf oeq, %169, %170 : vector<8x8xf32>
    %cst_102 = arith.constant 1.000000e+00 : f32
    %172 = vector.broadcast %cst_102 : f32 to vector<8x8xf32>
    %173 = arith.select %171, %172, %169 : vector<8x8xi1>, vector<8x8xf32>
    %cst_103 = arith.constant 9.000000e+00 : f32
    %174 = vector.broadcast %cst_103 : f32 to vector<8x8xf32>
    %175 = arith.divf %174, %173 : vector<8x8xf32>
    %176 = arith.mulf %83, %114 : vector<8x8xf32>
    %cst_104 = arith.constant dense<0.000000e+00> : vector<8x8xf32>
    %177 = tpu.matmul %176, %163, %cst_104 {dimension_numbers = #tpu.dot_dimension_numbers<[1], [0], [0], [1], [0, 0, 1, 1], [], []>} : vector<8x8xf32>, vector<8x8xf32>, vector<8x8xf32> -> vector<8x8xf32>
    %cst_105 = arith.constant dense<0.000000e+00> : vector<8x8xf32>
    %178 = tpu.matmul %161, %177, %cst_105 {dimension_numbers = #tpu.dot_dimension_numbers<[1], [0], [0], [1], [0, 0, 1, 1], [], []>} : vector<8x8xf32>, vector<8x8xf32>, vector<8x8xf32> -> vector<8x8xf32>
    %179 = arith.mulf %178, %175 : vector<8x8xf32>
    %180 = arith.mulf %87, %114 : vector<8x8xf32>
    %cst_106 = arith.constant dense<0.000000e+00> : vector<8x8xf32>
    %181 = tpu.matmul %180, %163, %cst_106 {dimension_numbers = #tpu.dot_dimension_numbers<[1], [0], [0], [1], [0, 0, 1, 1], [], []>} : vector<8x8xf32>, vector<8x8xf32>, vector<8x8xf32> -> vector<8x8xf32>
    %cst_107 = arith.constant dense<0.000000e+00> : vector<8x8xf32>
    %182 = tpu.matmul %161, %181, %cst_107 {dimension_numbers = #tpu.dot_dimension_numbers<[1], [0], [0], [1], [0, 0, 1, 1], [], []>} : vector<8x8xf32>, vector<8x8xf32>, vector<8x8xf32> -> vector<8x8xf32>
    %183 = arith.mulf %182, %175 : vector<8x8xf32>
    %184 = arith.mulf %91, %114 : vector<8x8xf32>
    %cst_108 = arith.constant dense<0.000000e+00> : vector<8x8xf32>
    %185 = tpu.matmul %184, %163, %cst_108 {dimension_numbers = #tpu.dot_dimension_numbers<[1], [0], [0], [1], [0, 0, 1, 1], [], []>} : vector<8x8xf32>, vector<8x8xf32>, vector<8x8xf32> -> vector<8x8xf32>
    %cst_109 = arith.constant dense<0.000000e+00> : vector<8x8xf32>
    %186 = tpu.matmul %161, %185, %cst_109 {dimension_numbers = #tpu.dot_dimension_numbers<[1], [0], [0], [1], [0, 0, 1, 1], [], []>} : vector<8x8xf32>, vector<8x8xf32>, vector<8x8xf32> -> vector<8x8xf32>
    %187 = arith.mulf %186, %175 : vector<8x8xf32>
    %188 = arith.mulf %95, %114 : vector<8x8xf32>
    %cst_110 = arith.constant dense<0.000000e+00> : vector<8x8xf32>
    %189 = tpu.matmul %188, %163, %cst_110 {dimension_numbers = #tpu.dot_dimension_numbers<[1], [0], [0], [1], [0, 0, 1, 1], [], []>} : vector<8x8xf32>, vector<8x8xf32>, vector<8x8xf32> -> vector<8x8xf32>
    %cst_111 = arith.constant dense<0.000000e+00> : vector<8x8xf32>
    %190 = tpu.matmul %161, %189, %cst_111 {dimension_numbers = #tpu.dot_dimension_numbers<[1], [0], [0], [1], [0, 0, 1, 1], [], []>} : vector<8x8xf32>, vector<8x8xf32>, vector<8x8xf32> -> vector<8x8xf32>
    %191 = arith.mulf %190, %175 : vector<8x8xf32>
    %192 = arith.mulf %99, %114 : vector<8x8xf32>
    %cst_112 = arith.constant dense<0.000000e+00> : vector<8x8xf32>
    %193 = tpu.matmul %192, %163, %cst_112 {dimension_numbers = #tpu.dot_dimension_numbers<[1], [0], [0], [1], [0, 0, 1, 1], [], []>} : vector<8x8xf32>, vector<8x8xf32>, vector<8x8xf32> -> vector<8x8xf32>
    %cst_113 = arith.constant dense<0.000000e+00> : vector<8x8xf32>
    %194 = tpu.matmul %161, %193, %cst_113 {dimension_numbers = #tpu.dot_dimension_numbers<[1], [0], [0], [1], [0, 0, 1, 1], [], []>} : vector<8x8xf32>, vector<8x8xf32>, vector<8x8xf32> -> vector<8x8xf32>
    %195 = arith.mulf %194, %175 : vector<8x8xf32>
    %196 = arith.mulf %103, %114 : vector<8x8xf32>
    %cst_114 = arith.constant dense<0.000000e+00> : vector<8x8xf32>
    %197 = tpu.matmul %196, %163, %cst_114 {dimension_numbers = #tpu.dot_dimension_numbers<[1], [0], [0], [1], [0, 0, 1, 1], [], []>} : vector<8x8xf32>, vector<8x8xf32>, vector<8x8xf32> -> vector<8x8xf32>
    %cst_115 = arith.constant dense<0.000000e+00> : vector<8x8xf32>
    %198 = tpu.matmul %161, %197, %cst_115 {dimension_numbers = #tpu.dot_dimension_numbers<[1], [0], [0], [1], [0, 0, 1, 1], [], []>} : vector<8x8xf32>, vector<8x8xf32>, vector<8x8xf32> -> vector<8x8xf32>
    %199 = arith.mulf %198, %175 : vector<8x8xf32>
    %200 = arith.mulf %107, %114 : vector<8x8xf32>
    %cst_116 = arith.constant dense<0.000000e+00> : vector<8x8xf32>
    %201 = tpu.matmul %200, %163, %cst_116 {dimension_numbers = #tpu.dot_dimension_numbers<[1], [0], [0], [1], [0, 0, 1, 1], [], []>} : vector<8x8xf32>, vector<8x8xf32>, vector<8x8xf32> -> vector<8x8xf32>
    %cst_117 = arith.constant dense<0.000000e+00> : vector<8x8xf32>
    %202 = tpu.matmul %161, %201, %cst_117 {dimension_numbers = #tpu.dot_dimension_numbers<[1], [0], [0], [1], [0, 0, 1, 1], [], []>} : vector<8x8xf32>, vector<8x8xf32>, vector<8x8xf32> -> vector<8x8xf32>
    %203 = arith.mulf %202, %175 : vector<8x8xf32>
    %204 = arith.mulf %111, %114 : vector<8x8xf32>
    %cst_118 = arith.constant dense<0.000000e+00> : vector<8x8xf32>
    %205 = tpu.matmul %204, %163, %cst_118 {dimension_numbers = #tpu.dot_dimension_numbers<[1], [0], [0], [1], [0, 0, 1, 1], [], []>} : vector<8x8xf32>, vector<8x8xf32>, vector<8x8xf32> -> vector<8x8xf32>
    %cst_119 = arith.constant dense<0.000000e+00> : vector<8x8xf32>
    %206 = tpu.matmul %161, %205, %cst_119 {dimension_numbers = #tpu.dot_dimension_numbers<[1], [0], [0], [1], [0, 0, 1, 1], [], []>} : vector<8x8xf32>, vector<8x8xf32>, vector<8x8xf32> -> vector<8x8xf32>
    %207 = arith.mulf %206, %175 : vector<8x8xf32>
    %cst_120 = arith.constant 0.000000e+00 : f32
    %cst_121 = arith.constant 1.000000e+00 : f32
    %208 = vector.broadcast %cst_120 : f32 to vector<8x8xf32>
    %209 = vector.broadcast %cst_121 : f32 to vector<8x8xf32>
    %210 = arith.select %171, %208, %209 : vector<8x8xi1>, vector<8x8xf32>
    %cst_122 = arith.constant 0.000000e+00 : f32
    %211 = vector.broadcast %cst_122 : f32 to vector<8x8xf32>
    %212 = arith.subf %195, %179 : vector<8x8xf32>
    %213 = math.absf %212 : vector<8x8xf32>
    %214 = arith.mulf %213, %210 : vector<8x8xf32>
    %cst_123 = arith.constant 9.99999996E-12 : f32
    %215 = vector.broadcast %cst_123 : f32 to vector<8x8xf32>
    %216 = arith.addf %195, %215 : vector<8x8xf32>
    %217 = arith.divf %214, %216 : vector<8x8xf32>
    %218 = arith.mulf %217, %210 : vector<8x8xf32>
    %219 = arith.addf %211, %218 : vector<8x8xf32>
    %220 = arith.subf %199, %183 : vector<8x8xf32>
    %221 = math.absf %220 : vector<8x8xf32>
    %222 = arith.mulf %221, %210 : vector<8x8xf32>
    %cst_124 = arith.constant 9.99999996E-12 : f32
    %223 = vector.broadcast %cst_124 : f32 to vector<8x8xf32>
    %224 = arith.addf %199, %223 : vector<8x8xf32>
    %225 = arith.divf %222, %224 : vector<8x8xf32>
    %226 = arith.mulf %225, %210 : vector<8x8xf32>
    %227 = arith.addf %219, %226 : vector<8x8xf32>
    %228 = arith.subf %203, %187 : vector<8x8xf32>
    %229 = math.absf %228 : vector<8x8xf32>
    %230 = arith.mulf %229, %210 : vector<8x8xf32>
    %cst_125 = arith.constant 9.99999996E-12 : f32
    %231 = vector.broadcast %cst_125 : f32 to vector<8x8xf32>
    %232 = arith.addf %203, %231 : vector<8x8xf32>
    %233 = arith.divf %230, %232 : vector<8x8xf32>
    %234 = arith.mulf %233, %210 : vector<8x8xf32>
    %235 = arith.addf %227, %234 : vector<8x8xf32>
    %236 = arith.subf %207, %191 : vector<8x8xf32>
    %237 = math.absf %236 : vector<8x8xf32>
    %238 = arith.mulf %237, %210 : vector<8x8xf32>
    %cst_126 = arith.constant 9.99999996E-12 : f32
    %239 = vector.broadcast %cst_126 : f32 to vector<8x8xf32>
    %240 = arith.addf %207, %239 : vector<8x8xf32>
    %241 = arith.divf %238, %240 : vector<8x8xf32>
    %242 = arith.mulf %241, %210 : vector<8x8xf32>
    %243 = arith.addf %235, %242 : vector<8x8xf32>
    %cst_127 = arith.constant dense<0.000000e+00> : vector<8xf32>
    %244 = vector.multi_reduction <add>, %243, %cst_127 [0] : vector<8x8xf32> to vector<8xf32>
    %245 = vector.shape_cast %244 : vector<8xf32> to vector<1x8xf32>
    %cst_128 = arith.constant dense<0.000000e+00> : vector<1xf32>
    %246 = vector.multi_reduction <add>, %245, %cst_128 [1] : vector<1x8xf32> to vector<1xf32>
    %247 = vector.shape_cast %246 : vector<1xf32> to vector<1x1xf32>
    %cst_129 = arith.constant dense<0.000000e+00> : vector<8xf32>
    %248 = vector.multi_reduction <add>, %210, %cst_129 [0] : vector<8x8xf32> to vector<8xf32>
    %249 = vector.shape_cast %248 : vector<8xf32> to vector<1x8xf32>
    %cst_130 = arith.constant dense<0.000000e+00> : vector<1xf32>
    %250 = vector.multi_reduction <add>, %249, %cst_130 [1] : vector<1x8xf32> to vector<1xf32>
    %251 = vector.shape_cast %250 : vector<1xf32> to vector<1x1xf32>
    %cst_131 = arith.constant 9.99999993E-9 : f32
    %252 = vector.broadcast %cst_131 : f32 to vector<1x1xf32>
    %253 = arith.addf %251, %252 : vector<1x1xf32>
    %254 = arith.divf %247, %253 : vector<1x1xf32>
    %255 = arith.addf %159, %254 : vector<1x1xf32>
    %256 = vector.shape_cast %255 : vector<1x1xf32> to vector<1x1x1xf32>
    %c0_132 = arith.constant 0 : index
    %c0_133 = arith.constant 0 : index
    %c0_134 = arith.constant 0 : index
    %257 = vector.load %arg8[%c0_132, %c0_133, %c0_134] : memref<1x1x1xf32, #tpu.memory_space<vmem>>, vector<1x1x1xf32>
    tpu.vector_store %arg8[%c0_132, %c0_133, %c0_134], %256 {strides = array<i32>} : memref<1x1x1xf32, #tpu.memory_space<vmem>>, vector<1x1x1xf32>,
    return
  }
  func.func @transform_0(%arg0: i32) -> (i32, i32, i32, i32) {
    %c0_i32 = arith.constant 0 : i32
    %c0_i32_0 = arith.constant 0 : i32
    %c0_i32_1 = arith.constant 0 : i32
    %c0_i32_2 = arith.constant 0 : i32
    return %arg0, %c0_i32, %c0_i32_0, %c0_i32_1 : i32, i32, i32, i32
  }
  func.func @transform_1(%arg0: i32) -> (i32, i32, i32, i32) {
    %c0_i32 = arith.constant 0 : i32
    %c0_i32_0 = arith.constant 0 : i32
    %c0_i32_1 = arith.constant 0 : i32
    %c0_i32_2 = arith.constant 0 : i32
    return %arg0, %c0_i32, %c0_i32_0, %c0_i32_1 : i32, i32, i32, i32
  }
  func.func @transform_2(%arg0: i32) -> (i32, i32, i32, i32) {
    %c0_i32 = arith.constant 0 : i32
    %c0_i32_0 = arith.constant 0 : i32
    %c0_i32_1 = arith.constant 0 : i32
    %c0_i32_2 = arith.constant 0 : i32
    return %arg0, %c0_i32, %c0_i32_0, %c0_i32_1 : i32, i32, i32, i32
  }
  func.func @transform_3(%arg0: i32) -> (i32, i32, i32) {
    %c0_i32 = arith.constant 0 : i32
    %c0_i32_0 = arith.constant 0 : i32
    %c0_i32_1 = arith.constant 0 : i32
    %c0_i32_2 = arith.constant 0 : i32
    return %c0_i32, %c0_i32_0, %c0_i32_1 : i32, i32, i32
  }
  func.func @transform_4(%arg0: i32) -> (i32, i32, i32) {
    %c0_i32 = arith.constant 0 : i32
    %c0_i32_0 = arith.constant 0 : i32
    %c0_i32_1 = arith.constant 0 : i32
    %c0_i32_2 = arith.constant 0 : i32
    return %c0_i32, %c0_i32_0, %c0_i32_1 : i32, i32, i32
  }
  func.func @transform_5(%arg0: i32) -> (i32, i32, i32) {
    %c0_i32 = arith.constant 0 : i32
    %c0_i32_0 = arith.constant 0 : i32
    %c0_i32_1 = arith.constant 0 : i32
    %c0_i32_2 = arith.constant 0 : i32
    return %c0_i32, %c0_i32_0, %c0_i32_1 : i32, i32, i32
  }
  func.func @transform_6(%arg0: i32) -> (i32, i32, i32) {
    %c0_i32 = arith.constant 0 : i32
    %c0_i32_0 = arith.constant 0 : i32
    %c0_i32_1 = arith.constant 0 : i32
    %c0_i32_2 = arith.constant 0 : i32
    return %c0_i32, %c0_i32_0, %c0_i32_1 : i32, i32, i32
  }
  func.func @transform_7(%arg0: i32) -> (i32, i32, i32) {
    %c0_i32 = arith.constant 0 : i32
    %c0_i32_0 = arith.constant 0 : i32
    %c0_i32_1 = arith.constant 0 : i32
    return %arg0, %c0_i32, %c0_i32_0 : i32, i32, i32
  }
}

</mosaic_0001>

<bundles_post_ra>
// kernel: multiscale_masked_loss.2
= control target key start
LH: loop header
LB: loop body
LE: loop exit
PB: predicated region body
PF: predicated region fallthrough
CT: control target
= control target key end

     0   :  { %s2942_s0 = inlined_call_operand.hbm [shape: f32[2,4,16,16], index: 0, kind: input, shape index: {}]   ;;  %s2943_s1 = inlined_call_operand.hbm [shape: f32[2,4,16,16], index: 1, kind: input, shape index: {}]   ;;  %s2944_s2 = inlined_call_operand.hbm [shape: f32[2,1,16,16], index: 2, kind: input, shape index: {}]   ;;  %s2945_s3 = inlined_call_operand.hbm [shape: f32[8,16], index: 3, kind: input, shape index: {}]   ;;  %s2946_s4 = inlined_call_operand.hbm [shape: f32[16,8], index: 4, kind: input, shape index: {}]   ;;  %s2947_s5 = inlined_call_operand.hbm [shape: f32[8,16], index: 5, kind: input, shape index: {}]   ;;  %s2948_s6 = inlined_call_operand.hbm [shape: f32[16,8], index: 6, kind: input, shape index: {}]   ;;  %s2949_s7 = inlined_call_operand.hbm [shape: f32[2,1,1], index: 7, kind: output, shape index: {0}]   ;;  %s2950_s8 = inlined_call_operand.hbm [shape: f32[2,4,8,8], index: 8, kind: output, shape index: {1}]   ;;  %s2951_s9 = inlined_call_operand.hbm [shape: f32[2,4,8,8], index: 9, kind: output, shape index: {2}]   ;;  %s2952_s10 = inlined_call_operand.hbm [shape: f32[2,1,8,8], index: 10, kind: output, shape index: {3}]  }
   0x1   :  { %2989 = sst [smem:[#allocation45_spill]] %s2942_s0 }
   0x2   :  { %2990 = sst [smem:[#allocation46_spill]] %s2943_s1 }
   0x3   :  { %2991 = sst [smem:[#allocation47_spill]] %s2945_s3 }
   0x4   :  { %2992 = sst [smem:[#allocation48_spill]] %s2947_s5 }
   0x5   :  { %2993 = sst [smem:[#allocation49_spill]] %s2949_s7 }
   0x6   :  { %2994 = sst [smem:[#allocation50_spill]] %s2950_s8 }
   0x7   :  { %2995 = sst [smem:[#allocation51_spill]] %s2951_s9 }
   0x8   :  { %2996 = sst [smem:[#allocation52_spill]] %s2952_s10 }
   0x9   :  { %16 = vsyncpa [#allocation6], 0 }
   0xa   :  { %18 = vsyncpa [#allocation6 + $0x1], 0 }
   0xb   :  { %19 = vsyncpa [#allocation9], 0 }
   0xc   :  { %21 = vsyncpa [#allocation9 + $0x1], 0 }
   0xd   :  { %22 = vsyncpa [#allocation12], 0 }
   0xe   :  { %23 = vsyncpa [#allocation15], 0 }
   0xf   :  { %24 = vsyncpa [#allocation7], 0 }
  0x10   :  { %26 = vsyncpa [#allocation7 + $0x1], 0 }
  0x11   :  { %27 = vsyncpa [#allocation19], 0 }
  0x12   :  { %29 = vsyncpa [#allocation19 + $0x1], 0 }
  0x13   :  { %30 = vsyncpa [#allocation22], 0 }
  0x14   :  { %32 = vsyncpa [#allocation22 + $0x1], 0  ;;  %s2279_s13 = smov 0   ;;  %s2281_s14 = smov 0  }
  0x15   :  { %s2283_s15 = smov 0   ;;  %s2285_s16 = smov 0  }
  0x16   :  { %s2287_s17 = smov 0   ;;  %s2289_s18 = smov 0  }
  0x17   :  { %s2291_s19 = smov 0   ;;  %s2293_s20 = smov 0  }
  0x18   :  { %s2295_s21 = smov 0   ;;  %s2297_s22 = smov 0  }
  0x19   :  { %s2299_s23 = smov 0  }
  0x1a LB: > { %2997 = sst [smem:[#allocation31_spill]] %s2162_s13  ;;  %s2335_s24 = sadd.s32 4294967295, %s2202_s23   ;;  %s2202_s23 = sphi %s2299_s23, %s38_s23   ;;  %s2198_s22 = sphi %s2297_s22, %s3081_s22   ;;  %s2194_s21 = sphi %s2295_s21, %s3073_s21   ;;  %s2190_s20 = sphi %s2293_s20, %s3080_s20   ;;  %s2186_s19 = sphi %s2291_s19, %s3072_s19   ;;  %s2182_s18 = sphi %s2289_s18, %s3079_s18   ;;  %s2178_s17 = sphi %s2287_s17, %s3078_s17   ;;  %s2174_s16 = sphi %s2285_s16, %s3070_s16   ;;  %s2170_s15 = sphi %s2283_s15, %s3077_s15   ;;  %s2166_s14 = sphi %s2281_s14, %s3076_s14   ;;  %s2162_s13 = sphi %s2279_s13, %s3075_s13  }
  0x1b   : > { %2998 = sst [smem:[#allocation32_spill]] %s2178_s17  ;;  %s2953_s25 = sadd.s32 4294967294, %s2202_s23  }
  0x1c   : > { %2999 = sst [smem:[#allocation33_spill]] %s2186_s19  ;;  %p2961_p0 = scmp.eq.s32.totalorder %s2335_s24, 0 }
  0x1d   : > { %3000 = sst [smem:[#allocation34_spill]] %s2190_s20  ;;  %p126_p1 = scmp.ne.s32.totalorder %s2166_s14, %s2162_s13 }
  0x1e   : > { %3001 = sst [smem:[#allocation35_spill]] %s2194_s21  ;;  %p2344_p3 = scmp.eq.s32.totalorder %s2953_s25, 7 }
  0x1f   : > { %p2350_p4 = por %p126_p1, %p2961_p0  ;;  %p1450_p5 = scmp.ge.s32.totalorder %s2202_s23, 1 }
  0x20   : > { %s3002_s26 = scalar_select %p2344_p3, 1, 0 }
  0x21   : > { %s3003_s27 = scalar_select %p2350_p4, 1, 0 }
  0x22   : > { %p2357_p6 = por %p2344_p3, %p126_p1  ;;  %p329_p7 = scmp.lt.s32.totalorder %s2202_s23, 9 }
  0x23   : > { %3004 = sst [smem:[#allocation36_spill]] %s3003_s27  ;;  %s2204_s30 = smov [#allocation11]  }
  0x24   : > { %s3005_s28 = scalar_select %p2357_p6, 1, 0 }
  0x25   : > { %p2362_p8 = pnand %p1450_p5, %p329_p7  ;;  %s342_s11 = sshll.u32 %s2204_s30, 4  ;;  %s343_s11 = int_to_ptr.vmem [resolvable:$true] %s342_s11 }
  0x26   : > { %3006 = sst [smem:[#allocation37_spill]] %s3005_s28  ;;  %s2205_s12 = smov [#allocation14]  }
  0x27   : > { %s3007_s29 = scalar_select %p2362_p8, 1, 0 }
  0x28   : > { %p1615_p9 = pneg %p2362_p8  ;;  %s366_s25 = sshll.u32 %s2205_s12, 4  ;;  %s2374_s25 = int_to_ptr.vmem [resolvable:$true] %s366_s25 }
  0x29   : > { %3008 = sst [smem:[#allocation38_spill]] %s3007_s29 }
  0x2a   : > { %p2370_p10 = pnand %p1615_p9, %p2961_p0  ;;  %s3010_s3 = sld [smem:[#allocation47_spill]] }
  0x2c   : > { %s3009_s13 = scalar_select %p2370_p10, 1, 0 }
  0x2d   : > { %p2384_p12 = pneg %p2370_p10 }
  0x30   : > { %s1770_s8 = scalar_lea.hbm %s3010_s3, 128 }
  0x31   : > { %p1771_p11 = scmp.ne.s32.totalorder %s3010_s3, %s1770_s8  ;;  %p1777_p5 = scmp.lt.u32.totalorder %s1770_s8, %s3010_s3 }
  0x33   : > { %p1773_p13 = pnand %p2384_p12, %p1771_p11 }
  0x35   : > { %p1774_p1 = pneg %p1773_p13 }
  0x37   : > { %p1779_p7 = pnand %p1777_p5, %p1774_p1 }
  0x39   : > { %1782 = shalt.err (!%p1779_p7)
}
  0x3a   : > { %s1783_s9 = scalar_lea.vmem %s343_s11, 128  ;;  %p1791_p6 = scmp.lt.s32.totalorder %s343_s11, %s343_s11 }
  0x3b   : > { %p1784_p9 = scmp.ne.s32.totalorder %s343_s11, %s1783_s9  ;;  %p1792_p4 = scmp.lt.s32.totalorder %s1783_s9, %s1783_s9 }
  0x3d   : > { %p1786_p0 = pnand %p1784_p9, %p2384_p12  ;;  %p1793_p8 = por %p1792_p4, %p1791_p6 }
  0x3f   : > { %p1787_p2 = pneg %p1786_p0 }
  0x41   : > { %p1794_p3 = pnand %p1793_p8, %p1787_p2 }
  0x43   : > { %1797 = shalt.err (!%p1794_p3)
}
  0x44   : > { %1618 = dma.hbm_to_vmem [thread:$0]  (!%p2370_p10), %s3010_s3, 128, %s343_s11, [#allocation12]  }
  0x45   : > { %s3012_s5 = sld [smem:[#allocation48_spill]] }
  0x4b   : > { %s1798_s28 = scalar_lea.hbm %s3012_s5, 128 }
  0x4c   : > { %p1799_p0 = scmp.ne.s32.totalorder %s3012_s5, %s1798_s28  ;;  %p1805_p2 = scmp.lt.u32.totalorder %s1798_s28, %s3012_s5 }
  0x4e   : > { %p1801_p11 = pnand %p1799_p0, %p2384_p12 }
  0x50   : > { %p1802_p4 = pneg %p1801_p11 }
  0x52   : > { %p1807_p3 = pnand %p1805_p2, %p1802_p4 }
  0x54   : > { %1810 = shalt.err (!%p1807_p3)
}
  0x55   : > { %s1811_s11 = scalar_lea.vmem %s2374_s25, 128  ;;  %p1819_p1 = scmp.lt.s32.totalorder %s2374_s25, %s2374_s25 }
  0x56   : > { %p1812_p6 = scmp.ne.s32.totalorder %s2374_s25, %s1811_s11  ;;  %p1820_p5 = scmp.lt.s32.totalorder %s1811_s11, %s1811_s11 }
  0x58   : > { %p1814_p8 = pnand %p1812_p6, %p2384_p12  ;;  %p1821_p7 = por %p1820_p5, %p1819_p1 }
  0x5a   : > { %p1815_p13 = pneg %p1814_p8 }
  0x5c   : > { %p1822_p9 = pnand %p1821_p7, %p1815_p13 }
  0x5e   : > { %1825 = shalt.err (!%p1822_p9)
}
  0x5f   : > { %1624 = dma.hbm_to_vmem [thread:$0]  (!%p2370_p10), %s3012_s5, 128, %s2374_s25, [#allocation15]  }
  0x60   : > { %s47_s7 = sadd.s32 1, %s2194_s21  ;;  %s50_s10 = sadd.s32 1, %s2198_s22 }
  0x61   : > { %p48_p0 = scmp.ge.s32.totalorder %s47_s7, 4  ;;  %s59_s8 = sadd.s32 1, %s2182_s18 }
  0x62   : > { %p66_p11 = scmp.ne.s32.totalorder %s2182_s18, %s2178_s17  ;;  %p2978_p4 = scmp.eq.s32.totalorder %s2202_s23, 0 }
  0x63   : > { %s3083_s7 = smov (%p48_p0, %s47_s7), 0  ;;  %s3085_s10 = smov (!%p48_p0, %s50_s10), %s2198_s22 }
  0x64   : > { %3013 = sst [smem:[#allocation39_spill]] %s3083_s7  ;;  %s55_s20 = ssub.s32 %s2194_s21, %s3083_s7 }
  0x65   : > { %p2436_p2 = por %p2978_p4, %p66_p11  ;;  %p52_p3 = scmp.ge.s32.totalorder %s3085_s10, 2 }
  0x66   : > { %p72_p6 = scmp.ne.s32.totalorder %s2178_s17, %s2174_s16  ;;  %p3015_p8 = scmp.eq.s32.totalorder %s2335_s24, 7 }
  0x67   : > { %s3087_s10 = smov (%p52_p3, %s3085_s10), 0  ;;  %p3019_p1 = scmp.eq.s32.totalorder %s2335_s24, 0 }
  0x68   : > { %p2444_p13 = por %p3015_p8, %p66_p11  ;;  %3018 = sst [smem:[#allocation41_spill]] %s3087_s10 }
  0x69   : > { %p2452_p5 = por %p3019_p1, %p72_p6  ;;  %p3022_p7 = scmp.ne.s32.totalorder %s3002_s26, 0 }
  0x6a   : > { %s3016_s28 = scalar_select %p2444_p13, 1, 0 }
  0x6b   : > { %s3020_s12 = scalar_select %p2452_p5, 1, 0 }
  0x6c   : > { %3017 = sst [smem:[#allocation40_spill]] %s3016_s28  ;;  %p2458_p9 = por %p3022_p7, %p72_p6 }
  0x6d   : > { %3021 = sst [smem:[#allocation42_spill]] %s3020_s12  ;;  %s2464_s16 = ssub.s32 %s2198_s22, %s3087_s10 }
  0x6e   : > { %s3023_s9 = scalar_select %p2458_p9, 1, 0 }
  0x6f   : > { %s56_s11 = sor.u32 %s55_s20, %s2464_s16  ;;  %p2977_p3 = scmp.lt.s32.totalorder %s2202_s23, 8 }
  0x70   : > { %3024 = sst [smem:[#allocation43_spill]] %s3023_s9  ;;  %p57_p11 = scmp.eq.s32.totalorder %s56_s11, 0 }
  0x71   : > { %s2969_s19 = sand.u32 1, %s2182_s18   ;;  %s1457_s27 = sshll.u32 %s2194_s21, 1 }
  0x72   : > { %s2472_s3 = scalar_select %p57_p11, %s2182_s18, %s59_s8  }
  0x73   : > { %s2476_s5 = sshll.u32 %s2969_s19, 4  ;;  %s1458_s26 = sshll.u32 %s2198_s22, 3 }
  0x74   : > { %3025 = sst [smem:[#allocation44_spill]] %s2472_s3  ;;  %s2479_s7 = sadd.s32 %s1458_s26, %s1457_s27 }
  0x75   : > { %p2485_p6 = pnand %p2977_p3, %p2436_p2  ;;  %s2974_s11 = sshll.u32 %s2479_s7, 7 }
  0x76   : > { %s413_s8 = sand.u32 1, %s2202_s23   ;;  %s3027_s1 = sld [smem:[#allocation46_spill]] }
  0x77   : > { %s3026_s20 = scalar_select %p2485_p6, 1, 0 }
  0x78   : > { %s417_s25 = scalar_lea.vmem [#allocation8], %s2476_s5  ;;  %s2206_s26 = smov [#allocation13]  }
  0x79   : > { %s426_s27 = sshll.u32 %s417_s25, 4  ;;  %s2501_s3 = sshll.u32 %s2206_s26, 4  ;;  %s2499_s27 = int_to_ptr.vmem [resolvable:$true] %s426_s27  ;;  %s353_s3 = int_to_ptr.vmem [resolvable:$true] %s2501_s3 }
  0x7a   : > { %s2503_s9 = scalar_lea.sflag [#allocation9], %s413_s8  ;;  %p2984_p8 = pneg %p2485_p6 }
  0x7c   : > { %s2496_s21 = scalar_lea.hbm %s3027_s1, %s2974_s11  ;;  %s1831_s11 = scalar_lea.hbm %s3027_s1, 2048 }
  0x7d   : > { %s1826_s28 = scalar_lea.hbm %s2496_s21, 256  ;;  %p1832_p11 = scmp.lt.u32.totalorder %s2496_s21, %s3027_s1 }
  0x7e   : > { %p1827_p2 = scmp.ne.s32.totalorder %s2496_s21, %s1826_s28  ;;  %p1833_p3 = scmp.lt.u32.totalorder %s1831_s11, %s1826_s28 }
  0x7f   : > { %p1835_p0 = scmp.lt.u32.totalorder %s1826_s28, %s2496_s21 }
  0x80   : > { %p1829_p1 = pnand %p2984_p8, %p1827_p2  ;;  %p1834_p4 = por %p1833_p3, %p1832_p11 }
  0x82   : > { %p1830_p7 = pneg %p1829_p1  ;;  %p1836_p9 = por %p1835_p0, %p1834_p4 }
  0x84   : > { %p1837_p13 = pnand %p1836_p9, %p1830_p7 }
  0x86   : > { %1840 = shalt.err (!%p1837_p13)
}
  0x87   : > { %s1841_s8 = scalar_lea.vmem %s2499_s27, 256  ;;  %s2207_s26 = smov [#allocation8]  }
  0x88   : > { %p1842_p2 = scmp.ne.s32.totalorder %s2499_s27, %s1841_s8  ;;  %s1846_s10 = sshll.u32 %s2207_s26, 4  ;;  %s1847_s10 = int_to_ptr.vmem [resolvable:$false] %s1846_s10 }
  0x89   : > { %s1848_s12 = scalar_lea.vmem %s1847_s10, 512  ;;  %p1849_p10 = scmp.lt.s32.totalorder %s2499_s27, %s1847_s10 }
  0x8a   : > { %p1844_p1 = pnand %p1842_p2, %p2984_p8  ;;  %p1850_p3 = scmp.lt.s32.totalorder %s1848_s12, %s1841_s8 }
  0x8c   : > { %p1845_p5 = pneg %p1844_p1  ;;  %p1851_p11 = por %p1850_p3, %p1849_p10 }
  0x8e   : > { %p1852_p4 = pnand %p1851_p11, %p1845_p5 }
  0x90   : > { %1855 = shalt.err (!%p1852_p4)
}
  0x91   : > { %s2208_s28 = smov 128   ;;  %s2209_s11 = smov 8  }
  0x92   : > { %1634 = dma.hbm_to_vmem [thread:$0]  (!%p2485_p6), %s2496_s21, 256, %s2499_s27, %s2503_s9, %s2208_s28, %s2208_s28, %s2209_s11  }
  0x93   : > { %s1856_s8 = scalar_lea.hbm %s2946_s4, 256 }
  0x94   : > { %p1857_p10 = scmp.ne.s32.totalorder %s2946_s4, %s1856_s8  ;;  %p1863_p9 = scmp.lt.u32.totalorder %s1856_s8, %s2946_s4 }
  0x96   : > { %p1859_p13 = pnand %p1857_p10, %p2384_p12 }
  0x98   : > { %p1860_p5 = pneg %p1859_p13 }
  0x9a   : > { %p1865_p0 = pnand %p1863_p9, %p1860_p5 }
  0x9c   : > { %1868 = shalt.err (!%p1865_p0)
}
  0x9d   : > { %s1869_s17 = scalar_lea.vmem %s353_s3, 256  ;;  %p1877_p3 = scmp.lt.s32.totalorder %s353_s3, %s353_s3 }
  0x9e   : > { %p1870_p7 = scmp.ne.s32.totalorder %s353_s3, %s1869_s17  ;;  %p1878_p11 = scmp.lt.s32.totalorder %s1869_s17, %s1869_s17 }
  0xa0   : > { %p1872_p2 = pnand %p1870_p7, %p2384_p12  ;;  %p1879_p4 = por %p1878_p11, %p1877_p3 }
  0xa2   : > { %p1873_p1 = pneg %p1872_p2 }
  0xa4   : > { %p1880_p8 = pnand %p1879_p4, %p1873_p1 }
  0xa6   : > { %1883 = shalt.err (!%p1880_p8)
}
  0xa7   : > { %p3028_p10 = scmp.ne.s32.totalorder %s3009_s13, 0  ;;  %s2210_s27 = smov [#allocation16]  }
  0xa8   : > { %s376_s19 = sshll.u32 %s2210_s27, 4  ;;  %s1884_s17 = scalar_lea.hbm %s2948_s6, 256  ;;  %s377_s19 = int_to_ptr.vmem [resolvable:$true] %s376_s19 }
  0xa9   : > { %1621 = dma.hbm_to_vmem [thread:$0]  (!%p3028_p10), %s2946_s4, 256, %s353_s3, [#allocation12], %s2208_s28, %s2208_s28, %s2209_s11  }
  0xaa   : > { %p1885_p8 = scmp.ne.s32.totalorder %s2948_s6, %s1884_s17  ;;  %p1891_p9 = scmp.lt.u32.totalorder %s1884_s17, %s2948_s6 }
  0xac   : > { %p1887_p13 = pnand %p1885_p8, %p2384_p12 }
  0xae   : > { %p1888_p5 = pneg %p1887_p13 }
  0xb0   : > { %p1893_p0 = pnand %p1891_p9, %p1888_p5 }
  0xb2   : > { %1896 = shalt.err (!%p1893_p0)
}
  0xb3   : > { %s1897_s3 = scalar_lea.vmem %s377_s19, 256  ;;  %p1905_p3 = scmp.lt.s32.totalorder %s377_s19, %s377_s19 }
  0xb4   : > { %p1898_p7 = scmp.ne.s32.totalorder %s377_s19, %s1897_s3  ;;  %p1906_p11 = scmp.lt.s32.totalorder %s1897_s3, %s1897_s3 }
  0xb6   : > { %p1900_p2 = pnand %p1898_p7, %p2384_p12  ;;  %p1907_p4 = por %p1906_p11, %p1905_p3 }
  0xb8   : > { %p1901_p1 = pneg %p1900_p2 }
  0xba   : > { %p1908_p6 = pnand %p1907_p4, %p1901_p1 }
  0xbc   : > { %1911 = shalt.err (!%p1908_p6)
}
  0xbd   : > { %1627 = dma.hbm_to_vmem [thread:$0]  (!%p3028_p10), %s2948_s6, 256, %s377_s19, [#allocation15], %s2208_s28, %s2208_s28, %s2209_s11  }
  0xbe   : > { %s3029_s30 = sshll.u32 %s2479_s7, 7  ;;  %s3030_s0 = sld [smem:[#allocation45_spill]] }
  0xbf   : > { %s394_s13 = scalar_lea.vmem [#allocation5], %s2476_s5  ;;  %s3031_s17 = sand.u32 1, %s2182_s18  }
  0xc0   : > { %s403_s8 = sshll.u32 %s394_s13, 4  ;;  %s2589_s26 = scalar_lea.sflag [#allocation6], %s3031_s17  ;;  %s2585_s8 = int_to_ptr.vmem [resolvable:$true] %s403_s8 }
  0xc1   : > { %p3032_p6 = scmp.ne.s32.totalorder %s3026_s20, 0 }
  0xc3   : > { %p3033_p10 = pneg %p3032_p6 }
  0xc4   : > { %s2582_s25 = scalar_lea.hbm %s3030_s0, %s3029_s30  ;;  %s1917_s12 = scalar_lea.hbm %s3030_s0, 2048 }
  0xc5   : > { %s1912_s10 = scalar_lea.hbm %s2582_s25, 256  ;;  %p1918_p5 = scmp.lt.u32.totalorder %s2582_s25, %s3030_s0 }
  0xc6   : > { %p1913_p12 = scmp.ne.s32.totalorder %s2582_s25, %s1912_s10  ;;  %p1919_p9 = scmp.lt.u32.totalorder %s1917_s12, %s1912_s10 }
  0xc7   : > { %p1921_p7 = scmp.lt.u32.totalorder %s1912_s10, %s2582_s25 }
  0xc8   : > { %p1915_p8 = pnand %p1913_p12, %p3033_p10  ;;  %p1920_p0 = por %p1919_p9, %p1918_p5 }
  0xca   : > { %p1916_p13 = pneg %p1915_p8  ;;  %p1922_p2 = por %p1921_p7, %p1920_p0 }
  0xcc   : > { %p1923_p1 = pnand %p1922_p2, %p1916_p13 }
  0xce   : > { %1926 = shalt.err (!%p1923_p1)
}
  0xcf   : > { %s1927_s5 = scalar_lea.vmem %s2585_s8, 256  ;;  %p3034_p11 = pmov %p3033_p10 }
  0xd0   : > { %p1928_p3 = scmp.ne.s32.totalorder %s2585_s8, %s1927_s5  ;;  %s2211_s1 = smov [#allocation5]  }
  0xd1   : > { %s1932_s30 = sshll.u32 %s2211_s1, 4  ;;  %s1933_s30 = int_to_ptr.vmem [resolvable:$false] %s1932_s30 }
  0xd2   : > { %p1930_p4 = pnand %p1928_p3, %p3034_p11  ;;  %s1934_s21 = scalar_lea.vmem %s1933_s30, 512 }
  0xd3   : > { %p1935_p10 = scmp.lt.s32.totalorder %s2585_s8, %s1933_s30  ;;  %p1936_p8 = scmp.lt.s32.totalorder %s1934_s21, %s1927_s5 }
  0xd4   : > { %p1931_p12 = pneg %p1930_p4 }
  0xd5   : > { %p1937_p5 = por %p1936_p8, %p1935_p10 }
  0xd7   : > { %p1938_p9 = pnand %p1937_p5, %p1931_p12 }
  0xd9   : > { %1941 = shalt.err (!%p1938_p9)
}
  0xda   : > { %1631 = dma.hbm_to_vmem [thread:$0]  (!%p3032_p6), %s2582_s25, 256, %s2585_s8, %s2589_s26, %s2208_s28, %s2208_s28, %s2209_s11  }
  0xdb   : > { %s1500_s27 = sshll.u32 %s2198_s22, 8  ;;  %s113_s13 = sadd.s32 1, %s2170_s15 }
  0xdc   : > { %p120_p13 = scmp.ne.s32.totalorder %s2170_s15, %s2166_s14  ;;  %p3035_p0 = scmp.eq.s32.totalorder %s2464_s16, 0 }
  0xdd   : > { %p3036_p7 = scmp.eq.s32.totalorder %s2202_s23, 0  ;;  %p3037_p1 = scmp.eq.s32.totalorder %s2335_s24, 7 }
  0xde   : > { %s2625_s20 = scalar_select %p3035_p0, %s2170_s15, %s113_s13  }
  0xdf   : > { %p122_p2 = por %p120_p13, %p3036_p7  ;;  %p2631_p3 = por %p3037_p1, %p120_p13 }
  0xe0   : > { %s438_s10 = sand.u32 1, %s2170_s15   ;;  %p3039_p11 = scmp.lt.s32.totalorder %s2202_s23, 8 }
  0xe1   : > { %s1464_s7 = sshll.u32 %s438_s10, 4  ;;  %s2645_s16 = scalar_lea.hbm %s2944_s2, %s1500_s27 }
  0xe2   : > { %p2638_p4 = pnand %p3039_p11, %p122_p2  ;;  %s440_s26 = scalar_lea.vmem [#allocation10], %s1464_s7 }
  0xe3   : > { %s447_s12 = sshll.u32 %s440_s26, 4  ;;  %s1942_s3 = scalar_lea.hbm %s2645_s16, 256  ;;  %s2647_s12 = int_to_ptr.vmem [resolvable:$true] %s447_s12 }
  0xe4   : > { %p1943_p6 = scmp.ne.s32.totalorder %s2645_s16, %s1942_s3  ;;  %p1944_p12 = pneg %p2638_p4 }
  0xe5   : > { %s1947_s1 = scalar_lea.hbm %s2944_s2, 512  ;;  %p1948_p5 = scmp.lt.u32.totalorder %s2645_s16, %s2944_s2 }
  0xe6   : > { %p1945_p10 = pnand %p1944_p12, %p1943_p6  ;;  %p1949_p9 = scmp.lt.u32.totalorder %s1947_s1, %s1942_s3 }
  0xe7   : > { %p1951_p0 = scmp.lt.u32.totalorder %s1942_s3, %s2645_s16 }
  0xe8   : > { %p1946_p8 = pneg %p1945_p10  ;;  %p1950_p13 = por %p1949_p9, %p1948_p5 }
  0xea   : > { %p1952_p7 = por %p1951_p0, %p1950_p13 }
  0xec   : > { %p1953_p2 = pnand %p1952_p7, %p1946_p8 }
  0xee   : > { %1956 = shalt.err (!%p1953_p2)
}
  0xef   : > { %s1957_s27 = scalar_lea.vmem %s2647_s12, 256  ;;  %s2212_s13 = smov [#allocation10]  }
  0xf0   : > { %p1958_p1 = scmp.ne.s32.totalorder %s2647_s12, %s1957_s27  ;;  %s1962_s10 = sshll.u32 %s2212_s13, 4  ;;  %s1963_s10 = int_to_ptr.vmem [resolvable:$false] %s1962_s10 }
  0xf1   : > { %s1964_s7 = scalar_lea.vmem %s1963_s10, 512  ;;  %p1965_p10 = scmp.lt.s32.totalorder %s2647_s12, %s1963_s10 }
  0xf2   : > { %p1960_p11 = pnand %p1958_p1, %p1944_p12  ;;  %p1966_p5 = scmp.lt.s32.totalorder %s1964_s7, %s1957_s27 }
  0xf4   : > { %p1961_p6 = pneg %p1960_p11  ;;  %p1967_p9 = por %p1966_p5, %p1965_p10 }
  0xf6   : > { %p1968_p13 = pnand %p1967_p9, %p1961_p6 }
  0xf8   : > { %1971 = shalt.err (!%p1968_p13)
}
  0xf9   : > { %1637 = dma.hbm_to_vmem [thread:$0]  (!%p2638_p4), %s2645_s16, 256, %s2647_s12, %s2503_s9, %s2208_s28, %s2208_s28, %s2209_s11  }
  0xfa   : > { %s3041_s25 = sld [smem:[#allocation38_spill]] }
 0x100   : > { %p3042_p12 = scmp.ne.s32.totalorder %s3041_s25, 0 }
 0x101   : > { %s3043_s8 = sld [smem:[#allocation32_spill]] (!%p3042_p12)  ;;  %s3044_s26 = sld [smem:[#allocation42_spill]] (!%p3042_p12) }
 0x102   : > { %459 = sbr.rel (%p3042_p12) target bundleno = 1415 (0x587), region = 48 }
 0x107   : > { %s2681_s3 = sand.u32 (!%p3042_p12), 1, %s3043_s8   ;;  %p3045_p8 = scmp.ne.s32.totalorder (!%p3042_p12), %s3044_s26, 0 }
 0x108   : > { %s1468_s29 = sshll.u32 (!%p3042_p12), %s2681_s3, 4  ;;  %s462_s5 = scalar_lea.sflag (!%p3042_p12), [#allocation6], %s2681_s3 }
 0x109   : > { %s465_s1 = scalar_lea.vmem [#allocation5], %s1468_s29 }
 0x10a   : > { %2129 = dma.done.wait (%p3045_p8), %s462_s5, 256  }
 0x10b   : > { %2131 = vsyncadd (%p3045_p8), %s462_s5, 4294967040  ;;  %s2988_s9 = sand.u32 1, %s2335_s24   ;;  %s474_s11 = scalar_lea.vmem [#allocation8], %s1468_s29 }
 0x10c   : > { %s471_s28 = scalar_lea.sflag [#allocation9], %s2988_s9 }
 0x10d   : > { %2133 = dma.done.wait (%p3045_p8), %s471_s28, 256  }
 0x10e   : > { %2135 = vsyncadd (%p3045_p8), %s471_s28, 4294967040  ;;  %s3046_s19 = sld [smem:[#allocation36_spill]]  ;;  %s2697_s16 = sand.u32 1, %s2166_s14  }
 0x10f   : > { %s1470_s12 = sshll.u32 %s2697_s16, 4 }
 0x110   : > { %s483_s30 = scalar_lea.vmem [#allocation10], %s1470_s12 }
 0x114   : > { %p3047_p4 = scmp.ne.s32.totalorder %s3046_s19, 0 }
 0x116   : > { %2137 = dma.done.wait (%p3047_p4), %s471_s28, 256  }
 0x117   : > { %2139 = vsyncadd (%p3047_p4), %s471_s28, 4294967040  ;;  %p3048_p0 = scmp.eq.s32.totalorder %s2335_s24, 0 }
 0x119   : > { %2141 = dma.done.wait (%p3048_p0), [#allocation12], 384   ;;  %p3049_p7 = pmov %p3048_p0 }
 0x11a   : > { %p3050_p2 = pmov %p3048_p0 }
 0x11b   : > { %2143 = vsyncadd (%p3049_p7), [#allocation12], 4294966912 }
 0x11c   : > { %2145 = dma.done.wait (%p3050_p2), [#allocation15], 384   ;;  %p3051_p1 = pmov %p3048_p0 }
 0x11d   : > { %s1475_s21 = sshll.u32 %s2681_s3, 3  ;;  %s1477_s27 = sshll.u32 %s2697_s16, 3  ;;  %v2714_v0 = vld [vmem:[%s465_s1] sm:$0xff]  ;;  %v2716_v1 = vld [vmem:[%s465_s1 + $0x8] sm:$0xff] }
 0x11e   : > { %2147 = vsyncadd (%p3051_p1), [#allocation15], 4294966912  ;;  %v2718_v2 = vld [vmem:[%s474_s11] sm:$0xff]  ;;  %v2720_v3 = vld [vmem:[%s474_s11 + $0x8] sm:$0xff]  ;;  %s538_s13 = scalar_lea.vmem [#allocation17], %s2697_s16  ;;  %s2727_s10 = scalar_lea.vmem [#allocation18], %s1475_s21 }
 0x11f   : > { %v2722_v4 = vld [vmem:[%s483_s30] sm:$0xff]  ;;  %v2724_v5 = vld [vmem:[%s483_s30 + $0x8] sm:$0xff]  ;;  %s2729_s7 = scalar_lea.vmem [#allocation20], %s1475_s21  ;;  %s2731_s25 = scalar_lea.vmem [#allocation21], %s1477_s27 }
 0x120   : > { %s3052_s8 = sld [smem:[#allocation33_spill]] }
 0x126   : > { %p1478_p11 = scmp.ne.s32.totalorder %s3052_s8, 0 }
 0x127   : > { %v571_v6 = vld [vmem:[#allocation16] sm:$0xff] (!%p1478_p11)  ;;  %v572_v7 = vld [vmem:[#allocation16 + $0x8] sm:$0xff] (!%p1478_p11)  ;;  %vm573_vm0 = vcmask (!%p1478_p11), 130048   ;;  %v2213_v9 = vmov (!%p1478_p11), 0.0|0.0   ;;  %vm748_vm1 = vcmask (!%p1478_p11), 0   ;;  %vm2214_vm2 = vmmov (!%p1478_p11), 0  }
 0x128   : > { %569 = sbr.rel (%p1478_p11) target bundleno = 748 (0x2ec), region = 80  ;;  %v1564_v8 = vpack.c.bf16 (!%p1478_p11), %v572_v7, %v571_v6  ;;  %1526 = vmatprep.mubr.msk.f32.mxu0 (!%p1478_p11), %vm573_vm0, %v2722_v4  ;;  %1568 = vmatprep.subr.bf16.mxu1 (!%p1478_p11), %v2213_v9  ;;  %v2215_v10 = vmov (!%p1478_p11), 0.0   ;;  %v736_v11 = vsel (!%p1478_p11), %vm573_vm0, %v2722_v4, 0.0  ;;  %v737_v12 = vsel (!%p1478_p11), %vm573_vm0, %v2724_v5, 0.0  ;;  %v570_v24 = vld [vmem:[#allocation14] sm:$0xff] (!%p1478_p11) }
 0x129   : > { %1533 = vmatprep.mubr.msk.f32.mxu1 (!%p1478_p11), %vm2214_vm2, %v2215_v10  ;;  %750 = vst.msk [vmem:[#allocation2] sm:$0x1] (!%p1478_p11), %vm748_vm1, %v2215_v10  ;;  %v738_v13 = vadd.f32 (!%p1478_p11), %v737_v12, %v736_v11  ;;  %vm732_vm3 = vcmask (!%p1478_p11), 64512   ;;  %v2216_v29 = vmov (!%p1478_p11), 1.0  }
 0x12a   : > { %1565 = vmatprep.subr.bf16.mxu0 (!%p1478_p11), %v1564_v8 }
 0x12b   : > { %1567 = vmatpush3.bf16.msra.mxu0 (!%p1478_p11), %v1564_v8  ;;  %v739_v14 = vrot.slane (!%p1478_p11), %v738_v13, 4 }
 0x12d   : > { %v740_v15 = vadd.f32 (!%p1478_p11), %v739_v14, %v738_v13 }
 0x12e   : > { %1527 = vmatmul.mubr.msk.f32.vlgmr.msra.gmra.mrb[0].mxu0 (!%p1478_p11), %vm573_vm0, %v2724_v5 }
 0x12f   : > { %v741_v16 = vrot.slane %v740_v15, 2 }
 0x131   : > { %v742_v17 = vadd.f32 %v741_v16, %v740_v15 }
 0x133   : > { %v743_v18 = vrot.slane %v742_v17, 1 }
 0x135   : > { %v744_v19 = vadd.f32 %v743_v18, %v742_v17 }
 0x137   : > { %v745_v20 = vsel %vm573_vm0, %v744_v19, 0.0 }
 0x138   : > { %746 = vadd.xlane.f32.xlu0 %v745_v20 }
 0x1c5   : > { %v747_v25 = vpop.xlane.xlu0 %746 }
 0x1c6   : > { %749 = vst.msk [vmem:[#allocation3] sm:$0x1] %vm748_vm1, %v747_v25 }
 0x201   : > { %v1528_v21 = vpop.f32.mrb[0].mxu0 }
 0x202   : > { %v646_v22 = vpop.f32.mrb[1].mxu0 }
 0x203   : > { %v1569_v23 = vpack.c.bf16 %v1528_v21, %v646_v22 }
 0x205   : > { %1570 = vmatpush3.bf16.msra.mxu1 %v1569_v23 }
 0x208   : > { %1534 = vmatmul.mubr.msk.f32.vlgmr.msra.gmra.mrb[0].mxu1 %vm573_vm0, %v570_v24 }
 0x2db   : > { %v724_v26 = vpop.f32.mrb[0].mxu1 }
 0x2dc   : > { %vm728_vm4 = vcmp.eq.f32.partialorder %v724_v26, 0.0  ;;  %v1535_v27 = vpop.f32.mrb[1].mxu1 }
 0x2dd   : > { %v729_v28 = vsel %vm728_vm4, 1.0, %v724_v26  ;;  %v734_v30 = vsel %vm728_vm4, 0.0, %v2216_v29 }
 0x2de   : > { %1762 = vrcp.f32 %v729_v28  ;;  %735 = vst.msk [vmem:[%s2731_s25] sm:$0xff] %vm732_vm3, %v734_v30 }
 0x2e8   : > { %v1763_v31 = vpop.eup %1762 }
 0x2e9   : > { %v731_v32 = vmul.f32 9.0, %v1763_v31 }
 0x2eb   : > { %733 = vst.msk [vmem:[#allocation4] sm:$0xff] %vm732_vm3, %v731_v32 }
 0x2ec PF: > { %v757_v33 = vadd.f32 1e-11, %v2718_v2  ;;  %v758_v34 = vadd.f32 1e-11, %v2720_v3  ;;  %v751_v35 = vsub.f32 %v2718_v2, %v2714_v0  ;;  %v752_v36 = vsub.f32 %v2720_v3, %v2716_v1  ;;  %s3053_s26 = sld [smem:[#allocation33_spill]] }
 0x2ed   : > { %vm766_vm5 = vcmask 130048   ;;  %v765_v57 = vld [vmem:[#allocation2] sm:$0x1]  ;;  %vm780_vm6 = vcmask 0  }
 0x2ee   : > { %1764 = vrcp.f32 %v757_v33  ;;  %v753_v37 = vand.u32 2147483647, %v751_v35  ;;  %v754_v38 = vand.u32 2147483647, %v752_v36 }
 0x2ef   : > { %1766 = vrcp.f32 %v758_v34 }
 0x2f0   : > { %v755_v39 = vmul.f32 %v753_v37, %v2722_v4  ;;  %v756_v40 = vmul.f32 %v754_v38, %v2724_v5 }
 0x2f2   : > { %p1482_p6 = scmp.ne.s32.totalorder %s3053_s26, 3 }
 0x2f3   : > { %v787_v60 = vld [vmem:[#allocation3] sm:$0x1] (!%p1482_p6) }
 0x2f4   : > { %v788_v61 = vadd.f32 (!%p1482_p6), 1e-08, %v787_v60 }
 0x2f6   : > { %1768 = vrcp.f32 (!%p1482_p6), %v788_v61 }
 0x2f8   : > { %v1765_v41 = vpop.eup %1764 }
 0x2f9   : > { %v1767_v42 = vpop.eup %1766  ;;  %v760_v43 = vmul.f32 %v1765_v41, %v755_v39 }
 0x2fa   : > { %v762_v44 = vmul.f32 %v1767_v42, %v756_v40 }
 0x2fb   : > { %v763_v45 = vmul.f32 %v760_v43, %v2722_v4 }
 0x2fc   : > { %v764_v46 = vmul.f32 %v762_v44, %v2724_v5 }
 0x2fd   : > { %v767_v47 = vsel %vm766_vm5, %v763_v45, 0.0 }
 0x2fe   : > { %v768_v48 = vsel %vm766_vm5, %v764_v46, 0.0 }
 0x2ff   : > { %v769_v49 = vadd.f32 %v768_v48, %v767_v47 }
 0x300   : > { %v1769_v63 = vpop.eup (!%p1482_p6), %1768 }
 0x301   : > { %v770_v50 = vrot.slane %v769_v49, 4 }
 0x303   : > { %v771_v51 = vadd.f32 %v770_v50, %v769_v49 }
 0x305   : > { %v772_v52 = vrot.slane %v771_v51, 2 }
 0x307   : > { %v773_v53 = vadd.f32 %v772_v52, %v771_v51 }
 0x309   : > { %v774_v54 = vrot.slane %v773_v53, 1 }
 0x30b   : > { %v775_v55 = vadd.f32 %v774_v54, %v773_v53 }
 0x30d   : > { %v776_v56 = vsel %vm766_vm5, %v775_v55, 0.0 }
 0x30e   : > { %777 = vadd.xlane.f32.xlu0 %v776_v56 }
 0x398   : > { %785 = sbr.rel (%p1482_p6) target bundleno = 937 (0x3a9), region = 84 }
 0x39b   : > { %v778_v58 = vpop.xlane.xlu0 %777 }
 0x39c   : > { %v779_v59 = vadd.f32 %v778_v58, %v765_v57 }
 0x39e   : > { %781 = vst.msk [vmem:[#allocation2] sm:$0x1] %vm780_vm6, %v779_v59 }
 0x3a5   : > { %v786_v62 = vld [vmem:[#allocation2] sm:$0x1] }
 0x3a6   : > { %v790_v6 = vmul.f32 %v1769_v63, %v786_v62 }
 0x3a8   : > { %791 = vst.msk [vmem:[%s538_s13] sm:$0x1] %vm780_vm6, %v790_v6 }
 0x3a9 PF: > { %v796_v7 = vld [vmem:[#allocation13] sm:$0xff]  ;;  %v797_v8 = vld [vmem:[#allocation13 + $0x8] sm:$0xff]  ;;  %v794_v9 = vmul.f32 %v2722_v4, %v2714_v0  ;;  %v795_v11 = vmul.f32 %v2724_v5, %v2716_v1  ;;  %v956_v12 = vmul.f32 %v2722_v4, %v2718_v2  ;;  %v957_v13 = vmul.f32 %v2724_v5, %v2720_v3  ;;  %s3054_s3 = sld [smem:[#allocation34_spill]]  ;;  %v793_v3 = vld [vmem:[#allocation11] sm:$0xff]  ;;  %s3055_s28 = sld [smem:[#allocation49_spill]] }
 0x3aa   : > { %v1571_v10 = vpack.c.bf16 %v797_v8, %v796_v7  ;;  %v2217_v0 = vmov 0.0|0.0   ;;  %vm2218_vm7 = vmmov 0   ;;  %v2219_v1 = vmov 0.0   ;;  %s1144_s19 = sshll.u32 %s538_s13, 4  ;;  %s1117_s12 = scalar_lea.sflag [#allocation7], %s2697_s16  ;;  %s1145_s19 = int_to_ptr.vmem [resolvable:$true] %s1144_s19 }
 0x3ab   : > { %1540 = vmatprep.mubr.msk.f32.mxu0 %vm766_vm5, %v794_v9  ;;  %1575 = vmatprep.subr.bf16.mxu1 %v2217_v0  ;;  %s1972_s30 = scalar_lea.vmem %s1145_s19, 16  ;;  %s2220_s21 = smov [#allocation17]  }
 0x3ac   : > { %1572 = vmatprep.subr.bf16.mxu0 %v1571_v10  ;;  %1547 = vmatprep.mubr.msk.f32.mxu1 %vm2218_vm7, %v2219_v1  ;;  %p1973_p10 = scmp.ne.s32.totalorder %s1145_s19, %s1972_s30  ;;  %s1976_s27 = sshll.u32 %s2220_s21, 4  ;;  %s1977_s27 = int_to_ptr.vmem [resolvable:$false] %s1976_s27 }
 0x3ad   : > { %1574 = vmatpush3.bf16.msra.mxu0 %v1571_v10  ;;  %s1978_s8 = scalar_lea.vmem %s1977_s27, 32  ;;  %p1979_p13 = scmp.lt.s32.totalorder %s1145_s19, %s1977_s27 }
 0x3ae   : > { %1579 = vmatprep.subr.bf16.mxu0 %v1571_v10  ;;  %p1974_p5 = pnand %p1973_p10, %p2631_p3  ;;  %p1980_p12 = scmp.lt.s32.totalorder %s1978_s8, %s1972_s30 }
 0x3af   : > { %s1492_s29 = sshll.u32 %s3054_s3, 4 }
 0x3b0   : > { %1541 = vmatmul.mubr.msk.f32.vlgmr.msra.gmra.mrb[0].mxu0 %vm766_vm5, %v795_v11  ;;  %s2781_s11 = scalar_lea.hbm %s3055_s28, %s1492_s29  ;;  %p1975_p9 = pneg %p1974_p5 }
 0x3b1   : > { %1581 = vmatpush3.bf16.msra.mxu0 %v1571_v10  ;;  %1554 = vmatprep.mubr.msk.f32.mxu0 %vm766_vm5, %v956_v12  ;;  %p1981_p8 = por %p1980_p12, %p1979_p13 }
 0x3b3   : > { %p1982_p4 = pnand %p1981_p8, %p1975_p9 }
 0x3b4   : > { %1555 = vmatmul.mubr.msk.f32.vlgmr.msra.gmra.mrb[2].mxu0 %vm766_vm5, %v957_v13 }
 0x483   : > { %v1542_v14 = vpop.f32.mrb[0].mxu0 }
 0x484   : > { %v870_v2 = vpop.f32.mrb[1].mxu0 }
 0x485   : > { %v1576_v4 = vpack.c.bf16 %v1542_v14, %v870_v2 }
 0x487   : > { %1577 = vmatpush3.bf16.msra.mxu1 %v1576_v4  ;;  %v1556_v15 = vpop.f32.mrb[2].mxu0 }
 0x488   : > { %v1032_v5 = vpop.f32.mrb[3].mxu0  ;;  %1582 = vmatprep.subr.bf16.mxu1 %v2217_v0 }
 0x489   : > { %v1583_v16 = vpack.c.bf16 %v1556_v15, %v1032_v5 }
 0x48a   : > { %1548 = vmatmul.mubr.msk.f32.vlgmr.msra.gmra.mrb[0].mxu1 %vm766_vm5, %v793_v3 }
 0x48b   : > { %1584 = vmatpush3.bf16.msra.mxu1 %v1583_v16  ;;  %1561 = vmatprep.mubr.msk.f32.mxu1 %vm2218_vm7, %v2219_v1 }
 0x48e   : > { %1562 = vmatmul.mubr.msk.f32.vlgmr.msra.gmra.mrb[2].mxu1 %vm766_vm5, %v793_v3 }
 0x48f   : > { %1985 = shalt.err (!%p1982_p4)
}
 0x490   : > { %s1986_s13 = scalar_lea.hbm %s2781_s11, 16  ;;  %s1990_s5 = scalar_lea.hbm %s3055_s28, 32 }
 0x491   : > { %p1987_p0 = scmp.ne.s32.totalorder %s2781_s11, %s1986_s13  ;;  %p1991_p1 = scmp.lt.u32.totalorder %s2781_s11, %s3055_s28 }
 0x492   : > { %p1992_p11 = scmp.lt.u32.totalorder %s1990_s5, %s1986_s13  ;;  %p1994_p10 = scmp.lt.u32.totalorder %s1986_s13, %s2781_s11 }
 0x493   : > { %p1988_p7 = pnand %p1987_p0, %p2631_p3 }
 0x494   : > { %p1993_p6 = por %p1992_p11, %p1991_p1 }
 0x495   : > { %p1989_p2 = pneg %p1988_p7 }
 0x496   : > { %p1995_p5 = por %p1994_p10, %p1993_p6 }
 0x498   : > { %p1996_p9 = pnand %p1995_p5, %p1989_p2 }
 0x49a   : > { %1999 = shalt.err (!%p1996_p9)
}
 0x49b   : > { %1607 = dma.vmem_to_hbm [thread:$0]  (%p2631_p3), %s1145_s19, 16, %s2781_s11, %s1117_s12  }
 0x49c   : > { %s1497_s30 = sshll.u32 %s3054_s3, 7  ;;  %s1187_s27 = sshll.u32 %s2731_s25, 4  ;;  %s1188_s27 = int_to_ptr.vmem [resolvable:$true] %s1187_s27 }
 0x49d   : > { %s3056_s29 = sld [smem:[#allocation52_spill]]  ;;  %s1131_s13 = scalar_lea.sflag [#allocation22], %s2697_s16 }
 0x49e   : > { %s2000_s5 = scalar_lea.vmem %s1188_s27, 128  ;;  %s2221_s21 = smov [#allocation21]  }
 0x49f   : > { %p2001_p13 = scmp.ne.s32.totalorder %s1188_s27, %s2000_s5  ;;  %s2004_s9 = sshll.u32 %s2221_s21, 4  ;;  %s2005_s9 = int_to_ptr.vmem [resolvable:$false] %s2004_s9 }
 0x4a0   : > { %s2006_s0 = scalar_lea.vmem %s2005_s9, 256  ;;  %p2007_p4 = scmp.lt.s32.totalorder %s1188_s27, %s2005_s9 }
 0x4a1   : > { %p2002_p12 = pnand %p2001_p13, %p2631_p3  ;;  %p2008_p0 = scmp.lt.s32.totalorder %s2006_s0, %s2000_s5 }
 0x4a3   : > { %s2808_s1 = scalar_lea.hbm %s3056_s29, %s1497_s30  ;;  %p2003_p8 = pneg %p2002_p12 }
 0x4a4   : > { %p2009_p7 = por %p2008_p0, %p2007_p4 }
 0x4a6   : > { %p2010_p2 = pnand %p2009_p7, %p2003_p8 }
 0x4a8   : > { %2013 = shalt.err (!%p2010_p2)
}
 0x4a9   : > { %s2014_s16 = scalar_lea.hbm %s2808_s1, 128  ;;  %s2018_s19 = scalar_lea.hbm %s3056_s29, 256 }
 0x4aa   : > { %p2015_p1 = scmp.ne.s32.totalorder %s2808_s1, %s2014_s16  ;;  %p2019_p10 = scmp.lt.u32.totalorder %s2808_s1, %s3056_s29 }
 0x4ab   : > { %p2020_p5 = scmp.lt.u32.totalorder %s2018_s19, %s2014_s16  ;;  %p2022_p13 = scmp.lt.u32.totalorder %s2014_s16, %s2808_s1 }
 0x4ac   : > { %p2016_p11 = pnand %p2015_p1, %p2631_p3 }
 0x4ad   : > { %p2021_p9 = por %p2020_p5, %p2019_p10 }
 0x4ae   : > { %p2017_p6 = pneg %p2016_p11 }
 0x4af   : > { %p2023_p12 = por %p2022_p13, %p2021_p9 }
 0x4b1   : > { %p2024_p8 = pnand %p2023_p12, %p2017_p6 }
 0x4b3   : > { %2027 = shalt.err (!%p2024_p8)
}
 0x4b4   : > { %s3057_s0 = sld [smem:[#allocation33_spill]]  ;;  %s1493_s30 = sshll.u32 %s3054_s3, 2  ;;  %v792_v17 = vld [vmem:[#allocation4] sm:$0xff]  ;;  %vm953_vm8 = vcmask 64512  }
 0x4b5   : > { %1610 = dma.vmem_to_hbm [thread:$0]  (%p2631_p3), %s1188_s27, 128, %s2808_s1, %s1131_s13  }
 0x4b6   : > { %s3058_s26 = sld [smem:[#allocation40_spill]]  ;;  %s1159_s21 = sshll.u32 %s2727_s10, 4  ;;  %s2841_s21 = int_to_ptr.vmem [resolvable:$true] %s1159_s21 }
 0x4b7   : > { %s3059_s25 = sld [smem:[#allocation50_spill]]  ;;  %s1174_s3 = sshll.u32 %s2729_s7, 4  ;;  %s1175_s3 = int_to_ptr.vmem [resolvable:$true] %s1174_s3 }
 0x4b8   : > { %s3060_s27 = sand.u32 1, %s2335_s24   ;;  %s2028_s13 = scalar_lea.vmem %s2841_s21, 128 }
 0x4b9   : > { %s2848_s1 = scalar_lea.sflag [#allocation19], %s3060_s27  ;;  %p2029_p3 = scmp.ne.s32.totalorder %s2841_s21, %s2028_s13 }
 0x4ba   : > { %s2830_s8 = sadd.s32 %s3057_s0, %s1493_s30  ;;  %s2222_s19 = smov [#allocation18]  }
 0x4bb   : > { %s1494_s5 = sshll.u32 %s2830_s8, 7  ;;  %s2032_s12 = sshll.u32 %s2222_s19, 4  ;;  %s2033_s12 = int_to_ptr.vmem [resolvable:$false] %s2032_s12 }
 0x4bc   : > { %p3061_p4 = scmp.ne.s32.totalorder %s3058_s26, 0  ;;  %s2034_s9 = scalar_lea.vmem %s2033_s12, 256 }
 0x4bd   : > { %s2839_s11 = scalar_lea.hbm %s3059_s25, %s1494_s5  ;;  %p2035_p2 = scmp.lt.s32.totalorder %s2841_s21, %s2033_s12 }
 0x4be   : > { %p2030_p0 = pnand %p2029_p3, %p3061_p4  ;;  %p2036_p1 = scmp.lt.s32.totalorder %s2034_s9, %s2028_s13 }
 0x4c0   : > { %p2031_p7 = pneg %p2030_p0  ;;  %p2037_p11 = por %p2036_p1, %p2035_p2 }
 0x4c2   : > { %p2038_p6 = pnand %p2037_p11, %p2031_p7 }
 0x55d   : > { %v948_v18 = vpop.f32.mrb[0].mxu1 }
 0x55e   : > { %v952_v19 = vmul.f32 %v948_v18, %v792_v17  ;;  %v1549_v20 = vpop.f32.mrb[1].mxu1 }
 0x560   : > { %954 = vst.msk [vmem:[%s2727_s10] sm:$0xff] %vm953_vm8, %v952_v19 }
 0x561   : > { %v1110_v21 = vpop.f32.mrb[2].mxu1 }
 0x562   : > { %2041 = shalt.err (!%p2038_p6)
}
 0x563   : > { %s2042_s24 = scalar_lea.hbm %s2839_s11, 128  ;;  %s2046_s30 = scalar_lea.hbm %s3059_s25, 1024 }
 0x564   : > { %p2043_p10 = scmp.ne.s32.totalorder %s2839_s11, %s2042_s24  ;;  %p2047_p13 = scmp.lt.u32.totalorder %s2839_s11, %s3059_s25 }
 0x565   : > { %p2048_p12 = scmp.lt.u32.totalorder %s2046_s30, %s2042_s24  ;;  %p2050_p3 = scmp.lt.u32.totalorder %s2042_s24, %s2839_s11 }
 0x566   : > { %p2044_p5 = pnand %p2043_p10, %p3061_p4 }
 0x567   : > { %p2049_p8 = por %p2048_p12, %p2047_p13 }
 0x568   : > { %p2045_p9 = pneg %p2044_p5 }
 0x569   : > { %p2051_p0 = por %p2050_p3, %p2049_p8 }
 0x56b   : > { %p2052_p7 = pnand %p2051_p0, %p2045_p9 }
 0x56d   : > { %2055 = shalt.err (!%p2052_p7)
}
 0x56e   : > { %1608 = dma.vmem_to_hbm [thread:$0]  (%p3061_p4), %s2841_s21, 128, %s2839_s11, %s2848_s1   ;;  %v1114_v22 = vmul.f32 %v1110_v21, %v792_v17  ;;  %v1563_v23 = vpop.f32.mrb[3].mxu1 }
 0x56f   : > { %s3062_s19 = sld [smem:[#allocation51_spill]]  ;;  %s2056_s24 = scalar_lea.vmem %s1175_s3, 128 }
 0x570   : > { %1115 = vst.msk [vmem:[%s2729_s7] sm:$0xff] %vm953_vm8, %v1114_v22  ;;  %p2057_p2 = scmp.ne.s32.totalorder %s1175_s3, %s2056_s24  ;;  %s2223_s10 = smov [#allocation20]  }
 0x571   : > { %s2060_s0 = sshll.u32 %s2223_s10, 4  ;;  %s2061_s0 = int_to_ptr.vmem [resolvable:$false] %s2060_s0 }
 0x572   : > { %p2058_p1 = pnand %p2057_p2, %p3061_p4  ;;  %s2062_s21 = scalar_lea.vmem %s2061_s0, 256 }
 0x573   : > { %p2063_p6 = scmp.lt.s32.totalorder %s1175_s3, %s2061_s0  ;;  %p2064_p10 = scmp.lt.s32.totalorder %s2062_s21, %s2056_s24 }
 0x574   : > { %p2059_p11 = pneg %p2058_p1 }
 0x575   : > { %s3063_s12 = smov %s3062_s19  ;;  %s2877_s9 = scalar_lea.hbm %s3062_s19, %s1494_s5 }
 0x576   : > { %p2065_p5 = por %p2064_p10, %p2063_p6 }
 0x578   : > { %p2066_p9 = pnand %p2065_p5, %p2059_p11 }
 0x57a   : > { %2069 = shalt.err (!%p2066_p9)
}
 0x57b   : > { %s2070_s7 = scalar_lea.hbm %s2877_s9, 128  ;;  %s2074_s11 = scalar_lea.hbm %s3063_s12, 1024 }
 0x57c   : > { %p2071_p13 = scmp.ne.s32.totalorder %s2877_s9, %s2070_s7  ;;  %p2075_p3 = scmp.lt.u32.totalorder %s2877_s9, %s3063_s12 }
 0x57d   : > { %p2076_p0 = scmp.lt.u32.totalorder %s2074_s11, %s2070_s7  ;;  %p2078_p2 = scmp.lt.u32.totalorder %s2070_s7, %s2877_s9 }
 0x57e   : > { %p2072_p12 = pnand %p2071_p13, %p3061_p4 }
 0x57f   : > { %p2077_p7 = por %p2076_p0, %p2075_p3 }
 0x580   : > { %p2073_p8 = pneg %p2072_p12 }
 0x581   : > { %p2079_p1 = por %p2078_p2, %p2077_p7 }
 0x583   : > { %p2080_p11 = pnand %p2079_p1, %p2073_p8 }
 0x585   : > { %2083 = shalt.err (!%p2080_p11)
}
 0x586   : > { %1609 = dma.vmem_to_hbm [thread:$0]  (%p3061_p4), %s1175_s3, 128, %s2877_s9, %s2848_s1  }
 0x587 PF: > { %s3064_s16 = sld [smem:[#allocation31_spill]]  ;;  %s3065_s27 = sld [smem:[#allocation37_spill]] }
 0x588   : > { %p1660_p6 = scmp.ge.s32.totalorder %s2202_s23, 2 }
 0x58d   : > { %s1199_s13 = sand.u32 1, %s3064_s16   ;;  %p3066_p10 = scmp.ne.s32.totalorder %s3065_s27, 0 }
 0x58e   : > { %s1200_s19 = scalar_lea.sflag [#allocation7], %s1199_s13 }
 0x58f   : > { %p1639_p5 = pnand %p1660_p6, %p3066_p10 }
 0x591   : > { %2149 = dma.done.wait (!%p1639_p5), %s1200_s19, 16  }
 0x592   : > { %2151 = vsyncadd (!%p1639_p5), %s1200_s19, 4294967280  ;;  %s3067_s24 = sadd.s32 4294967294, %s2202_s23   ;;  %s3068_s10 = sld [smem:[#allocation43_spill]] }
 0x593   : > { %s1207_s0 = sand.u32 1, %s3067_s24  }
 0x594   : > { %s1208_s26 = scalar_lea.sflag [#allocation19], %s1207_s0 }
 0x598   : > { %p3069_p9 = scmp.ne.s32.totalorder %s3068_s10, 0 }
 0x59a   : > { %p1642_p13 = pnand %p1660_p6, %p3069_p9 }
 0x59c   : > { %2153 = dma.done.wait (!%p1642_p13), %s1208_s26, 256  }
 0x59d   : > { %2155 = vsyncadd (!%p1642_p13), %s1208_s26, 4294967040  ;;  %s1226_s3 = scalar_lea.sflag [#allocation22], %s1199_s13 }
 0x59e   : > { %2157 = dma.done.wait (!%p1639_p5), %s1226_s3, 128  }
 0x59f   : > { %2159 = vsyncadd (!%p1639_p5), %s1226_s3, 4294967168  ;;  %s38_s23 = sadd.s32 1, %s2202_s23   ;;  %s3070_s16 = sld [smem:[#allocation32_spill]] }
 0x5a0   : > { %p35_p4 = scmp.ge.s32.totalorder %s38_s23, 10   ;;  %s3071_s1 = sld [smem:[#allocation44_spill]] }
 0x5a1   : > { %s3072_s19 = sld [smem:[#allocation35_spill]]  ;;  %s3073_s21 = sld [smem:[#allocation39_spill]] }
 0x5a2   : > { %s3074_s9 = sld [smem:[#allocation41_spill]]  ;;  %s3075_s13 = smov %s2166_s14 }
 0x5a3   : > { %s3076_s14 = smov %s2170_s15  ;;  %s3077_s15 = smov %s2625_s20 }
 0x5a4   : > { %s3078_s17 = smov %s2182_s18  ;;  %s3080_s20 = smov %s2198_s22 }
 0x5a5   :  { %37 = sbr.rel (!%p35_p4) target bundleno = 26 (0x1a), region = 190 }
 0x5a6   : > { %s3079_s18 = smov %s3071_s1 }
 0x5a8   : > { %s3081_s22 = smov %s3074_s9 }
 0x5ac   :  { %1231 = vsyncpa [#allocation6], 1 }
 0x5ad   :  { %1233 = vsyncpa [#allocation6 + $0x1], 1 }
 0x5ae   :  { %1234 = vsyncpa [#allocation9], 1 }
 0x5af   :  { %1236 = vsyncpa [#allocation9 + $0x1], 1 }
 0x5b0   :  { %1237 = vsyncpa [#allocation12], 1 }
 0x5b1   :  { %1238 = vsyncpa [#allocation15], 1 }
 0x5b2   :  { %1239 = vsyncpa [#allocation7], 1 }
 0x5b3   :  { %1241 = vsyncpa [#allocation7 + $0x1], 1 }
 0x5b4   :  { %1242 = vsyncpa [#allocation19], 1 }
 0x5b5   :  { %1244 = vsyncpa [#allocation19 + $0x1], 1 }
 0x5b6   :  { %1245 = vsyncpa [#allocation22], 1 }
 0x5b7   :  { %1247 = vsyncpa [#allocation22 + $0x1], 1 }

// kernel: multiscale_masked_loss.3
= control target key start
LH: loop header
LB: loop body
LE: loop exit
PB: predicated region body
PF: predicated region fallthrough
CT: control target
= control target key end

     0   :  { %s4858_s0 = inlined_call_operand.hbm [shape: f32[2,4,8,8], index: 0, kind: input, shape index: {}]   ;;  %s4859_s1 = inlined_call_operand.hbm [shape: f32[2,4,8,8], index: 1, kind: input, shape index: {}]   ;;  %s4860_s2 = inlined_call_operand.hbm [shape: f32[2,1,8,8], index: 2, kind: input, shape index: {}]   ;;  %s4861_s3 = inlined_call_operand.hbm [shape: f32[2,8,8], index: 3, kind: input, shape index: {}]   ;;  %s4862_s4 = inlined_call_operand.hbm [shape: f32[2,8,8], index: 4, kind: input, shape index: {}]   ;;  %s4863_s5 = inlined_call_operand.hbm [shape: f32[2,8,8], index: 5, kind: input, shape index: {}]   ;;  %s4864_s6 = inlined_call_operand.hbm [shape: f32[2,8,8], index: 6, kind: input, shape index: {}]   ;;  %s4865_s7 = inlined_call_operand.hbm [shape: f32[2,1,1], index: 7, kind: output, shape index: {}]  }
   0x1   :  { %4889 = sst [smem:[#allocation25_spill]] %s4859_s1 }
   0x2   :  { %4890 = sst [smem:[#allocation26_spill]] %s4861_s3 }
   0x3   :  { %4891 = sst [smem:[#allocation27_spill]] %s4863_s5 }
   0x4   :  { %12 = vsyncpa [#allocation3], 0 }
   0x5   :  { %14 = vsyncpa [#allocation3 + $0x1], 0 }
   0x6   :  { %15 = vsyncpa [#allocation6], 0 }
   0x7   :  { %17 = vsyncpa [#allocation6 + $0x1], 0 }
   0x8   :  { %18 = vsyncpa [#allocation9], 0 }
   0x9   :  { %19 = vsyncpa [#allocation12], 0 }
   0xa   :  { %20 = vsyncpa [#allocation4], 0 }
   0xb   :  { %22 = vsyncpa [#allocation4 + $0x1], 0  ;;  %s4207_s24 = smov 0   ;;  %s4209_s25 = smov 0  }
   0xc   :  { %s4211_s26 = smov 0   ;;  %s4213_s27 = smov 0  }
   0xd LB: > { %4892 = sst [smem:[#allocation20_spill]] %s4140_s24  ;;  %s4228_s28 = sadd.s32 4294967295, %s4152_s27   ;;  %s4152_s27 = sphi %s4213_s27, %s4929_s27   ;;  %s4148_s26 = sphi %s4211_s26, %s4931_s26   ;;  %s4144_s25 = sphi %s4209_s25, %s4933_s25   ;;  %s4140_s24 = sphi %s4207_s24, %s4932_s24  }
   0xe   : > { %4893 = sst [smem:[#allocation21_spill]] %s4148_s26  ;;  %s3414_s29 = sadd.s32 4294967294, %s4152_s27  }
   0xf   : > { %p48_p0 = scmp.ne.s32.totalorder %s4144_s25, %s4140_s24  ;;  %p4866_p1 = scmp.eq.s32.totalorder %s4228_s28, 0 }
  0x10   : > { %p214_p3 = scmp.eq.s32.totalorder %s3414_s29, 1  ;;  %p3415_p5 = scmp.ge.s32.totalorder %s4152_s27, 1 }
  0x11   : > { %p4237_p4 = por %p4866_p1, %p48_p0  ;;  %p221_p7 = scmp.lt.s32.totalorder %s4152_s27, 3 }
  0x12   : > { %p4242_p6 = por %p214_p3, %p48_p0  ;;  %s4154_s10 = smov [#allocation8]  }
  0x13   : > { %s4894_s30 = scalar_select %p4237_p4, 1, 0 }
  0x14   : > { %s4895_s8 = scalar_select %p4242_p6, 1, 0 }
  0x15   : > { %p4247_p8 = pnand %p3415_p5, %p221_p7  ;;  %s233_s11 = sshll.u32 %s4154_s10, 4  ;;  %s4251_s11 = int_to_ptr.vmem [resolvable:$true] %s233_s11 }
  0x16   : > { %4896 = sst [smem:[#allocation22_spill]] %s4895_s8  ;;  %s4155_s13 = smov [#allocation11]  }
  0x17   : > { %s4897_s9 = scalar_select %p4247_p8, 1, 0 }
  0x18   : > { %p3760_p9 = pneg %p4247_p8  ;;  %s259_s14 = sshll.u32 %s4155_s13, 4  ;;  %s4262_s14 = int_to_ptr.vmem [resolvable:$true] %s259_s14 }
  0x19   : > { %s4899_s3 = sld [smem:[#allocation26_spill]] }
  0x1a   : > { %p4258_p11 = pnand %p3760_p9, %p4866_p1 }
  0x1c   : > { %s4898_s12 = scalar_select %p4258_p11, 1, 0 }
  0x1d   : > { %p4272_p13 = pneg %p4258_p11 }
  0x1f   : > { %s3872_s17 = scalar_lea.hbm %s4899_s3, 256 }
  0x20   : > { %p3873_p12 = scmp.ne.s32.totalorder %s4899_s3, %s3872_s17  ;;  %p3879_p5 = scmp.lt.u32.totalorder %s3872_s17, %s4899_s3 }
  0x21   : > { %s4900_s20 = scalar_select %p4272_p13, 1, 0 }
  0x22   : > { %p3875_p0 = pnand %p4272_p13, %p3873_p12 }
  0x24   : > { %p3876_p3 = pneg %p3875_p0 }
  0x26   : > { %p3881_p7 = pnand %p3879_p5, %p3876_p3 }
  0x28   : > { %3884 = shalt.err (!%p3881_p7)
}
  0x29   : > { %s3885_s23 = scalar_lea.vmem %s4251_s11, 256  ;;  %p3893_p2 = scmp.lt.s32.totalorder %s4251_s11, %s4251_s11 }
  0x2a   : > { %p3886_p9 = scmp.ne.s32.totalorder %s4251_s11, %s3885_s23  ;;  %p3894_p6 = scmp.lt.s32.totalorder %s3885_s23, %s3885_s23 }
  0x2c   : > { %p3888_p10 = pnand %p3886_p9, %p4272_p13  ;;  %p3895_p12 = por %p3894_p6, %p3893_p2 }
  0x2e   : > { %p3889_p1 = pneg %p3888_p10 }
  0x30   : > { %p3896_p0 = pnand %p3895_p12, %p3889_p1 }
  0x32   : > { %3899 = shalt.err (!%p3896_p0)
}
  0x33   : > { %s4867_s29 = smov 128   ;;  %s4869_s10 = smov 8  }
  0x34   : > { %3763 = dma.hbm_to_vmem [thread:$0]  (!%p4258_p11), %s4899_s3, 256, %s4251_s11, [#allocation9], %s4867_s29, %s4867_s29, %s4869_s10  }
  0x35   : > { %s4901_s5 = sld [smem:[#allocation27_spill]] }
  0x3b   : > { %s3900_s18 = scalar_lea.hbm %s4901_s5, 256 }
  0x3c   : > { %p3901_p1 = scmp.ne.s32.totalorder %s4901_s5, %s3900_s18  ;;  %p3907_p10 = scmp.lt.u32.totalorder %s3900_s18, %s4901_s5 }
  0x3e   : > { %p3903_p2 = pnand %p3901_p1, %p4272_p13 }
  0x40   : > { %p3904_p6 = pneg %p3903_p2 }
  0x42   : > { %p3909_p3 = pnand %p3907_p10, %p3904_p6 }
  0x44   : > { %3912 = shalt.err (!%p3909_p3)
}
  0x45   : > { %s3913_s11 = scalar_lea.vmem %s4262_s14, 256  ;;  %p3921_p12 = scmp.lt.s32.totalorder %s4262_s14, %s4262_s14 }
  0x46   : > { %p3914_p5 = scmp.ne.s32.totalorder %s4262_s14, %s3913_s11  ;;  %p3922_p0 = scmp.lt.s32.totalorder %s3913_s11, %s3913_s11 }
  0x48   : > { %p3916_p7 = pnand %p3914_p5, %p4272_p13  ;;  %p3923_p1 = por %p3922_p0, %p3921_p12 }
  0x4a   : > { %p3917_p9 = pneg %p3916_p7 }
  0x4c   : > { %p3924_p2 = pnand %p3923_p1, %p3917_p9 }
  0x4e   : > { %3927 = shalt.err (!%p3924_p2)
}
  0x4f   : > { %3769 = dma.hbm_to_vmem [thread:$0]  (!%p4258_p11), %s4901_s5, 256, %s4262_s14, [#allocation12], %s4867_s29, %s4867_s29, %s4869_s10  }
  0x50   : > { %s4323_s16 = sadd.s32 1, %s4152_s27   ;;  %s35_s17 = sadd.s32 1, %s4148_s26 }
  0x51   : > { %4902 = sst [smem:[#allocation23_spill]] %s4323_s16  ;;  %s32_s18 = ssub.s32 %s4152_s27, %s4323_s16 }
  0x52   : > { %p42_p6 = scmp.ne.s32.totalorder %s4148_s26, %s4144_s25  ;;  %p33_p10 = scmp.eq.s32.totalorder %s32_s18, 0 }
  0x53   : > { %p43_p3 = scmp.eq.s32.totalorder %s4152_s27, 0  ;;  %p4903_p5 = scmp.eq.s32.totalorder %s4228_s28, 1 }
  0x54   : > { %p3791_p9 = scmp.lt.s32.totalorder %s4152_s27, 2  ;;  %s4342_s22 = sand.u32 1, %s4148_s26  }
  0x55   : > { %p4333_p7 = por %p4903_p5, %p42_p6  ;;  %p44_p12 = por %p43_p3, %p42_p6 }
  0x56   : > { %s4339_s21 = scalar_select %p33_p10, %s4148_s26, %s35_s17  }
  0x57   : > { %s4904_s19 = scalar_select %p4333_p7, 1, 0 }
  0x58   : > { %4905 = sst [smem:[#allocation24_spill]] %s4339_s21  ;;  %s4872_s14 = sshll.u32 %s4342_s22, 5 }
  0x59   : > { %s4873_s23 = sshll.u32 %s4152_s27, 9  ;;  %p4346_p0 = pnand %p3791_p9, %p44_p12 }
  0x5a   : > { %s307_s13 = sand.u32 1, %s4152_s27   ;;  %s4907_s1 = sld [smem:[#allocation25_spill]] }
  0x5b   : > { %s4906_s11 = scalar_select %p4346_p0, 1, 0 }
  0x5c   : > { %s311_s17 = scalar_lea.vmem [#allocation5], %s4872_s14  ;;  %s4158_s3 = smov [#allocation10]  }
  0x5d   : > { %s318_s10 = sshll.u32 %s311_s17, 4  ;;  %s4362_s5 = sshll.u32 %s4158_s3, 4  ;;  %s4360_s10 = int_to_ptr.vmem [resolvable:$true] %s318_s10  ;;  %s247_s5 = int_to_ptr.vmem [resolvable:$true] %s4362_s5 }
  0x5e   : > { %s4364_s21 = scalar_lea.sflag [#allocation6], %s307_s13  ;;  %p4370_p2 = pneg %p4346_p0 }
  0x60   : > { %s4356_s29 = scalar_lea.hbm %s4907_s1, %s4873_s23  ;;  %s3933_s14 = scalar_lea.hbm %s4907_s1, 1024 }
  0x61   : > { %s3928_s26 = scalar_lea.hbm %s4356_s29, 512  ;;  %p3934_p3 = scmp.lt.u32.totalorder %s4356_s29, %s4907_s1 }
  0x62   : > { %p3929_p1 = scmp.ne.s32.totalorder %s4356_s29, %s3928_s26  ;;  %p3935_p5 = scmp.lt.u32.totalorder %s3933_s14, %s3928_s26 }
  0x63   : > { %s4908_s15 = scalar_select %p4370_p2, 1, 0 }
  0x64   : > { %p3931_p6 = pnand %p4370_p2, %p3929_p1  ;;  %p3936_p9 = por %p3935_p5, %p3934_p3 }
  0x65   : > { %p3937_p12 = scmp.lt.u32.totalorder %s3928_s26, %s4356_s29 }
  0x66   : > { %p3932_p10 = pneg %p3931_p6 }
  0x67   : > { %p3938_p7 = por %p3937_p12, %p3936_p9 }
  0x69   : > { %p3939_p4 = pnand %p3938_p7, %p3932_p10 }
  0x6b   : > { %3942 = shalt.err (!%p3939_p4)
}
  0x6c   : > { %s3943_s13 = scalar_lea.vmem %s4360_s10, 512  ;;  %s4159_s18 = smov [#allocation5]  }
  0x6d   : > { %p3944_p1 = scmp.ne.s32.totalorder %s4360_s10, %s3943_s13  ;;  %s3948_s17 = sshll.u32 %s4159_s18, 4  ;;  %s3949_s17 = int_to_ptr.vmem [resolvable:$false] %s3948_s17 }
  0x6e   : > { %s3950_s23 = scalar_lea.vmem %s3949_s17, 1024  ;;  %p3951_p11 = scmp.lt.s32.totalorder %s4360_s10, %s3949_s17 }
  0x6f   : > { %p3946_p6 = pnand %p3944_p1, %p4370_p2  ;;  %p3952_p13 = scmp.lt.s32.totalorder %s3950_s23, %s3943_s13 }
  0x71   : > { %p3947_p8 = pneg %p3946_p6  ;;  %p3953_p3 = por %p3952_p13, %p3951_p11 }
  0x73   : > { %p3954_p5 = pnand %p3953_p3, %p3947_p8 }
  0x75   : > { %3957 = shalt.err (!%p3954_p5)
}
  0x76   : > { %s4909_s26 = smov 8   ;;  %s4910_s14 = smov 128  }
  0x77   : > { %3779 = dma.hbm_to_vmem [thread:$0]  (!%p4346_p0), %s4356_s29, 512, %s4360_s10, %s4364_s21, %s4910_s14, %s4910_s14, %s4909_s26  }
  0x78   : > { %s3958_s17 = scalar_lea.hbm %s4862_s4, 256  ;;  %p4911_p8 = scmp.ne.s32.totalorder %s4900_s20, 0 }
  0x79   : > { %p3959_p4 = scmp.ne.s32.totalorder %s4862_s4, %s3958_s17  ;;  %p3965_p7 = scmp.lt.u32.totalorder %s3958_s17, %s4862_s4 }
  0x7b   : > { %p3961_p11 = pnand %p3959_p4, %p4911_p8 }
  0x7d   : > { %p3962_p13 = pneg %p3961_p11 }
  0x7f   : > { %p3967_p10 = pnand %p3965_p7, %p3962_p13 }
  0x81   : > { %3970 = shalt.err (!%p3967_p10)
}
  0x82   : > { %s3971_s8 = scalar_lea.vmem %s247_s5, 256  ;;  %p3979_p6 = scmp.lt.s32.totalorder %s247_s5, %s247_s5 }
  0x83   : > { %p3972_p9 = scmp.ne.s32.totalorder %s247_s5, %s3971_s8  ;;  %p3980_p3 = scmp.lt.s32.totalorder %s3971_s8, %s3971_s8 }
  0x85   : > { %p3974_p12 = pnand %p3972_p9, %p4911_p8  ;;  %p3981_p5 = por %p3980_p3, %p3979_p6 }
  0x87   : > { %p3975_p1 = pneg %p3974_p12 }
  0x89   : > { %p3982_p0 = pnand %p3981_p5, %p3975_p1 }
  0x8b   : > { %3985 = shalt.err (!%p3982_p0)
}
  0x8c   : > { %p4912_p4 = scmp.ne.s32.totalorder %s4898_s12, 0  ;;  %s4160_s10 = smov [#allocation13]  }
  0x8d   : > { %s272_s16 = sshll.u32 %s4160_s10, 4  ;;  %s3986_s8 = scalar_lea.hbm %s4864_s6, 256  ;;  %s273_s16 = int_to_ptr.vmem [resolvable:$true] %s272_s16 }
  0x8e   : > { %3766 = dma.hbm_to_vmem [thread:$0]  (!%p4912_p4), %s4862_s4, 256, %s247_s5, [#allocation9], %s4910_s14, %s4910_s14, %s4909_s26  }
  0x8f   : > { %p3987_p0 = scmp.ne.s32.totalorder %s4864_s6, %s3986_s8  ;;  %p3993_p7 = scmp.lt.u32.totalorder %s3986_s8, %s4864_s6 }
  0x91   : > { %p3989_p11 = pnand %p3987_p0, %p4911_p8 }
  0x93   : > { %p3990_p13 = pneg %p3989_p11 }
  0x95   : > { %p3995_p10 = pnand %p3993_p7, %p3990_p13 }
  0x97   : > { %3998 = shalt.err (!%p3995_p10)
}
  0x98   : > { %s3999_s5 = scalar_lea.vmem %s273_s16, 256  ;;  %p4007_p6 = scmp.lt.s32.totalorder %s273_s16, %s273_s16 }
  0x99   : > { %p4000_p9 = scmp.ne.s32.totalorder %s273_s16, %s3999_s5  ;;  %p4008_p3 = scmp.lt.s32.totalorder %s3999_s5, %s3999_s5 }
  0x9b   : > { %p4002_p12 = pnand %p4000_p9, %p4911_p8  ;;  %p4009_p5 = por %p4008_p3, %p4007_p6 }
  0x9d   : > { %p4003_p1 = pneg %p4002_p12 }
  0x9f   : > { %p4010_p2 = pnand %p4009_p5, %p4003_p1 }
  0xa1   : > { %4013 = shalt.err (!%p4010_p2)
}
  0xa2   : > { %3772 = dma.hbm_to_vmem [thread:$0]  (!%p4912_p4), %s4864_s6, 256, %s273_s16, [#allocation12], %s4910_s14, %s4910_s14, %s4909_s26  }
  0xa3   : > { %s4913_s20 = sshll.u32 %s4152_s27, 9  ;;  %s4914_s18 = sshll.u32 %s4342_s22, 5 }
  0xa4   : > { %s4445_s3 = scalar_lea.hbm %s4858_s0, %s4913_s20  ;;  %s290_s12 = scalar_lea.vmem [#allocation2], %s4914_s18 }
  0xa5   : > { %s297_s8 = sshll.u32 %s290_s12, 4  ;;  %s3427_s17 = sshll.u32 %s4342_s22, 3  ;;  %s4449_s8 = int_to_ptr.vmem [resolvable:$true] %s297_s8 }
  0xa6   : > { %s287_s13 = scalar_lea.sflag [#allocation3], %s4342_s22  ;;  %s4014_s23 = scalar_lea.hbm %s4445_s3, 512 }
  0xa7   : > { %p4015_p2 = scmp.ne.s32.totalorder %s4445_s3, %s4014_s23  ;;  %p4915_p8 = scmp.ne.s32.totalorder %s4908_s15, 0 }
  0xa8   : > { %s4019_s24 = scalar_lea.hbm %s4858_s0, 1024  ;;  %p4020_p11 = scmp.lt.u32.totalorder %s4445_s3, %s4858_s0 }
  0xa9   : > { %p4017_p4 = pnand %p4015_p2, %p4915_p8  ;;  %p4021_p13 = scmp.lt.u32.totalorder %s4019_s24, %s4014_s23 }
  0xaa   : > { %p4023_p10 = scmp.lt.u32.totalorder %s4014_s23, %s4445_s3 }
  0xab   : > { %p4018_p0 = pneg %p4017_p4  ;;  %p4022_p7 = por %p4021_p13, %p4020_p11 }
  0xad   : > { %p4024_p9 = por %p4023_p10, %p4022_p7 }
  0xaf   : > { %p4025_p12 = pnand %p4024_p9, %p4018_p0 }
  0xb1   : > { %4028 = shalt.err (!%p4025_p12)
}
  0xb2   : > { %s4029_s29 = scalar_lea.vmem %s4449_s8, 512  ;;  %s4161_s10 = smov [#allocation2]  }
  0xb3   : > { %p4030_p1 = scmp.ne.s32.totalorder %s4449_s8, %s4029_s29  ;;  %s4034_s18 = sshll.u32 %s4161_s10, 4  ;;  %s4035_s18 = int_to_ptr.vmem [resolvable:$false] %s4034_s18 }
  0xb4   : > { %s4036_s12 = scalar_lea.vmem %s4035_s18, 1024  ;;  %p4037_p5 = scmp.lt.s32.totalorder %s4449_s8, %s4035_s18 }
  0xb5   : > { %p4032_p6 = pnand %p4030_p1, %p4915_p8  ;;  %p4038_p2 = scmp.lt.s32.totalorder %s4036_s12, %s4029_s29 }
  0xb7   : > { %p4033_p3 = pneg %p4032_p6  ;;  %p4039_p4 = por %p4038_p2, %p4037_p5 }
  0xb9   : > { %p4040_p11 = pnand %p4039_p4, %p4033_p3 }
  0xbb   : > { %4043 = shalt.err (!%p4040_p11)
}
  0xbc   : > { %p4916_p0 = scmp.ne.s32.totalorder %s4906_s11, 0  ;;  %s3428_s23 = sshll.u32 %s4152_s27, 7 }
  0xbd   : > { %s4483_s24 = scalar_lea.hbm %s4860_s2, %s3428_s23  ;;  %s332_s1 = scalar_lea.vmem [#allocation7], %s3427_s17 }
  0xbe   : > { %3776 = dma.hbm_to_vmem [thread:$0]  (!%p4916_p0), %s4445_s3, 512, %s4449_s8, %s287_s13, %s4910_s14, %s4910_s14, %s4909_s26  }
  0xbf   : > { %s339_s20 = sshll.u32 %s332_s1, 4  ;;  %s4044_s29 = scalar_lea.hbm %s4483_s24, 128  ;;  %s340_s20 = int_to_ptr.vmem [resolvable:$true] %s339_s20 }
  0xc0   : > { %p4045_p13 = scmp.ne.s32.totalorder %s4483_s24, %s4044_s29  ;;  %s4049_s3 = scalar_lea.hbm %s4860_s2, 256 }
  0xc1   : > { %p4050_p9 = scmp.lt.u32.totalorder %s4483_s24, %s4860_s2  ;;  %p4051_p12 = scmp.lt.u32.totalorder %s4049_s3, %s4044_s29 }
  0xc2   : > { %p4047_p7 = pnand %p4045_p13, %p4915_p8  ;;  %p4053_p6 = scmp.lt.u32.totalorder %s4044_s29, %s4483_s24 }
  0xc3   : > { %p4052_p1 = por %p4051_p12, %p4050_p9 }
  0xc4   : > { %p4048_p10 = pneg %p4047_p7 }
  0xc5   : > { %p4054_p3 = por %p4053_p6, %p4052_p1 }
  0xc7   : > { %p4055_p5 = pnand %p4054_p3, %p4048_p10 }
  0xc9   : > { %4058 = shalt.err (!%p4055_p5)
}
  0xca   : > { %s4059_s22 = scalar_lea.vmem %s340_s20, 128  ;;  %s4162_s17 = smov [#allocation7]  }
  0xcb   : > { %p4060_p2 = scmp.ne.s32.totalorder %s340_s20, %s4059_s22  ;;  %s4064_s10 = sshll.u32 %s4162_s17, 4  ;;  %s4065_s10 = int_to_ptr.vmem [resolvable:$false] %s4064_s10 }
  0xcc   : > { %s4066_s18 = scalar_lea.vmem %s4065_s10, 256  ;;  %p4067_p13 = scmp.lt.s32.totalorder %s340_s20, %s4065_s10 }
  0xcd   : > { %p4062_p4 = pnand %p4060_p2, %p4915_p8  ;;  %p4068_p7 = scmp.lt.s32.totalorder %s4066_s18, %s4059_s22 }
  0xcf   : > { %p4063_p11 = pneg %p4062_p4  ;;  %p4069_p0 = por %p4068_p7, %p4067_p13 }
  0xd1   : > { %p4070_p9 = pnand %p4069_p0, %p4063_p11 }
  0xd3   : > { %4073 = shalt.err (!%p4070_p9)
}
  0xd4   : > { %p4917_p12 = scmp.ne.s32.totalorder %s4906_s11, 0  ;;  %p4918_p10 = scmp.ne.s32.totalorder %s4897_s9, 0 }
  0xd5   : > { %s4508_s15 = sand.u32 (!%p4918_p10), 1, %s4144_s25   ;;  %p4919_p8 = scmp.ne.s32.totalorder (!%p4918_p10), %s4894_s30, 0 }
  0xd6   : > { %3782 = dma.hbm_to_vmem [thread:$0]  (!%p4917_p12), %s4483_s24, 128, %s340_s20, %s4364_s21  }
  0xd7   : > { %348 = sbr.rel (%p4918_p10) target bundleno = 1328 (0x530), region = 48  ;;  %s3430_s12 = sshll.u32 (!%p4918_p10), %s4508_s15, 5 }
  0xd8   : > { %s351_s23 = scalar_lea.sflag (!%p4918_p10), [#allocation3], %s4508_s15  ;;  %s4512_s16 = scalar_lea.vmem (!%p4918_p10), [#allocation2], %s3430_s12 }
  0xde   : > { %4119 = dma.done.wait (%p4919_p8), %s351_s23, 512  }
  0xdf   : > { %4121 = vsyncadd (%p4919_p8), %s351_s23, 4294966784  ;;  %s359_s21 = sand.u32 1, %s4228_s28   ;;  %s4519_s11 = scalar_lea.vmem [#allocation5], %s3430_s12 }
  0xe0   : > { %s360_s9 = scalar_lea.sflag [#allocation6], %s359_s21 }
  0xe1   : > { %4123 = dma.done.wait (%p4919_p8), %s360_s9, 640  }
  0xe2   : > { %4125 = vsyncadd (%p4919_p8), %s360_s9, 4294966656  ;;  %s3432_s5 = sshll.u32 %s4508_s15, 3  ;;  %p4920_p0 = scmp.eq.s32.totalorder %s4228_s28, 0 }
  0xe3   : > { %s372_s24 = scalar_lea.vmem [#allocation7], %s3432_s5 }
  0xe4   : > { %4127 = dma.done.wait (%p4920_p0), [#allocation9], 512   ;;  %p4921_p1 = pmov %p4920_p0 }
  0xe5   : > { %p4922_p6 = pmov %p4920_p0 }
  0xe6   : > { %4129 = vsyncadd (%p4921_p1), [#allocation9], 4294966784 }
  0xe7   : > { %4131 = dma.done.wait (%p4922_p6), [#allocation12], 512   ;;  %p4923_p3 = pmov %p4920_p0 }
  0xe8   : > { %v4163_v0 = vmov 0.0   ;;  %vm4164_vm0 = vmmov 0   ;;  %vm475_vm1 = vcmask 64512   ;;  %v503_v1 = vld [vmem:[#allocation13] sm:$0xff]  ;;  %v4549_v6 = vld [vmem:[%s4512_s16 + $0x8] sm:$0xff]  ;;  %v4562_v10 = vld [vmem:[%s4512_s16 + $0x10] sm:$0xff] }
  0xe9   : > { %4133 = vsyncadd (%p4923_p3), [#allocation12], 4294966784  ;;  %3556 = vmatprep.subr.mxu0 %v4163_v0  ;;  %3558 = vmatprep.mubr.msk.f32.mxu0 %vm4164_vm0, %v4163_v0  ;;  %v4540_v2 = vld [vmem:[%s372_s24] sm:$0xff]  ;;  %v4565_v11 = vld [vmem:[%s4519_s11 + $0x10] sm:$0xff]  ;;  %v4165_v57 = vmov 1.0   ;;  %s3479_s30 = sshll.u32 %s4228_s28, 4 }
  0xea   : > { %3561 = vmatprep.subr.mxu1 %v4163_v0  ;;  %3563 = vmatprep.mubr.msk.f32.mxu1 %vm4164_vm0, %v4163_v0  ;;  %v501_v3 = vld [vmem:[#allocation10] sm:$0xff]  ;;  %v4559_v9 = vld [vmem:[%s4519_s11 + $0x8] sm:$0xff]  ;;  %v459_v13 = vsub.f32 %v4565_v11, %v4562_v10  ;;  %v4574_v14 = vld [vmem:[%s4512_s16 + $0x18] sm:$0xff]  ;;  %v802_v17 = vmul.f32 %v4549_v6, %v4540_v2  ;;  %v947_v18 = vmul.f32 %v4562_v10, %v4540_v2  ;;  %v486_v44 = vsel %vm475_vm1, %v4540_v2, 0.0  ;;  %s427_s1 = scalar_lea.vmem [#allocation14], %s4508_s15  ;;  %s4814_s14 = scalar_lea.hbm %s4865_s7, %s3479_s30 }
  0xeb   : > { %3557 = vmatpush3.msra.mxu0 %v503_v1  ;;  %v4543_v4 = vld [vmem:[%s4512_s16] sm:$0xff]  ;;  %v451_v12 = vsub.f32 %v4559_v9, %v4549_v6  ;;  %v4577_v15 = vld [vmem:[%s4519_s11 + $0x18] sm:$0xff]  ;;  %v1092_v19 = vmul.f32 %v4574_v14, %v4540_v2  ;;  %v1382_v21 = vmul.f32 %v4559_v9, %v4540_v2  ;;  %v1527_v22 = vmul.f32 %v4565_v11, %v4540_v2  ;;  %v502_v24 = vld [vmem:[#allocation11] sm:$0xff]  ;;  %s3267_s20 = sshll.u32 %s427_s1, 4  ;;  %s3255_s3 = scalar_lea.sflag [#allocation4], %s4508_s15  ;;  %s4816_s20 = int_to_ptr.vmem [resolvable:$true] %s3267_s20 }
  0xec   : > { %v4546_v5 = vld [vmem:[%s4519_s11] sm:$0xff]  ;;  %3559 = vmatmul.mubr.msk.f32.vlgmr.msra.gmra.mrb[0].mxu0 %vm475_vm1, %v4540_v2  ;;  %3566 = vmatprep.subr.mxu0 %v4163_v0  ;;  %v654_v8 = vmul.f32 %v4540_v2, %v4543_v4  ;;  %v467_v16 = vsub.f32 %v4577_v15, %v4574_v14  ;;  %v1672_v23 = vmul.f32 %v4577_v15, %v4540_v2  ;;  %v500_v27 = vld [vmem:[#allocation8] sm:$0xff]  ;;  %v487_v45 = vrot.slane %v486_v44, 4  ;;  %v1881_v46 = vld [vmem:[#allocation13 + $0x8] sm:$0xff]  ;;  %s4074_s8 = scalar_lea.vmem %s4816_s20, 16  ;;  %p4924_p2 = scmp.ne.s32.totalorder %s4904_s19, 0 }
  0xed   : > { %v443_v7 = vsub.f32 %v4546_v5, %v4543_v4  ;;  %3567 = vmatpush3.msra.mxu0 %v501_v3  ;;  %3568 = vmatprep.mubr.msk.f32.mxu0 %vm4164_vm0, %v4163_v0  ;;  %v1237_v20 = vmul.f32 %v4540_v2, %v4546_v5  ;;  %v4667_v55 = vld [vmem:[#allocation10 + $0x8] sm:$0xff]  ;;  %vm3252_vm4 = vcmask 0   ;;  %p4075_p5 = scmp.ne.s32.totalorder %s4816_s20, %s4074_s8  ;;  %s4166_s28 = smov [#allocation14]  }
  0xee   : > { %3576 = vmatprep.subr.mxu0 %v4163_v0  ;;  %v488_v47 = vadd.f32 %v487_v45, %v486_v44  ;;  %v468_v4 = vand.u32 2147483647, %v467_v16  ;;  %s4078_s13 = sshll.u32 %s4166_s28, 4  ;;  %s4079_s13 = int_to_ptr.vmem [resolvable:$false] %s4078_s13 }
  0xef   : > { %p4076_p4 = pnand %p4075_p5, %p4924_p2  ;;  %s4080_s22 = scalar_lea.vmem %s4079_s13, 32 }
  0xf0   : > { %3569 = vmatmul.mubr.msk.f32.vlgmr.msra.gmra.mrb[2].mxu0 %vm475_vm1, %v654_v8  ;;  %v489_v48 = vrot.slane %v488_v47, 2  ;;  %p4081_p13 = scmp.lt.s32.totalorder %s4816_s20, %s4079_s13  ;;  %p4082_p7 = scmp.lt.s32.totalorder %s4080_s22, %s4074_s8 }
  0xf1   : > { %3577 = vmatpush3.msra.mxu0 %v501_v3  ;;  %3578 = vmatprep.mubr.msk.f32.mxu0 %vm4164_vm0, %v4163_v0  ;;  %p4077_p11 = pneg %p4076_p4 }
  0xf2   : > { %3586 = vmatprep.subr.mxu0 %v4163_v0  ;;  %v490_v49 = vadd.f32 %v489_v48, %v488_v47  ;;  %p4083_p9 = por %p4082_p7, %p4081_p13 }
  0xf4   : > { %3579 = vmatmul.mubr.msk.f32.vlgmr.msra.gmra.mrb[4].mxu0 %vm475_vm1, %v802_v17  ;;  %v491_v50 = vrot.slane %v490_v49, 1  ;;  %p4084_p12 = pnand %p4083_p9, %p4077_p11 }
  0xf5   : > { %3587 = vmatpush3.msra.mxu0 %v501_v3  ;;  %3588 = vmatprep.mubr.msk.f32.mxu0 %vm4164_vm0, %v4163_v0 }
  0xf6   : > { %3596 = vmatprep.subr.mxu0 %v4163_v0  ;;  %v492_v51 = vadd.f32 %v491_v50, %v490_v49 }
  0xf8   : > { %3589 = vmatmul.mubr.msk.f32.vlgmr.msra.gmra.mrb[6].mxu0 %vm475_vm1, %v947_v18  ;;  %v493_v52 = vsel %vm475_vm1, %v492_v51, 0.0 }
  0xf9   : > { %3597 = vmatpush3.msra.mxu0 %v501_v3  ;;  %3598 = vmatprep.mubr.msk.f32.mxu0 %vm4164_vm0, %v4163_v0 }
  0xfa   : > { %3606 = vmatprep.subr.mxu0 %v4163_v0  ;;  %494 = vadd.xlane.f32.xlu0 %v493_v52 }
  0xfc   : > { %3599 = vmatmul.mubr.msk.f32.vlgmr.msra.gmra.mrb[8].mxu0 %vm475_vm1, %v1092_v19 }
  0xfd   : > { %3607 = vmatpush3.msra.mxu0 %v501_v3  ;;  %3608 = vmatprep.mubr.msk.f32.mxu0 %vm4164_vm0, %v4163_v0 }
  0xfe   : > { %3616 = vmatprep.subr.mxu0 %v4163_v0 }
 0x100   : > { %3609 = vmatmul.mubr.msk.f32.vlgmr.msra.gmra.mrb[10].mxu0 %vm475_vm1, %v1237_v20 }
 0x101   : > { %3617 = vmatpush3.msra.mxu0 %v501_v3  ;;  %3618 = vmatprep.mubr.msk.f32.mxu0 %vm4164_vm0, %v4163_v0 }
 0x102   : > { %3626 = vmatprep.subr.mxu0 %v4163_v0 }
 0x104   : > { %3619 = vmatmul.mubr.msk.f32.vlgmr.msra.gmra.mrb[12].mxu0 %vm475_vm1, %v1382_v21 }
 0x105   : > { %3627 = vmatpush3.msra.mxu0 %v501_v3  ;;  %3628 = vmatprep.mubr.msk.f32.mxu0 %vm4164_vm0, %v4163_v0 }
 0x106   : > { %3636 = vmatprep.subr.mxu0 %v4163_v0 }
 0x108   : > { %3629 = vmatmul.mubr.msk.f32.vlgmr.msra.gmra.mrb[14].mxu0 %vm475_vm1, %v1527_v22 }
 0x109   : > { %3637 = vmatpush3.msra.mxu0 %v501_v3  ;;  %3638 = vmatprep.mubr.msk.f32.mxu0 %vm4164_vm0, %v4163_v0 }
 0x10a   : > { %3646 = vmatprep.subr.mxu0 %v4163_v0 }
 0x10c   : > { %3639 = vmatmul.mubr.msk.f32.vlgmr.msra.gmra.mrb[16].mxu0 %vm475_vm1, %v1672_v23 }
 0x10d   : > { %3648 = vmatprep.mubr.msk.f32.mxu0 %vm4164_vm0, %v4163_v0  ;;  %3647 = vmatpush3.msra.mxu0 %v1881_v46 }
 0x10e   : > { %3656 = vmatprep.subr.mxu0 %v4163_v0 }
 0x1bf   : > { %v573_v25 = vpop.f32.mrb[0].mxu0 }
 0x1c0   : > { %v3560_v26 = vpop.f32.mrb[1].mxu0  ;;  %3562 = vmatpush3.msra.mxu1 %v573_v25 }
 0x1c1   : > { %3564 = vmatmul.mubr.msk.f32.vlgmr.msra.gmra.mrb[0].mxu1 %vm475_vm1, %v502_v24  ;;  %3571 = vmatprep.subr.mxu1 %v4163_v0 }
 0x1c2   : > { %3573 = vmatprep.mubr.msk.f32.mxu1 %vm4164_vm0, %v4163_v0 }
 0x1c3   : > { %v724_v28 = vpop.f32.mrb[2].mxu0 }
 0x1c4   : > { %3572 = vmatpush3.msra.mxu1 %v724_v28  ;;  %v3570_v29 = vpop.f32.mrb[3].mxu0 }
 0x1c5   : > { %3574 = vmatmul.mubr.msk.f32.vlgmr.msra.gmra.mrb[2].mxu1 %vm475_vm1, %v500_v27  ;;  %3581 = vmatprep.subr.mxu1 %v4163_v0 }
 0x1c6   : > { %3583 = vmatprep.mubr.msk.f32.mxu1 %vm4164_vm0, %v4163_v0 }
 0x1c7   : > { %v872_v30 = vpop.f32.mrb[4].mxu0 }
 0x1c8   : > { %3582 = vmatpush3.msra.mxu1 %v872_v30  ;;  %v3580_v31 = vpop.f32.mrb[5].mxu0 }
 0x1c9   : > { %3584 = vmatmul.mubr.msk.f32.vlgmr.msra.gmra.mrb[4].mxu1 %vm475_vm1, %v500_v27  ;;  %3591 = vmatprep.subr.mxu1 %v4163_v0 }
 0x1ca   : > { %3593 = vmatprep.mubr.msk.f32.mxu1 %vm4164_vm0, %v4163_v0 }
 0x1cb   : > { %v1017_v32 = vpop.f32.mrb[6].mxu0 }
 0x1cc   : > { %3592 = vmatpush3.msra.mxu1 %v1017_v32  ;;  %v3590_v33 = vpop.f32.mrb[7].mxu0 }
 0x1cd   : > { %3594 = vmatmul.mubr.msk.f32.vlgmr.msra.gmra.mrb[6].mxu1 %vm475_vm1, %v500_v27  ;;  %3601 = vmatprep.subr.mxu1 %v4163_v0 }
 0x1ce   : > { %3603 = vmatprep.mubr.msk.f32.mxu1 %vm4164_vm0, %v4163_v0 }
 0x1cf   : > { %v1162_v34 = vpop.f32.mrb[8].mxu0 }
 0x1d0   : > { %3602 = vmatpush3.msra.mxu1 %v1162_v34  ;;  %v3600_v35 = vpop.f32.mrb[9].mxu0 }
 0x1d1   : > { %3604 = vmatmul.mubr.msk.f32.vlgmr.msra.gmra.mrb[8].mxu1 %vm475_vm1, %v500_v27  ;;  %3611 = vmatprep.subr.mxu1 %v4163_v0 }
 0x1d2   : > { %3613 = vmatprep.mubr.msk.f32.mxu1 %vm4164_vm0, %v4163_v0 }
 0x1d3   : > { %v1307_v36 = vpop.f32.mrb[10].mxu0 }
 0x1d4   : > { %3612 = vmatpush3.msra.mxu1 %v1307_v36  ;;  %v3610_v37 = vpop.f32.mrb[11].mxu0 }
 0x1d5   : > { %3614 = vmatmul.mubr.msk.f32.vlgmr.msra.gmra.mrb[10].mxu1 %vm475_vm1, %v500_v27  ;;  %3621 = vmatprep.subr.mxu1 %v4163_v0 }
 0x1d6   : > { %3623 = vmatprep.mubr.msk.f32.mxu1 %vm4164_vm0, %v4163_v0 }
 0x1d7   : > { %v1452_v38 = vpop.f32.mrb[12].mxu0 }
 0x1d8   : > { %3622 = vmatpush3.msra.mxu1 %v1452_v38  ;;  %v3620_v39 = vpop.f32.mrb[13].mxu0 }
 0x1d9   : > { %3624 = vmatmul.mubr.msk.f32.vlgmr.msra.gmra.mrb[12].mxu1 %vm475_vm1, %v500_v27  ;;  %3631 = vmatprep.subr.mxu1 %v4163_v0 }
 0x1da   : > { %3633 = vmatprep.mubr.msk.f32.mxu1 %vm4164_vm0, %v4163_v0 }
 0x1db   : > { %v1597_v40 = vpop.f32.mrb[14].mxu0 }
 0x1dc   : > { %3632 = vmatpush3.msra.mxu1 %v1597_v40  ;;  %v3630_v41 = vpop.f32.mrb[15].mxu0 }
 0x1dd   : > { %3634 = vmatmul.mubr.msk.f32.vlgmr.msra.gmra.mrb[14].mxu1 %vm475_vm1, %v500_v27  ;;  %3641 = vmatprep.subr.mxu1 %v4163_v0 }
 0x1de   : > { %3643 = vmatprep.mubr.msk.f32.mxu1 %vm4164_vm0, %v4163_v0 }
 0x1df   : > { %v1742_v42 = vpop.f32.mrb[16].mxu0 }
 0x1e0   : > { %3642 = vmatpush3.msra.mxu1 %v1742_v42  ;;  %v3640_v43 = vpop.f32.mrb[17].mxu0 }
 0x1e1   : > { %3644 = vmatmul.mubr.msk.f32.vlgmr.msra.gmra.mrb[16].mxu1 %vm475_vm1, %v500_v27  ;;  %3651 = vmatprep.subr.mxu1 %v4163_v0 }
 0x1e2   : > { %3653 = vmatprep.mubr.msk.f32.mxu1 %vm4164_vm0, %v4163_v0 }
 0x294   : > { %v646_v53 = vpop.f32.mrb[0].mxu1 }
 0x295   : > { %vm650_vm2 = vcmp.eq.f32.partialorder %v646_v53, 0.0  ;;  %v3565_v54 = vpop.f32.mrb[1].mxu1 }
 0x296   : > { %v651_v56 = vsel %vm650_vm2, 1.0, %v646_v53  ;;  %v4670_v58 = vsel %vm650_vm2, 0.0, %v4165_v57 }
 0x297   : > { %3838 = vrcp.f32 %v651_v56  ;;  %3649 = vmatmul.mubr.msk.f32.vlgmr.msra.gmra.mrb[18].mxu0 %vm475_vm1, %v4670_v58  ;;  %v1860_v59 = vsel %vm475_vm1, %v4670_v58, 0.0 }
 0x298   : > { %v797_v60 = vpop.f32.mrb[2].mxu1  ;;  %v1861_v61 = vrot.slane %v1860_v59, 4  ;;  %3657 = vmatpush3.msra.mxu0 %v4667_v55  ;;  %3658 = vmatprep.mubr.msk.f32.mxu0 %vm4164_vm0, %v4163_v0 }
 0x299   : > { %v3575_v62 = vpop.f32.mrb[3].mxu1  ;;  %3666 = vmatprep.subr.mxu0 %v4163_v0 }
 0x29a   : > { %v1862_v63 = vadd.f32 %v1861_v61, %v1860_v59 }
 0x29c   : > { %v942_v1 = vpop.f32.mrb[4].mxu1  ;;  %v1863_v3 = vrot.slane %v1862_v63, 2 }
 0x29d   : > { %v3585_v8 = vpop.f32.mrb[5].mxu1 }
 0x29e   : > { %v1864_v17 = vadd.f32 %v1863_v3, %v1862_v63 }
 0x2a0   : > { %v1087_v18 = vpop.f32.mrb[6].mxu1  ;;  %v1865_v19 = vrot.slane %v1864_v17, 1 }
 0x2a1   : > { %v3839_v20 = vpop.eup %3838  ;;  %v3595_v21 = vpop.f32.mrb[7].mxu1 }
 0x2a2   : > { %v653_v22 = vmul.f32 9.0, %v3839_v20  ;;  %v1866_v23 = vadd.f32 %v1865_v19, %v1864_v17 }
 0x2a4   : > { %v801_v24 = vmul.f32 %v797_v60, %v653_v22  ;;  %v946_v25 = vmul.f32 %v942_v1, %v653_v22  ;;  %v1091_v26 = vmul.f32 %v1087_v18, %v653_v22  ;;  %v1232_v27 = vpop.f32.mrb[8].mxu1  ;;  %v1867_v28 = vsel %vm475_vm1, %v1866_v23, 0.0 }
 0x2a5   : > { %v1236_v29 = vmul.f32 %v1232_v27, %v653_v22  ;;  %1868 = vadd.xlane.f32.xlu0 %v1867_v28  ;;  %v3605_v30 = vpop.f32.mrb[9].mxu1 }
 0x2a6   : > { %v2032_v31 = vmul.f32 %v4670_v58, %v801_v24  ;;  %v2180_v32 = vmul.f32 %v4670_v58, %v946_v25  ;;  %v2325_v33 = vmul.f32 %v4670_v58, %v1091_v26 }
 0x2a7   : > { %v2470_v34 = vmul.f32 %v4670_v58, %v1236_v29 }
 0x2a8   : > { %v1377_v35 = vpop.f32.mrb[10].mxu1  ;;  %3659 = vmatmul.mubr.msk.f32.vlgmr.msra.gmra.mrb[20].mxu0 %vm475_vm1, %v2032_v31 }
 0x2a9   : > { %v1381_v36 = vmul.f32 %v1377_v35, %v653_v22  ;;  %v3615_v37 = vpop.f32.mrb[11].mxu1  ;;  %3667 = vmatpush3.msra.mxu0 %v4667_v55  ;;  %3668 = vmatprep.mubr.msk.f32.mxu0 %vm4164_vm0, %v4163_v0 }
 0x2aa   : > { %3676 = vmatprep.subr.mxu0 %v4163_v0 }
 0x2ab   : > { %v1818_v38 = vsub.f32 %v1381_v36, %v801_v24  ;;  %v1821_v39 = vadd.f32 1e-11, %v1381_v36  ;;  %v2615_v40 = vmul.f32 %v4670_v58, %v1381_v36 }
 0x2ac   : > { %v1522_v41 = vpop.f32.mrb[12].mxu1  ;;  %3669 = vmatmul.mubr.msk.f32.vlgmr.msra.gmra.mrb[22].mxu0 %vm475_vm1, %v2180_v32 }
 0x2ad   : > { %v1819_v42 = vand.u32 2147483647, %v1818_v38  ;;  %3840 = vrcp.f32 %v1821_v39  ;;  %v1526_v43 = vmul.f32 %v1522_v41, %v653_v22  ;;  %v3625_v44 = vpop.f32.mrb[13].mxu1  ;;  %3677 = vmatpush3.msra.mxu0 %v4667_v55  ;;  %3678 = vmatprep.mubr.msk.f32.mxu0 %vm4164_vm0, %v4163_v0 }
 0x2ae   : > { %3686 = vmatprep.subr.mxu0 %v4163_v0 }
 0x2af   : > { %v1820_v45 = vmul.f32 %v1819_v42, %v4670_v58  ;;  %v1826_v46 = vsub.f32 %v1526_v43, %v946_v25  ;;  %v1829_v47 = vadd.f32 1e-11, %v1526_v43  ;;  %v2760_v48 = vmul.f32 %v4670_v58, %v1526_v43  ;;  %v1879_v42 = vld [vmem:[#allocation11 + $0x8] sm:$0xff] }
 0x2b0   : > { %v1667_v49 = vpop.f32.mrb[14].mxu1  ;;  %3679 = vmatmul.mubr.msk.f32.vlgmr.msra.gmra.mrb[24].mxu0 %vm475_vm1, %v2325_v33 }
 0x2b1   : > { %v1827_v50 = vand.u32 2147483647, %v1826_v46  ;;  %3842 = vrcp.f32 %v1829_v47  ;;  %v1671_v51 = vmul.f32 %v1667_v49, %v653_v22  ;;  %v3635_v52 = vpop.f32.mrb[15].mxu1  ;;  %3687 = vmatpush3.msra.mxu0 %v4667_v55  ;;  %3688 = vmatprep.mubr.msk.f32.mxu0 %vm4164_vm0, %v4163_v0 }
 0x2b2   : > { %3696 = vmatprep.subr.mxu0 %v4163_v0 }
 0x2b3   : > { %v1828_v53 = vmul.f32 %v1827_v50, %v4670_v58  ;;  %v1834_v54 = vsub.f32 %v1671_v51, %v1091_v26  ;;  %v1837_v56 = vadd.f32 1e-11, %v1671_v51  ;;  %v2905_v59 = vmul.f32 %v4670_v58, %v1671_v51 }
 0x2b4   : > { %v1812_v60 = vpop.f32.mrb[16].mxu1  ;;  %3689 = vmatmul.mubr.msk.f32.vlgmr.msra.gmra.mrb[26].mxu0 %vm475_vm1, %v2470_v34 }
 0x2b5   : > { %v1835_v61 = vand.u32 2147483647, %v1834_v54  ;;  %3844 = vrcp.f32 %v1837_v56  ;;  %v1816_v62 = vmul.f32 %v1812_v60, %v653_v22  ;;  %3697 = vmatpush3.msra.mxu0 %v4667_v55  ;;  %3698 = vmatprep.mubr.msk.f32.mxu0 %vm4164_vm0, %v4163_v0  ;;  %v3645_v63 = vpop.f32.mrb[17].mxu1 }
 0x2b6   : > { %3706 = vmatprep.subr.mxu0 %v4163_v0 }
 0x2b7   : > { %v3841_v1 = vpop.eup %3840  ;;  %v1836_v3 = vmul.f32 %v1835_v61, %v4670_v58  ;;  %v1842_v8 = vsub.f32 %v1816_v62, %v1236_v29  ;;  %v1845_v17 = vadd.f32 1e-11, %v1816_v62  ;;  %v3050_v18 = vmul.f32 %v4670_v58, %v1816_v62 }
 0x2b8   : > { %v1823_v19 = vmul.f32 %v3841_v1, %v1820_v45  ;;  %3699 = vmatmul.mubr.msk.f32.vlgmr.msra.gmra.mrb[28].mxu0 %vm475_vm1, %v2615_v40  ;;  %v446_v1 = vadd.f32 1e-11, %v4546_v5 }
 0x2b9   : > { %v1843_v20 = vand.u32 2147483647, %v1842_v8  ;;  %3846 = vrcp.f32 %v1845_v17  ;;  %3707 = vmatpush3.msra.mxu0 %v4667_v55  ;;  %3708 = vmatprep.mubr.msk.f32.mxu0 %vm4164_vm0, %v4163_v0  ;;  %v462_v8 = vadd.f32 1e-11, %v4565_v11  ;;  %v470_v17 = vadd.f32 1e-11, %v4577_v15 }
 0x2ba   : > { %v1824_v21 = vmul.f32 %v1823_v19, %v4670_v58  ;;  %3716 = vmatprep.subr.mxu0 %v4163_v0  ;;  %3848 = vrcp.f32 %v446_v1  ;;  %v460_v19 = vand.u32 2147483647, %v459_v13  ;;  %v469_v13 = vmul.f32 %v468_v4, %v4540_v2 }
 0x2bb   : > { %v3843_v22 = vpop.eup %3842  ;;  %v1844_v23 = vmul.f32 %v1843_v20, %v4670_v58 }
 0x2bc   : > { %v1831_v24 = vmul.f32 %v3843_v22, %v1828_v53  ;;  %3709 = vmatmul.mubr.msk.f32.vlgmr.msra.gmra.mrb[30].mxu0 %vm475_vm1, %v2760_v48 }
 0x2bd   : > { %3717 = vmatpush3.msra.mxu0 %v4667_v55  ;;  %3718 = vmatprep.mubr.msk.f32.mxu0 %vm4164_vm0, %v4163_v0 }
 0x2be   : > { %v1832_v25 = vmul.f32 %v1831_v24, %v4670_v58  ;;  %3726 = vmatprep.subr.mxu0 %v4163_v0  ;;  %v461_v24 = vmul.f32 %v460_v19, %v4540_v2 }
 0x2bf   : > { %v3845_v26 = vpop.eup %3844 }
 0x2c0   : > { %v1839_v27 = vmul.f32 %v3845_v26, %v1836_v3  ;;  %3719 = vmatmul.mubr.msk.f32.vlgmr.msra.gmra.mrb[32].mxu0 %vm475_vm1, %v2905_v59  ;;  %v1833_v28 = vadd.f32 %v1832_v25, %v1824_v21  ;;  %v454_v3 = vadd.f32 1e-11, %v4559_v9 }
 0x2c1   : > { %3727 = vmatpush3.msra.mxu0 %v4667_v55  ;;  %3728 = vmatprep.mubr.msk.f32.mxu0 %vm4164_vm0, %v4163_v0 }
 0x2c2   : > { %v1840_v29 = vmul.f32 %v1839_v27, %v4670_v58  ;;  %3850 = vrcp.f32 %v454_v3 }
 0x2c3   : > { %v3847_v30 = vpop.eup %3846  ;;  %3852 = vrcp.f32 %v462_v8 }
 0x2c4   : > { %v1847_v31 = vmul.f32 %v3847_v30, %v1844_v23  ;;  %3729 = vmatmul.mubr.msk.f32.vlgmr.msra.gmra.mrb[34].mxu0 %vm475_vm1, %v3050_v18  ;;  %v1841_v32 = vadd.f32 %v1840_v29, %v1833_v28  ;;  %3854 = vrcp.f32 %v470_v17  ;;  %v452_v18 = vand.u32 2147483647, %v451_v12  ;;  %v3849_v20 = vpop.eup %3848 }
 0x2c6   : > { %v1848_v33 = vmul.f32 %v1847_v31, %v4670_v58  ;;  %v1875_v58 = vld [vmem:[#allocation8 + $0x8] sm:$0xff]  ;;  %v453_v22 = vmul.f32 %v452_v18, %v4540_v2 }
 0x2c8   : > { %v1849_v34 = vadd.f32 %v1848_v33, %v1841_v32 }
 0x2ca   : > { %v1850_v35 = vsel %vm475_vm1, %v1849_v34, 0.0 }
 0x2cb   : > { %v1851_v36 = vrot.slane %v1850_v35, 4 }
 0x2cc   : > { %v3851_v23 = vpop.eup %3850 }
 0x2cd   : > { %v1852_v37 = vadd.f32 %v1851_v36, %v1850_v35  ;;  %v3853_v5 = vpop.eup %3852  ;;  %v456_v6 = vmul.f32 %v3851_v23, %v453_v22 }
 0x2ce   : > { %v3855_v9 = vpop.eup %3854  ;;  %v464_v11 = vmul.f32 %v3853_v5, %v461_v24 }
 0x2cf   : > { %v1853_v38 = vrot.slane %v1852_v37, 2  ;;  %v457_v10 = vmul.f32 %v456_v6, %v4540_v2  ;;  %v472_v27 = vmul.f32 %v3855_v9, %v469_v13 }
 0x2d0   : > { %v465_v26 = vmul.f32 %v464_v11, %v4540_v2 }
 0x2d1   : > { %v1854_v39 = vadd.f32 %v1853_v38, %v1852_v37  ;;  %v473_v29 = vmul.f32 %v472_v27, %v4540_v2 }
 0x2d3   : > { %v1855_v55 = vrot.slane %v1854_v39, 1 }
 0x2d5   : > { %v1856_v40 = vadd.f32 %v1855_v55, %v1854_v39 }
 0x2d7   : > { %v1857_v41 = vsel %vm475_vm1, %v1856_v40, 0.0 }
 0x2d8   : > { %1858 = vadd.xlane.f32.xlu0 %v1857_v41 }
 0x36a   : > { %v1951_v43 = vpop.f32.mrb[18].mxu0 }
 0x36b   : > { %v3650_v44 = vpop.f32.mrb[19].mxu0  ;;  %3652 = vmatpush3.msra.mxu1 %v1951_v43 }
 0x36c   : > { %3654 = vmatmul.mubr.msk.f32.vlgmr.msra.gmra.mrb[18].mxu1 %vm475_vm1, %v1879_v42  ;;  %3661 = vmatprep.subr.mxu1 %v4163_v0 }
 0x36d   : > { %3663 = vmatprep.mubr.msk.f32.mxu1 %vm4164_vm0, %v4163_v0 }
 0x37b   : > { %v2102_v45 = vpop.f32.mrb[20].mxu0 }
 0x37c   : > { %v3660_v46 = vpop.f32.mrb[21].mxu0  ;;  %3662 = vmatpush3.msra.mxu1 %v2102_v45 }
 0x37d   : > { %3664 = vmatmul.mubr.msk.f32.vlgmr.msra.gmra.mrb[20].mxu1 %vm475_vm1, %v1875_v58  ;;  %3671 = vmatprep.subr.mxu1 %v4163_v0 }
 0x37e   : > { %3673 = vmatprep.mubr.msk.f32.mxu1 %vm4164_vm0, %v4163_v0 }
 0x37f   : > { %v2250_v47 = vpop.f32.mrb[22].mxu0 }
 0x380   : > { %v3670_v48 = vpop.f32.mrb[23].mxu0  ;;  %3672 = vmatpush3.msra.mxu1 %v2250_v47 }
 0x381   : > { %3674 = vmatmul.mubr.msk.f32.vlgmr.msra.gmra.mrb[22].mxu1 %vm475_vm1, %v1875_v58  ;;  %3681 = vmatprep.subr.mxu1 %v4163_v0 }
 0x382   : > { %3683 = vmatprep.mubr.msk.f32.mxu1 %vm4164_vm0, %v4163_v0 }
 0x383   : > { %v2395_v49 = vpop.f32.mrb[24].mxu0 }
 0x384   : > { %v3680_v50 = vpop.f32.mrb[25].mxu0  ;;  %3682 = vmatpush3.msra.mxu1 %v2395_v49 }
 0x385   : > { %3684 = vmatmul.mubr.msk.f32.vlgmr.msra.gmra.mrb[24].mxu1 %vm475_vm1, %v1875_v58  ;;  %3691 = vmatprep.subr.mxu1 %v4163_v0 }
 0x386   : > { %3693 = vmatprep.mubr.msk.f32.mxu1 %vm4164_vm0, %v4163_v0 }
 0x387   : > { %v2540_v51 = vpop.f32.mrb[26].mxu0 }
 0x388   : > { %v3690_v52 = vpop.f32.mrb[27].mxu0  ;;  %3692 = vmatpush3.msra.mxu1 %v2540_v51 }
 0x389   : > { %3694 = vmatmul.mubr.msk.f32.vlgmr.msra.gmra.mrb[26].mxu1 %vm475_vm1, %v1875_v58  ;;  %3701 = vmatprep.subr.mxu1 %v4163_v0 }
 0x38a   : > { %3703 = vmatprep.mubr.msk.f32.mxu1 %vm4164_vm0, %v4163_v0 }
 0x38b   : > { %v2685_v53 = vpop.f32.mrb[28].mxu0 }
 0x38c   : > { %v3700_v54 = vpop.f32.mrb[29].mxu0  ;;  %3702 = vmatpush3.msra.mxu1 %v2685_v53 }
 0x38d   : > { %3704 = vmatmul.mubr.msk.f32.vlgmr.msra.gmra.mrb[28].mxu1 %vm475_vm1, %v1875_v58  ;;  %3711 = vmatprep.subr.mxu1 %v4163_v0 }
 0x38e   : > { %3713 = vmatprep.mubr.msk.f32.mxu1 %vm4164_vm0, %v4163_v0 }
 0x38f   : > { %v2830_v56 = vpop.f32.mrb[30].mxu0 }
 0x390   : > { %v3710_v59 = vpop.f32.mrb[31].mxu0  ;;  %3712 = vmatpush3.msra.mxu1 %v2830_v56 }
 0x391   : > { %3714 = vmatmul.mubr.msk.f32.vlgmr.msra.gmra.mrb[30].mxu1 %vm475_vm1, %v1875_v58  ;;  %3721 = vmatprep.subr.mxu1 %v4163_v0 }
 0x392   : > { %3723 = vmatprep.mubr.msk.f32.mxu1 %vm4164_vm0, %v4163_v0 }
 0x393   : > { %v2975_v60 = vpop.f32.mrb[32].mxu0 }
 0x394   : > { %v3720_v61 = vpop.f32.mrb[33].mxu0  ;;  %3722 = vmatpush3.msra.mxu1 %v2975_v60 }
 0x395   : > { %3724 = vmatmul.mubr.msk.f32.vlgmr.msra.gmra.mrb[32].mxu1 %vm475_vm1, %v1875_v58  ;;  %3731 = vmatprep.subr.mxu1 %v4163_v0 }
 0x396   : > { %3733 = vmatprep.mubr.msk.f32.mxu1 %vm4164_vm0, %v4163_v0  ;;  %v444_v0 = vand.u32 2147483647, %v443_v7 }
 0x397   : > { %v3120_v62 = vpop.f32.mrb[34].mxu0 }
 0x398   : > { %v3730_v63 = vpop.f32.mrb[35].mxu0  ;;  %3732 = vmatpush3.msra.mxu1 %v3120_v62  ;;  %v445_v21 = vmul.f32 %v444_v0, %v4540_v2 }
 0x399   : > { %3734 = vmatmul.mubr.msk.f32.vlgmr.msra.gmra.mrb[34].mxu1 %vm475_vm1, %v1875_v58 }
 0x39a   : > { %v448_v7 = vmul.f32 %v3849_v20, %v445_v21 }
 0x39c   : > { %v449_v12 = vmul.f32 %v448_v7, %v4540_v2 }
 0x39e   : > { %v458_v25 = vadd.f32 %v457_v10, %v449_v12 }
 0x3a0   : > { %v466_v28 = vadd.f32 %v465_v26, %v458_v25 }
 0x3a2   : > { %v474_v14 = vadd.f32 %v473_v29, %v466_v28 }
 0x3a4   : > { %v476_v15 = vsel %vm475_vm1, %v474_v14, 0.0 }
 0x3a5   : > { %v477_v16 = vrot.slane %v476_v15, 4 }
 0x3a7   : > { %v478_v30 = vadd.f32 %v477_v16, %v476_v15 }
 0x3a9   : > { %v479_v35 = vrot.slane %v478_v30, 2 }
 0x3ab   : > { %v480_v2 = vadd.f32 %v479_v35, %v478_v30 }
 0x3ad   : > { %v481_v40 = vrot.slane %v480_v2, 1 }
 0x3af   : > { %v482_v58 = vadd.f32 %v481_v40, %v480_v2 }
 0x3b1   : > { %v483_v48 = vsel %vm475_vm1, %v482_v58, 0.0 }
 0x43f   : > { %v2024_v31 = vpop.f32.mrb[18].mxu1 }
 0x440   : > { %vm2028_vm3 = vcmp.eq.f32.partialorder %v2024_v31, 0.0  ;;  %v3655_v32 = vpop.f32.mrb[19].mxu1 }
 0x441   : > { %v2029_v33 = vsel %vm2028_vm3, 1.0, %v2024_v31  ;;  %v4793_v34 = vsel %vm2028_vm3, 0.0, %v4165_v57 }
 0x442   : > { %3856 = vrcp.f32 %v2029_v33  ;;  %v3238_v36 = vsel %vm475_vm1, %v4793_v34, 0.0 }
 0x443   : > { %v3239_v37 = vrot.slane %v3238_v36, 4 }
 0x445   : > { %v3240_v38 = vadd.f32 %v3239_v37, %v3238_v36 }
 0x447   : > { %v3241_v39 = vrot.slane %v3240_v38, 2 }
 0x449   : > { %v3242_v55 = vadd.f32 %v3241_v39, %v3240_v38 }
 0x44b   : > { %v3243_v41 = vrot.slane %v3242_v55, 1 }
 0x44c   : > { %v3857_v42 = vpop.eup %3856 }
 0x44d   : > { %v2031_v43 = vmul.f32 9.0, %v3857_v42  ;;  %v3244_v44 = vadd.f32 %v3243_v41, %v3242_v55 }
 0x44f   : > { %v3245_v45 = vsel %vm475_vm1, %v3244_v44, 0.0 }
 0x450   : > { %3246 = vadd.xlane.f32.xlu1 %v3245_v45  ;;  %v2175_v57 = vpop.f32.mrb[20].mxu1 }
 0x451   : > { %v2179_v46 = vmul.f32 %v2175_v57, %v2031_v43  ;;  %v3665_v47 = vpop.f32.mrb[21].mxu1 }
 0x454   : > { %484 = vadd.xlane.f32.xlu1 %v483_v48  ;;  %v2320_v49 = vpop.f32.mrb[22].mxu1 }
 0x455   : > { %v2324_v50 = vmul.f32 %v2320_v49, %v2031_v43  ;;  %v3675_v51 = vpop.f32.mrb[23].mxu1 }
 0x458   : > { %v2465_v52 = vpop.f32.mrb[24].mxu1 }
 0x459   : > { %v2469_v53 = vmul.f32 %v2465_v52, %v2031_v43  ;;  %v3685_v54 = vpop.f32.mrb[25].mxu1 }
 0x45c   : > { %v2610_v56 = vpop.f32.mrb[26].mxu1 }
 0x45d   : > { %v2614_v59 = vmul.f32 %v2610_v56, %v2031_v43  ;;  %v3695_v60 = vpop.f32.mrb[27].mxu1 }
 0x460   : > { %v2755_v61 = vpop.f32.mrb[28].mxu1 }
 0x461   : > { %v2759_v62 = vmul.f32 %v2755_v61, %v2031_v43  ;;  %v3705_v63 = vpop.f32.mrb[29].mxu1 }
 0x463   : > { %v3196_v1 = vsub.f32 %v2759_v62, %v2179_v46  ;;  %v3199_v3 = vadd.f32 1e-11, %v2759_v62  ;;  %v495_v46 = vpop.xlane.xlu0 %494 }
 0x464   : > { %v2900_v8 = vpop.f32.mrb[30].mxu1  ;;  %v496_v47 = vadd.f32 1e-08, %v495_v46 }
 0x465   : > { %v3197_v17 = vand.u32 2147483647, %v3196_v1  ;;  %3858 = vrcp.f32 %v3199_v3  ;;  %v2904_v0 = vmul.f32 %v2900_v8, %v2031_v43  ;;  %v3715_v18 = vpop.f32.mrb[31].mxu1 }
 0x467   : > { %v3198_v19 = vmul.f32 %v3197_v17, %v4793_v34  ;;  %v3204_v20 = vsub.f32 %v2904_v0, %v2324_v50  ;;  %v3207_v21 = vadd.f32 1e-11, %v2904_v0  ;;  %v1869_v48 = vpop.xlane.xlu0 %1868 }
 0x468   : > { %v3045_v22 = vpop.f32.mrb[32].mxu1  ;;  %v1870_v49 = vadd.f32 1e-08, %v1869_v48 }
 0x469   : > { %v3205_v23 = vand.u32 2147483647, %v3204_v20  ;;  %3860 = vrcp.f32 %v3207_v21  ;;  %v3049_v24 = vmul.f32 %v3045_v22, %v2031_v43  ;;  %v3725_v4 = vpop.f32.mrb[33].mxu1 }
 0x46b   : > { %v3206_v5 = vmul.f32 %v3205_v23, %v4793_v34  ;;  %v3212_v7 = vsub.f32 %v3049_v24, %v2469_v53  ;;  %v3215_v6 = vadd.f32 1e-11, %v3049_v24  ;;  %v1859_v53 = vpop.xlane.xlu0 %1858 }
 0x46c   : > { %v3190_v9 = vpop.f32.mrb[34].mxu1 }
 0x46d   : > { %v3213_v12 = vand.u32 2147483647, %v3212_v7  ;;  %3862 = vrcp.f32 %v3215_v6  ;;  %v3194_v10 = vmul.f32 %v3190_v9, %v2031_v43  ;;  %v3735_v11 = vpop.f32.mrb[35].mxu1 }
 0x46f   : > { %v3859_v13 = vpop.eup %3858  ;;  %v3214_v25 = vmul.f32 %v3213_v12, %v4793_v34  ;;  %v3220_v26 = vsub.f32 %v3194_v10, %v2614_v59  ;;  %v3223_v27 = vadd.f32 1e-11, %v3194_v10 }
 0x470   : > { %v3201_v28 = vmul.f32 %v3859_v13, %v3198_v19 }
 0x471   : > { %v3221_v29 = vand.u32 2147483647, %v3220_v26  ;;  %3864 = vrcp.f32 %v3223_v27 }
 0x472   : > { %v3202_v14 = vmul.f32 %v3201_v28, %v4793_v34  ;;  %3866 = vrcp.f32 %v496_v47 }
 0x473   : > { %v3861_v15 = vpop.eup %3860  ;;  %v3222_v16 = vmul.f32 %v3221_v29, %v4793_v34  ;;  %3868 = vrcp.f32 %v1870_v49 }
 0x474   : > { %v3209_v30 = vmul.f32 %v3861_v15, %v3206_v5 }
 0x476   : > { %v3210_v31 = vmul.f32 %v3209_v30, %v4793_v34 }
 0x477   : > { %v3863_v32 = vpop.eup %3862 }
 0x478   : > { %v3211_v33 = vadd.f32 %v3210_v31, %v3202_v14  ;;  %v3217_v35 = vmul.f32 %v3863_v32, %v3214_v25 }
 0x47a   : > { %v3218_v36 = vmul.f32 %v3217_v35, %v4793_v34 }
 0x47b   : > { %v3865_v37 = vpop.eup %3864 }
 0x47c   : > { %v3219_v38 = vadd.f32 %v3218_v36, %v3211_v33  ;;  %v3225_v2 = vmul.f32 %v3865_v37, %v3222_v16  ;;  %v3867_v51 = vpop.eup %3866 }
 0x47d   : > { %v3869_v56 = vpop.eup %3868 }
 0x47e   : > { %v3226_v39 = vmul.f32 %v3225_v2, %v4793_v34  ;;  %v1872_v59 = vmul.f32 %v3869_v56, %v1859_v53 }
 0x480   : > { %v3227_v55 = vadd.f32 %v3226_v39, %v3219_v38 }
 0x482   : > { %v3228_v40 = vsel %vm475_vm1, %v3227_v55, 0.0 }
 0x483   : > { %v3229_v41 = vrot.slane %v3228_v40, 4 }
 0x485   : > { %v3230_v42 = vadd.f32 %v3229_v41, %v3228_v40 }
 0x487   : > { %v3231_v43 = vrot.slane %v3230_v42, 2 }
 0x489   : > { %v3232_v44 = vadd.f32 %v3231_v43, %v3230_v42 }
 0x48b   : > { %v3233_v58 = vrot.slane %v3232_v44, 1 }
 0x48d   : > { %v3234_v45 = vadd.f32 %v3233_v58, %v3232_v44 }
 0x48f   : > { %v3235_v57 = vsel %vm475_vm1, %v3234_v45, 0.0 }
 0x490   : > { %3236 = vadd.xlane.f32.xlu1 %v3235_v57 }
 0x4dd   : > { %v3247_v34 = vpop.xlane.xlu1 %3246 }
 0x4de   : > { %v3248_v50 = vadd.f32 1e-08, %v3247_v34 }
 0x4e0   : > { %3870 = vrcp.f32 %v3248_v50 }
 0x4e1   : > { %v485_v52 = vpop.xlane.xlu1 %484 }
 0x4e2   : > { %v498_v54 = vmul.f32 %v3867_v51, %v485_v52 }
 0x4e4   : > { %v1873_v62 = vadd.f32 %v1872_v59, %v498_v54 }
 0x4ea   : > { %v3871_v60 = vpop.eup %3870 }
 0x51d   : > { %v3237_v61 = vpop.xlane.xlu1 %3236 }
 0x51e   : > { %v3250_v63 = vmul.f32 %v3871_v60, %v3237_v61 }
 0x520   : > { %v3251_v1 = vadd.f32 %v3250_v63, %v1873_v62 }
 0x522   : > { %3253 = vst.msk [vmem:[%s427_s1] sm:$0x1] %vm3252_vm4, %v3251_v1 }
 0x523   : > { %4087 = shalt.err (!%p4084_p12)
}
 0x524   : > { %s4088_s17 = scalar_lea.hbm %s4814_s14, 16  ;;  %s4092_s15 = scalar_lea.hbm %s4865_s7, 32 }
 0x525   : > { %p4089_p10 = scmp.ne.s32.totalorder %s4814_s14, %s4088_s17  ;;  %p4093_p1 = scmp.lt.u32.totalorder %s4814_s14, %s4865_s7 }
 0x526   : > { %p4094_p6 = scmp.lt.u32.totalorder %s4092_s15, %s4088_s17  ;;  %p4096_p5 = scmp.lt.u32.totalorder %s4088_s17, %s4814_s14 }
 0x527   : > { %p4090_p8 = pnand %p4089_p10, %p4924_p2 }
 0x528   : > { %p4095_p3 = por %p4094_p6, %p4093_p1 }
 0x529   : > { %p4091_p0 = pneg %p4090_p8 }
 0x52a   : > { %p4097_p4 = por %p4096_p5, %p4095_p3 }
 0x52c   : > { %p4098_p11 = pnand %p4097_p4, %p4091_p0 }
 0x52e   : > { %4101 = shalt.err (!%p4098_p11)
}
 0x52f   : > { %3758 = dma.vmem_to_hbm [thread:$0]  (%p4924_p2), %s4816_s20, 16, %s4814_s14, %s3255_s3  }
 0x530 PF: > { %s4925_s16 = sld [smem:[#allocation20_spill]]  ;;  %s4926_s21 = sld [smem:[#allocation22_spill]] }
 0x531   : > { %p4928_p7 = scmp.ge.s32.totalorder %s4152_s27, 2 }
 0x536   : > { %s3279_s9 = sand.u32 1, %s4925_s16   ;;  %p4927_p13 = scmp.ne.s32.totalorder %s4926_s21, 0 }
 0x537   : > { %s3280_s11 = scalar_lea.sflag [#allocation4], %s3279_s9 }
 0x538   : > { %p3784_p9 = pnand %p4928_p7, %p4927_p13 }
 0x53a   : > { %4135 = dma.done.wait (!%p3784_p9), %s3280_s11, 16  }
 0x53b   : > { %4137 = vsyncadd (!%p3784_p9), %s3280_s11, 4294967280  ;;  %s4929_s27 = sld [smem:[#allocation23_spill]]  ;;  %s4930_s5 = sld [smem:[#allocation21_spill]] }
 0x53c   : > { %s4931_s26 = sld [smem:[#allocation24_spill]]  ;;  %s4932_s24 = smov %s4144_s25 }
 0x541   : > { %p25_p12 = scmp.ge.s32.totalorder %s4929_s27, 4   ;;  %s4933_s25 = smov %s4930_s5 }
 0x543   :  { %27 = sbr.rel (!%p25_p12) target bundleno = 13 (0xd), region = 143 }
 0x54a   :  { %3284 = vsyncpa [#allocation3], 1 }
 0x54b   :  { %3286 = vsyncpa [#allocation3 + $0x1], 1 }
 0x54c   :  { %3287 = vsyncpa [#allocation6], 1 }
 0x54d   :  { %3289 = vsyncpa [#allocation6 + $0x1], 1 }
 0x54e   :  { %3290 = vsyncpa [#allocation9], 1 }
 0x54f   :  { %3291 = vsyncpa [#allocation12], 1 }
 0x550   :  { %3292 = vsyncpa [#allocation4], 1 }
 0x551   :  { %3294 = vsyncpa [#allocation4 + $0x1], 1 }

</bundles_post_ra>
